<compile_context>
chip_gen: v7x
topology: tpu7x:2x2x1
jax: 0.10.0
libtpu: 0.0.40
codegen_flags: <defaults>
</compile_context>

<pallas_src>
import jax
import jax.numpy as jnp
from jax.experimental import pallas as pl
from jax.experimental.pallas import tpu as pltpu

LANE = 128
SUBLANE = 8
BB = 8  # images per grid step (dense (8,128) output stores; tune per chip)


def _round_up(x, m):
    return (x + m - 1) // m * m


# ---------------------------------------------------------------------------
# Fused kernel: conv3x3 (one K=9*C_in dot) + bias + ReLU + masked avg-pool
#               + classifier, for BB images per grid step.
# ---------------------------------------------------------------------------
def _make_fused_kernel(bb, m_pad):
    def kernel(x_ref, w_ref, cb_ref, mask_ref, fw_ref, fb_ref, o_ref):
        # x_ref:    [bb*m_pad, 9*C_in] bf16   im2col rows, bb images stacked
        # w_ref:    [9*C_in, N_PAD]    bf16   packed conv taps
        # cb_ref:   [1, N_PAD]         f32    conv bias
        # mask_ref: [bb*m_pad, 1]      f32    1/(H*W) at valid rows, 0 at pad
        # fw_ref:   [N_PAD, NC_PAD]    bf16   classifier weight
        # fb_ref:   [1, NC_PAD]        f32    classifier bias
        # o_ref:    [bb, NC_PAD]       f32    logits (lane-padded)

        # Single conv matmul for all bb images (M = bb*m_pad, K = 9*C_in).
        act = jnp.dot(x_ref[...], w_ref[...],
                      preferred_element_type=jnp.float32)
        act = jnp.maximum(act + cb_ref[...], 0.0)          # bias + ReLU
        # Masked global-average pool on the VPU/XLU (mask carries 1/(H*W)).
        act = act * mask_ref[...]
        feats = jnp.concatenate(
            [jnp.sum(act[i * m_pad:(i + 1) * m_pad, :], axis=0, keepdims=True)
             for i in range(bb)],
            axis=0)                                        # [bb, N_PAD]
        # Classifier: tiny bf16 MXU matmul, dense (bb, NC_PAD) store.
        o_ref[...] = jnp.dot(feats.astype(jnp.bfloat16), fw_ref[...],
                             preferred_element_type=jnp.float32) + fb_ref[...]

    return kernel


# ---------------------------------------------------------------------------
# Wrapper: im2col packing + pallas_call
# ---------------------------------------------------------------------------
@jax.jit
def _distill_forward(x_nchw, params):
    conv_w, conv_b = params["conv_w"], params["conv_b"]
    fc_w, fc_b = params["fc_w"], params["fc_b"]

    B, C_in, H, W = x_nchw.shape
    C_out = conv_w.shape[0]
    NC = fc_w.shape[0]
    K9 = 9 * C_in

    M_img = H * W
    M_pad = _round_up(M_img, SUBLANE)
    N_PAD = _round_up(C_out, LANE)
    NC_PAD = _round_up(NC, LANE)
    B_pad = _round_up(B, BB)
    n_steps = B_pad // BB

    # --- im2col LHS: [B_pad*M_pad, 9*C_in] bf16 (tap-major, channel-minor) --
    x_nhwc = jnp.transpose(x_nchw, (0, 2, 3, 1))                  # [B,H,W,Ci]
    x_p = jnp.pad(x_nhwc, ((0, 0), (1, 1), (1, 1), (0, 0)))       # SAME pad
    patches = jnp.concatenate(
        [x_p[:, kh:kh + H, kw:kw + W, :] for kh in range(3) for kw in range(3)],
        axis=-1)                                                  # [B,H,W,9Ci]
    lhs = patches.reshape(B, M_img, K9)
    lhs = jnp.pad(lhs, ((0, B_pad - B), (0, M_pad - M_img), (0, 0)))
    lhs = lhs.reshape(B_pad * M_pad, K9).astype(jnp.bfloat16)

    # --- conv weight packed to [9*C_in, N_PAD] bf16, same tap/channel order -
    w = jnp.transpose(conv_w, (2, 3, 1, 0)).reshape(K9, C_out)    # (kh,kw,i,o)
    w = jnp.pad(w, ((0, 0), (0, N_PAD - C_out))).astype(jnp.bfloat16)
    cb = jnp.pad(conv_b, (0, N_PAD - C_out)).reshape(1, N_PAD).astype(jnp.float32)

    # --- pooling mask [BB*M_pad, 1]: 1/(H*W) at valid rows, 0 at pad rows ---
    mask_img = jnp.concatenate([
        jnp.full((M_img,), 1.0 / float(M_img), jnp.float32),
        jnp.zeros((M_pad - M_img,), jnp.float32)])
    mask = jnp.tile(mask_img, (BB,)).reshape(BB * M_pad, 1)

    # --- classifier packed lane-dense: [N_PAD, NC_PAD] bf16 + f32 bias ------
    fw = jnp.pad(fc_w.T, ((0, N_PAD - C_out), (0, NC_PAD - NC))).astype(jnp.bfloat16)
    fb = jnp.pad(fc_b, (0, NC_PAD - NC)).reshape(1, NC_PAD).astype(jnp.float32)

    # Derive a scoped-VMEM limit from the actual per-step footprint and clamp
    # to 64 MiB so the same setting is safe on v7x (64 MiB physical VMEM).
    lhs_bytes = BB * M_pad * K9 * 2
    act_bytes = BB * M_pad * N_PAD * 4
    vmem_limit = int(min(64 * 2**20,
                         max(16 * 2**20, 2 * (2 * lhs_bytes + act_bytes))))

    kernel = _make_fused_kernel(BB, M_pad)
    logits_pad = pl.pallas_call(
        kernel,
        out_shape=jax.ShapeDtypeStruct((B_pad, NC_PAD), jnp.float32),
        grid=(n_steps,),
        in_specs=[
            pl.BlockSpec((BB * M_pad, K9), lambda b: (b, 0)),      # im2col LHS
            pl.BlockSpec((K9, N_PAD), lambda b: (0, 0)),           # conv W
            pl.BlockSpec((1, N_PAD), lambda b: (0, 0)),            # conv bias
            pl.BlockSpec((BB * M_pad, 1), lambda b: (0, 0)),       # pool mask
            pl.BlockSpec((N_PAD, NC_PAD), lambda b: (0, 0)),       # fc weight
            pl.BlockSpec((1, NC_PAD), lambda b: (0, 0)),           # fc bias
        ],
        out_specs=pl.BlockSpec((BB, NC_PAD), lambda b: (b, 0)),
        compiler_params=pltpu.CompilerParams(
            dimension_semantics=("parallel",),
            vmem_limit_bytes=vmem_limit,
        ),
    )(lhs, w, cb, mask, fw, fb)

    return logits_pad[:B, :NC]


class DistillLayerPallas:
    """JAX/Pallas equivalent of DistillLayer(emb_func, classifier, is_distill)."""

    def __init__(self, params, is_distill):
        # Mirrors _load_state_dict: if not distilling, sub-modules are None.
        self.params = params if is_distill else None

    def forward(self, x_nchw):
        if self.params is None:
            return None                 # emb_func / classifier None -> None
        return _distill_forward(x_nchw, self.params)


# ---------------------------------------------------------------------------
# Pure-JAX reference (for correctness check)
# ---------------------------------------------------------------------------
def reference_forward(x_nchw, params):
    y = jax.lax.conv_general_dilated(
        x_nchw, params["conv_w"], window_strides=(1, 1), padding="SAME",
        dimension_numbers=("NCHW", "OIHW", "NCHW"))
    y = y + params["conv_b"].reshape(1, -1, 1, 1)
    y = jnp.maximum(y, 0.0)
    feats = jnp.mean(y, axis=(2, 3))                            # [B, C_out]
    return feats @ params["fc_w"].T + params["fc_b"]


if __name__ == "__main__":
    B, C_in, H, W = 2, 4, 16, 16
    C_out, num_classes = 32, 10

    key = jax.random.PRNGKey(0)
    kx, kcw, kcb, kfw, kfb = jax.random.split(key, 5)

    x = jax.random.normal(kx, (B, C_in, H, W), dtype=jnp.float32)
    params = {
        "conv_w": jax.random.normal(kcw, (C_out, C_in, 3, 3), jnp.float32) * 0.1,
        "conv_b": jax.random.normal(kcb, (C_out,), jnp.float32) * 0.1,
        "fc_w":   jax.random.normal(kfw, (num_classes, C_out), jnp.float32) * 0.1,
        "fc_b":   jax.random.normal(kfb, (num_classes,), jnp.float32) * 0.1,
    }

    layer = DistillLayerPallas(params, is_distill=True)
    out = jax.block_until_ready(layer.forward(x))

    ref = jax.block_until_ready(reference_forward(x, params))
    assert out.shape == (B, num_classes)
    # bf16 operands on the MXU -> slightly looser tolerance than pure f32
    assert jnp.allclose(out, ref, rtol=2e-2, atol=2e-2), "mismatch vs reference"

    # is_distill=False path returns None (matches PyTorch module semantics)
    assert DistillLayerPallas(params, is_distill=False).forward(x) is None

    print("KERNEL_OK")
</pallas_src>

<mosaic_0001>
module attributes {stable_mosaic.version = 11 : i64} {
  func.func @kernel(%arg0: i32, %arg1: memref<2048x36xbf16, #tpu.memory_space<vmem>>, %arg2: memref<36x128xbf16, #tpu.memory_space<vmem>>, %arg3: memref<1x128xf32, #tpu.memory_space<vmem>>, %arg4: memref<2048x1xf32, #tpu.memory_space<vmem>>, %arg5: memref<128x128xbf16, #tpu.memory_space<vmem>>, %arg6: memref<1x128xf32, #tpu.memory_space<vmem>>, %arg7: memref<8x128xf32, #tpu.memory_space<vmem>>) attributes {dimension_semantics = [#tpu.dimension_semantics<parallel>], iteration_bounds = array<i64: 1>, scalar_prefetch = 0 : i64, scratch_operands = 0 : i64, tpu.core_type = #tpu.core_type<tc>, window_params = [{transform_indices = @transform_0, window_bounds = array<i64: 2048, 36>}, {pipeline_mode = #tpu.pipeline_mode<synchronous>, transform_indices = @transform_1, window_bounds = array<i64: 36, 128>}, {pipeline_mode = #tpu.pipeline_mode<synchronous>, transform_indices = @transform_2, window_bounds = array<i64: 1, 128>}, {pipeline_mode = #tpu.pipeline_mode<synchronous>, transform_indices = @transform_3, window_bounds = array<i64: 2048, 1>}, {pipeline_mode = #tpu.pipeline_mode<synchronous>, transform_indices = @transform_4, window_bounds = array<i64: 128, 128>}, {pipeline_mode = #tpu.pipeline_mode<synchronous>, transform_indices = @transform_5, window_bounds = array<i64: 1, 128>}, {transform_indices = @transform_6, window_bounds = array<i64: 8, 128>}]} {
    %c0 = arith.constant 0 : index
    %c0_0 = arith.constant 0 : index
    %0 = vector.load %arg1[%c0, %c0_0] : memref<2048x36xbf16, #tpu.memory_space<vmem>>, vector<2048x36xbf16>
    %c0_1 = arith.constant 0 : index
    %c0_2 = arith.constant 0 : index
    %1 = vector.load %arg2[%c0_1, %c0_2] : memref<36x128xbf16, #tpu.memory_space<vmem>>, vector<36x128xbf16>
    %cst = arith.constant dense<0.000000e+00> : vector<2048x128xf32>
    %2 = tpu.matmul %0, %1, %cst {dimension_numbers = #tpu.dot_dimension_numbers<[1], [0], [0], [1], [0, 0, 1, 1], [], []>} : vector<2048x36xbf16>, vector<36x128xbf16>, vector<2048x128xf32> -> vector<2048x128xf32>
    %c0_3 = arith.constant 0 : index
    %c0_4 = arith.constant 0 : index
    %3 = vector.load %arg3[%c0_3, %c0_4] : memref<1x128xf32, #tpu.memory_space<vmem>>, vector<1x128xf32>
    %4 = vector.broadcast %3 : vector<1x128xf32> to vector<2048x128xf32>
    %5 = arith.addf %2, %4 : vector<2048x128xf32>
    %cst_5 = arith.constant 0.000000e+00 : f32
    %6 = vector.broadcast %cst_5 : f32 to vector<2048x128xf32>
    %7 = arith.maximumf %5, %6 : vector<2048x128xf32>
    %c0_6 = arith.constant 0 : index
    %c0_7 = arith.constant 0 : index
    %8 = vector.load %arg4[%c0_6, %c0_7] : memref<2048x1xf32, #tpu.memory_space<vmem>>, vector<2048x1xf32>
    %9 = vector.broadcast %8 : vector<2048x1xf32> to vector<2048x128xf32>
    %10 = arith.mulf %7, %9 : vector<2048x128xf32>
    %11 = vector.extract_strided_slice %10 {offsets = [0, 0], sizes = [256, 128], strides = [1, 1]} : vector<2048x128xf32> to vector<256x128xf32>
    %cst_8 = arith.constant dense<0.000000e+00> : vector<128xf32>
    %12 = vector.multi_reduction <add>, %11, %cst_8 [0] : vector<256x128xf32> to vector<128xf32>
    %13 = vector.shape_cast %12 : vector<128xf32> to vector<1x128xf32>
    %14 = vector.extract_strided_slice %10 {offsets = [256, 0], sizes = [256, 128], strides = [1, 1]} : vector<2048x128xf32> to vector<256x128xf32>
    %cst_9 = arith.constant dense<0.000000e+00> : vector<128xf32>
    %15 = vector.multi_reduction <add>, %14, %cst_9 [0] : vector<256x128xf32> to vector<128xf32>
    %16 = vector.shape_cast %15 : vector<128xf32> to vector<1x128xf32>
    %17 = vector.extract_strided_slice %10 {offsets = [512, 0], sizes = [256, 128], strides = [1, 1]} : vector<2048x128xf32> to vector<256x128xf32>
    %cst_10 = arith.constant dense<0.000000e+00> : vector<128xf32>
    %18 = vector.multi_reduction <add>, %17, %cst_10 [0] : vector<256x128xf32> to vector<128xf32>
    %19 = vector.shape_cast %18 : vector<128xf32> to vector<1x128xf32>
    %20 = vector.extract_strided_slice %10 {offsets = [768, 0], sizes = [256, 128], strides = [1, 1]} : vector<2048x128xf32> to vector<256x128xf32>
    %cst_11 = arith.constant dense<0.000000e+00> : vector<128xf32>
    %21 = vector.multi_reduction <add>, %20, %cst_11 [0] : vector<256x128xf32> to vector<128xf32>
    %22 = vector.shape_cast %21 : vector<128xf32> to vector<1x128xf32>
    %23 = vector.extract_strided_slice %10 {offsets = [1024, 0], sizes = [256, 128], strides = [1, 1]} : vector<2048x128xf32> to vector<256x128xf32>
    %cst_12 = arith.constant dense<0.000000e+00> : vector<128xf32>
    %24 = vector.multi_reduction <add>, %23, %cst_12 [0] : vector<256x128xf32> to vector<128xf32>
    %25 = vector.shape_cast %24 : vector<128xf32> to vector<1x128xf32>
    %26 = vector.extract_strided_slice %10 {offsets = [1280, 0], sizes = [256, 128], strides = [1, 1]} : vector<2048x128xf32> to vector<256x128xf32>
    %cst_13 = arith.constant dense<0.000000e+00> : vector<128xf32>
    %27 = vector.multi_reduction <add>, %26, %cst_13 [0] : vector<256x128xf32> to vector<128xf32>
    %28 = vector.shape_cast %27 : vector<128xf32> to vector<1x128xf32>
    %29 = vector.extract_strided_slice %10 {offsets = [1536, 0], sizes = [256, 128], strides = [1, 1]} : vector<2048x128xf32> to vector<256x128xf32>
    %cst_14 = arith.constant dense<0.000000e+00> : vector<128xf32>
    %30 = vector.multi_reduction <add>, %29, %cst_14 [0] : vector<256x128xf32> to vector<128xf32>
    %31 = vector.shape_cast %30 : vector<128xf32> to vector<1x128xf32>
    %32 = vector.extract_strided_slice %10 {offsets = [1792, 0], sizes = [256, 128], strides = [1, 1]} : vector<2048x128xf32> to vector<256x128xf32>
    %cst_15 = arith.constant dense<0.000000e+00> : vector<128xf32>
    %33 = vector.multi_reduction <add>, %32, %cst_15 [0] : vector<256x128xf32> to vector<128xf32>
    %34 = vector.shape_cast %33 : vector<128xf32> to vector<1x128xf32>
    %35 = tpu.concatenate %13, %16, %19, %22, %25, %28, %31, %34 in 0 : vector<1x128xf32>, vector<1x128xf32>, vector<1x128xf32>, vector<1x128xf32>, vector<1x128xf32>, vector<1x128xf32>, vector<1x128xf32>, vector<1x128xf32> -> vector<8x128xf32>
    %36 = arith.truncf %35 : vector<8x128xf32> to vector<8x128xbf16>
    %c0_16 = arith.constant 0 : index
    %c0_17 = arith.constant 0 : index
    %37 = vector.load %arg5[%c0_16, %c0_17] : memref<128x128xbf16, #tpu.memory_space<vmem>>, vector<128x128xbf16>
    %cst_18 = arith.constant dense<0.000000e+00> : vector<8x128xf32>
    %38 = tpu.matmul %36, %37, %cst_18 {dimension_numbers = #tpu.dot_dimension_numbers<[1], [0], [0], [1], [0, 0, 1, 1], [], []>} : vector<8x128xbf16>, vector<128x128xbf16>, vector<8x128xf32> -> vector<8x128xf32>
    %c0_19 = arith.constant 0 : index
    %c0_20 = arith.constant 0 : index
    %39 = vector.load %arg6[%c0_19, %c0_20] : memref<1x128xf32, #tpu.memory_space<vmem>>, vector<1x128xf32>
    %40 = vector.broadcast %39 : vector<1x128xf32> to vector<8x128xf32>
    %41 = arith.addf %38, %40 : vector<8x128xf32>
    %c0_21 = arith.constant 0 : index
    %c0_22 = arith.constant 0 : index
    %42 = vector.load %arg7[%c0_21, %c0_22] : memref<8x128xf32, #tpu.memory_space<vmem>>, vector<8x128xf32>
    tpu.vector_store %arg7[%c0_21, %c0_22], %41 {strides = array<i32>} : memref<8x128xf32, #tpu.memory_space<vmem>>, vector<8x128xf32>,
    return
  }
  func.func @transform_0(%arg0: i32) -> (i32, i32) {
    %c0_i32 = arith.constant 0 : i32
    %c0_i32_0 = arith.constant 0 : i32
    return %arg0, %c0_i32 : i32, i32
  }
  func.func @transform_1(%arg0: i32) -> (i32, i32) {
    %c0_i32 = arith.constant 0 : i32
    %c0_i32_0 = arith.constant 0 : i32
    %c0_i32_1 = arith.constant 0 : i32
    return %c0_i32, %c0_i32_0 : i32, i32
  }
  func.func @transform_2(%arg0: i32) -> (i32, i32) {
    %c0_i32 = arith.constant 0 : i32
    %c0_i32_0 = arith.constant 0 : i32
    %c0_i32_1 = arith.constant 0 : i32
    return %c0_i32, %c0_i32_0 : i32, i32
  }
  func.func @transform_3(%arg0: i32) -> (i32, i32) {
    %c0_i32 = arith.constant 0 : i32
    %c0_i32_0 = arith.constant 0 : i32
    %c0_i32_1 = arith.constant 0 : i32
    return %c0_i32, %c0_i32_0 : i32, i32
  }
  func.func @transform_4(%arg0: i32) -> (i32, i32) {
    %c0_i32 = arith.constant 0 : i32
    %c0_i32_0 = arith.constant 0 : i32
    %c0_i32_1 = arith.constant 0 : i32
    return %c0_i32, %c0_i32_0 : i32, i32
  }
  func.func @transform_5(%arg0: i32) -> (i32, i32) {
    %c0_i32 = arith.constant 0 : i32
    %c0_i32_0 = arith.constant 0 : i32
    %c0_i32_1 = arith.constant 0 : i32
    return %c0_i32, %c0_i32_0 : i32, i32
  }
  func.func @transform_6(%arg0: i32) -> (i32, i32) {
    %c0_i32 = arith.constant 0 : i32
    %c0_i32_0 = arith.constant 0 : i32
    return %arg0, %c0_i32 : i32, i32
  }
}

</mosaic_0001>

<bundles_post_ra>
// kernel: tile.1
= control target key start
LH: loop header
LB: loop body
LE: loop exit
PB: predicated region body
PF: predicated region fallthrough
CT: control target
= control target key end

     0   :  { %s1808_s0 = inlined_call_operand.<no memory space> [shape: f32[], index: 0, kind: input, shape index: {}]   ;;  %s1809_s1 = inlined_call_operand.vmem [shape: f32[2048,1], index: 1, kind: output, shape index: {}]  }
   0x1   :  { %v782_v0 = vstv %s1808_s0 }
   0x2   :  { %3 = vst [vmem:[%s1809_s1] sm:$0xff] %v782_v0  ;;  %514 = vst [vmem:[%s1809_s1 + $0x8] sm:$0xff] %v782_v0 }
   0x3   :  { %515 = vst [vmem:[%s1809_s1 + $0x10] sm:$0xff] %v782_v0  ;;  %516 = vst [vmem:[%s1809_s1 + $0x18] sm:$0xff] %v782_v0 }
   0x4   :  { %517 = vst [vmem:[%s1809_s1 + $0x20] sm:$0xff] %v782_v0  ;;  %518 = vst [vmem:[%s1809_s1 + $0x28] sm:$0xff] %v782_v0 }
   0x5   :  { %519 = vst [vmem:[%s1809_s1 + $0x30] sm:$0xff] %v782_v0  ;;  %520 = vst [vmem:[%s1809_s1 + $0x38] sm:$0xff] %v782_v0 }
   0x6   :  { %521 = vst [vmem:[%s1809_s1 + $0x40] sm:$0xff] %v782_v0  ;;  %522 = vst [vmem:[%s1809_s1 + $0x48] sm:$0xff] %v782_v0 }
   0x7   :  { %523 = vst [vmem:[%s1809_s1 + $0x50] sm:$0xff] %v782_v0  ;;  %524 = vst [vmem:[%s1809_s1 + $0x58] sm:$0xff] %v782_v0 }
   0x8   :  { %525 = vst [vmem:[%s1809_s1 + $0x60] sm:$0xff] %v782_v0  ;;  %526 = vst [vmem:[%s1809_s1 + $0x68] sm:$0xff] %v782_v0 }
   0x9   :  { %527 = vst [vmem:[%s1809_s1 + $0x70] sm:$0xff] %v782_v0  ;;  %528 = vst [vmem:[%s1809_s1 + $0x78] sm:$0xff] %v782_v0 }
   0xa   :  { %529 = vst [vmem:[%s1809_s1 + $0x80] sm:$0xff] %v782_v0  ;;  %530 = vst [vmem:[%s1809_s1 + $0x88] sm:$0xff] %v782_v0 }
   0xb   :  { %531 = vst [vmem:[%s1809_s1 + $0x90] sm:$0xff] %v782_v0  ;;  %532 = vst [vmem:[%s1809_s1 + $0x98] sm:$0xff] %v782_v0 }
   0xc   :  { %533 = vst [vmem:[%s1809_s1 + $0xa0] sm:$0xff] %v782_v0  ;;  %534 = vst [vmem:[%s1809_s1 + $0xa8] sm:$0xff] %v782_v0 }
   0xd   :  { %535 = vst [vmem:[%s1809_s1 + $0xb0] sm:$0xff] %v782_v0  ;;  %536 = vst [vmem:[%s1809_s1 + $0xb8] sm:$0xff] %v782_v0 }
   0xe   :  { %537 = vst [vmem:[%s1809_s1 + $0xc0] sm:$0xff] %v782_v0  ;;  %538 = vst [vmem:[%s1809_s1 + $0xc8] sm:$0xff] %v782_v0 }
   0xf   :  { %539 = vst [vmem:[%s1809_s1 + $0xd0] sm:$0xff] %v782_v0  ;;  %540 = vst [vmem:[%s1809_s1 + $0xd8] sm:$0xff] %v782_v0 }
  0x10   :  { %541 = vst [vmem:[%s1809_s1 + $0xe0] sm:$0xff] %v782_v0  ;;  %542 = vst [vmem:[%s1809_s1 + $0xe8] sm:$0xff] %v782_v0 }
  0x11   :  { %543 = vst [vmem:[%s1809_s1 + $0xf0] sm:$0xff] %v782_v0  ;;  %544 = vst [vmem:[%s1809_s1 + $0xf8] sm:$0xff] %v782_v0 }
  0x12   :  { %545 = vst [vmem:[%s1809_s1 + $0x100] sm:$0xff] %v782_v0  ;;  %546 = vst [vmem:[%s1809_s1 + $0x108] sm:$0xff] %v782_v0 }
  0x13   :  { %547 = vst [vmem:[%s1809_s1 + $0x110] sm:$0xff] %v782_v0  ;;  %548 = vst [vmem:[%s1809_s1 + $0x118] sm:$0xff] %v782_v0 }
  0x14   :  { %549 = vst [vmem:[%s1809_s1 + $0x120] sm:$0xff] %v782_v0  ;;  %550 = vst [vmem:[%s1809_s1 + $0x128] sm:$0xff] %v782_v0 }
  0x15   :  { %551 = vst [vmem:[%s1809_s1 + $0x130] sm:$0xff] %v782_v0  ;;  %552 = vst [vmem:[%s1809_s1 + $0x138] sm:$0xff] %v782_v0 }
  0x16   :  { %553 = vst [vmem:[%s1809_s1 + $0x140] sm:$0xff] %v782_v0  ;;  %554 = vst [vmem:[%s1809_s1 + $0x148] sm:$0xff] %v782_v0 }
  0x17   :  { %555 = vst [vmem:[%s1809_s1 + $0x150] sm:$0xff] %v782_v0  ;;  %556 = vst [vmem:[%s1809_s1 + $0x158] sm:$0xff] %v782_v0 }
  0x18   :  { %557 = vst [vmem:[%s1809_s1 + $0x160] sm:$0xff] %v782_v0  ;;  %558 = vst [vmem:[%s1809_s1 + $0x168] sm:$0xff] %v782_v0 }
  0x19   :  { %559 = vst [vmem:[%s1809_s1 + $0x170] sm:$0xff] %v782_v0  ;;  %560 = vst [vmem:[%s1809_s1 + $0x178] sm:$0xff] %v782_v0 }
  0x1a   :  { %561 = vst [vmem:[%s1809_s1 + $0x180] sm:$0xff] %v782_v0  ;;  %562 = vst [vmem:[%s1809_s1 + $0x188] sm:$0xff] %v782_v0 }
  0x1b   :  { %563 = vst [vmem:[%s1809_s1 + $0x190] sm:$0xff] %v782_v0  ;;  %564 = vst [vmem:[%s1809_s1 + $0x198] sm:$0xff] %v782_v0 }
  0x1c   :  { %565 = vst [vmem:[%s1809_s1 + $0x1a0] sm:$0xff] %v782_v0  ;;  %566 = vst [vmem:[%s1809_s1 + $0x1a8] sm:$0xff] %v782_v0 }
  0x1d   :  { %567 = vst [vmem:[%s1809_s1 + $0x1b0] sm:$0xff] %v782_v0  ;;  %568 = vst [vmem:[%s1809_s1 + $0x1b8] sm:$0xff] %v782_v0 }
  0x1e   :  { %569 = vst [vmem:[%s1809_s1 + $0x1c0] sm:$0xff] %v782_v0  ;;  %570 = vst [vmem:[%s1809_s1 + $0x1c8] sm:$0xff] %v782_v0 }
  0x1f   :  { %571 = vst [vmem:[%s1809_s1 + $0x1d0] sm:$0xff] %v782_v0  ;;  %572 = vst [vmem:[%s1809_s1 + $0x1d8] sm:$0xff] %v782_v0 }
  0x20   :  { %573 = vst [vmem:[%s1809_s1 + $0x1e0] sm:$0xff] %v782_v0  ;;  %574 = vst [vmem:[%s1809_s1 + $0x1e8] sm:$0xff] %v782_v0 }
  0x21   :  { %575 = vst [vmem:[%s1809_s1 + $0x1f0] sm:$0xff] %v782_v0  ;;  %576 = vst [vmem:[%s1809_s1 + $0x1f8] sm:$0xff] %v782_v0 }
  0x22   :  { %577 = vst [vmem:[%s1809_s1 + $0x200] sm:$0xff] %v782_v0  ;;  %578 = vst [vmem:[%s1809_s1 + $0x208] sm:$0xff] %v782_v0 }
  0x23   :  { %579 = vst [vmem:[%s1809_s1 + $0x210] sm:$0xff] %v782_v0  ;;  %580 = vst [vmem:[%s1809_s1 + $0x218] sm:$0xff] %v782_v0 }
  0x24   :  { %581 = vst [vmem:[%s1809_s1 + $0x220] sm:$0xff] %v782_v0  ;;  %582 = vst [vmem:[%s1809_s1 + $0x228] sm:$0xff] %v782_v0 }
  0x25   :  { %583 = vst [vmem:[%s1809_s1 + $0x230] sm:$0xff] %v782_v0  ;;  %584 = vst [vmem:[%s1809_s1 + $0x238] sm:$0xff] %v782_v0 }
  0x26   :  { %585 = vst [vmem:[%s1809_s1 + $0x240] sm:$0xff] %v782_v0  ;;  %586 = vst [vmem:[%s1809_s1 + $0x248] sm:$0xff] %v782_v0 }
  0x27   :  { %587 = vst [vmem:[%s1809_s1 + $0x250] sm:$0xff] %v782_v0  ;;  %588 = vst [vmem:[%s1809_s1 + $0x258] sm:$0xff] %v782_v0 }
  0x28   :  { %589 = vst [vmem:[%s1809_s1 + $0x260] sm:$0xff] %v782_v0  ;;  %590 = vst [vmem:[%s1809_s1 + $0x268] sm:$0xff] %v782_v0 }
  0x29   :  { %591 = vst [vmem:[%s1809_s1 + $0x270] sm:$0xff] %v782_v0  ;;  %592 = vst [vmem:[%s1809_s1 + $0x278] sm:$0xff] %v782_v0 }
  0x2a   :  { %593 = vst [vmem:[%s1809_s1 + $0x280] sm:$0xff] %v782_v0  ;;  %594 = vst [vmem:[%s1809_s1 + $0x288] sm:$0xff] %v782_v0 }
  0x2b   :  { %595 = vst [vmem:[%s1809_s1 + $0x290] sm:$0xff] %v782_v0  ;;  %596 = vst [vmem:[%s1809_s1 + $0x298] sm:$0xff] %v782_v0 }
  0x2c   :  { %597 = vst [vmem:[%s1809_s1 + $0x2a0] sm:$0xff] %v782_v0  ;;  %598 = vst [vmem:[%s1809_s1 + $0x2a8] sm:$0xff] %v782_v0 }
  0x2d   :  { %599 = vst [vmem:[%s1809_s1 + $0x2b0] sm:$0xff] %v782_v0  ;;  %600 = vst [vmem:[%s1809_s1 + $0x2b8] sm:$0xff] %v782_v0 }
  0x2e   :  { %601 = vst [vmem:[%s1809_s1 + $0x2c0] sm:$0xff] %v782_v0  ;;  %602 = vst [vmem:[%s1809_s1 + $0x2c8] sm:$0xff] %v782_v0 }
  0x2f   :  { %603 = vst [vmem:[%s1809_s1 + $0x2d0] sm:$0xff] %v782_v0  ;;  %604 = vst [vmem:[%s1809_s1 + $0x2d8] sm:$0xff] %v782_v0 }
  0x30   :  { %605 = vst [vmem:[%s1809_s1 + $0x2e0] sm:$0xff] %v782_v0  ;;  %606 = vst [vmem:[%s1809_s1 + $0x2e8] sm:$0xff] %v782_v0 }
  0x31   :  { %607 = vst [vmem:[%s1809_s1 + $0x2f0] sm:$0xff] %v782_v0  ;;  %608 = vst [vmem:[%s1809_s1 + $0x2f8] sm:$0xff] %v782_v0 }
  0x32   :  { %609 = vst [vmem:[%s1809_s1 + $0x300] sm:$0xff] %v782_v0  ;;  %610 = vst [vmem:[%s1809_s1 + $0x308] sm:$0xff] %v782_v0 }
  0x33   :  { %611 = vst [vmem:[%s1809_s1 + $0x310] sm:$0xff] %v782_v0  ;;  %612 = vst [vmem:[%s1809_s1 + $0x318] sm:$0xff] %v782_v0 }
  0x34   :  { %613 = vst [vmem:[%s1809_s1 + $0x320] sm:$0xff] %v782_v0  ;;  %614 = vst [vmem:[%s1809_s1 + $0x328] sm:$0xff] %v782_v0 }
  0x35   :  { %615 = vst [vmem:[%s1809_s1 + $0x330] sm:$0xff] %v782_v0  ;;  %616 = vst [vmem:[%s1809_s1 + $0x338] sm:$0xff] %v782_v0 }
  0x36   :  { %617 = vst [vmem:[%s1809_s1 + $0x340] sm:$0xff] %v782_v0  ;;  %618 = vst [vmem:[%s1809_s1 + $0x348] sm:$0xff] %v782_v0 }
  0x37   :  { %619 = vst [vmem:[%s1809_s1 + $0x350] sm:$0xff] %v782_v0  ;;  %620 = vst [vmem:[%s1809_s1 + $0x358] sm:$0xff] %v782_v0 }
  0x38   :  { %621 = vst [vmem:[%s1809_s1 + $0x360] sm:$0xff] %v782_v0  ;;  %622 = vst [vmem:[%s1809_s1 + $0x368] sm:$0xff] %v782_v0 }
  0x39   :  { %623 = vst [vmem:[%s1809_s1 + $0x370] sm:$0xff] %v782_v0  ;;  %624 = vst [vmem:[%s1809_s1 + $0x378] sm:$0xff] %v782_v0 }
  0x3a   :  { %625 = vst [vmem:[%s1809_s1 + $0x380] sm:$0xff] %v782_v0  ;;  %626 = vst [vmem:[%s1809_s1 + $0x388] sm:$0xff] %v782_v0 }
  0x3b   :  { %627 = vst [vmem:[%s1809_s1 + $0x390] sm:$0xff] %v782_v0  ;;  %628 = vst [vmem:[%s1809_s1 + $0x398] sm:$0xff] %v782_v0 }
  0x3c   :  { %629 = vst [vmem:[%s1809_s1 + $0x3a0] sm:$0xff] %v782_v0  ;;  %630 = vst [vmem:[%s1809_s1 + $0x3a8] sm:$0xff] %v782_v0 }
  0x3d   :  { %631 = vst [vmem:[%s1809_s1 + $0x3b0] sm:$0xff] %v782_v0  ;;  %632 = vst [vmem:[%s1809_s1 + $0x3b8] sm:$0xff] %v782_v0 }
  0x3e   :  { %633 = vst [vmem:[%s1809_s1 + $0x3c0] sm:$0xff] %v782_v0  ;;  %634 = vst [vmem:[%s1809_s1 + $0x3c8] sm:$0xff] %v782_v0 }
  0x3f   :  { %635 = vst [vmem:[%s1809_s1 + $0x3d0] sm:$0xff] %v782_v0  ;;  %636 = vst [vmem:[%s1809_s1 + $0x3d8] sm:$0xff] %v782_v0 }
  0x40   :  { %637 = vst [vmem:[%s1809_s1 + $0x3e0] sm:$0xff] %v782_v0  ;;  %638 = vst [vmem:[%s1809_s1 + $0x3e8] sm:$0xff] %v782_v0 }
  0x41   :  { %639 = vst [vmem:[%s1809_s1 + $0x3f0] sm:$0xff] %v782_v0  ;;  %640 = vst [vmem:[%s1809_s1 + $0x3f8] sm:$0xff] %v782_v0 }
  0x42   :  { %641 = vst [vmem:[%s1809_s1 + $0x400] sm:$0xff] %v782_v0  ;;  %642 = vst [vmem:[%s1809_s1 + $0x408] sm:$0xff] %v782_v0 }
  0x43   :  { %643 = vst [vmem:[%s1809_s1 + $0x410] sm:$0xff] %v782_v0  ;;  %644 = vst [vmem:[%s1809_s1 + $0x418] sm:$0xff] %v782_v0 }
  0x44   :  { %645 = vst [vmem:[%s1809_s1 + $0x420] sm:$0xff] %v782_v0  ;;  %646 = vst [vmem:[%s1809_s1 + $0x428] sm:$0xff] %v782_v0 }
  0x45   :  { %647 = vst [vmem:[%s1809_s1 + $0x430] sm:$0xff] %v782_v0  ;;  %648 = vst [vmem:[%s1809_s1 + $0x438] sm:$0xff] %v782_v0 }
  0x46   :  { %649 = vst [vmem:[%s1809_s1 + $0x440] sm:$0xff] %v782_v0  ;;  %650 = vst [vmem:[%s1809_s1 + $0x448] sm:$0xff] %v782_v0 }
  0x47   :  { %651 = vst [vmem:[%s1809_s1 + $0x450] sm:$0xff] %v782_v0  ;;  %652 = vst [vmem:[%s1809_s1 + $0x458] sm:$0xff] %v782_v0 }
  0x48   :  { %653 = vst [vmem:[%s1809_s1 + $0x460] sm:$0xff] %v782_v0  ;;  %654 = vst [vmem:[%s1809_s1 + $0x468] sm:$0xff] %v782_v0 }
  0x49   :  { %655 = vst [vmem:[%s1809_s1 + $0x470] sm:$0xff] %v782_v0  ;;  %656 = vst [vmem:[%s1809_s1 + $0x478] sm:$0xff] %v782_v0 }
  0x4a   :  { %657 = vst [vmem:[%s1809_s1 + $0x480] sm:$0xff] %v782_v0  ;;  %658 = vst [vmem:[%s1809_s1 + $0x488] sm:$0xff] %v782_v0 }
  0x4b   :  { %659 = vst [vmem:[%s1809_s1 + $0x490] sm:$0xff] %v782_v0  ;;  %660 = vst [vmem:[%s1809_s1 + $0x498] sm:$0xff] %v782_v0 }
  0x4c   :  { %661 = vst [vmem:[%s1809_s1 + $0x4a0] sm:$0xff] %v782_v0  ;;  %662 = vst [vmem:[%s1809_s1 + $0x4a8] sm:$0xff] %v782_v0 }
  0x4d   :  { %663 = vst [vmem:[%s1809_s1 + $0x4b0] sm:$0xff] %v782_v0  ;;  %664 = vst [vmem:[%s1809_s1 + $0x4b8] sm:$0xff] %v782_v0 }
  0x4e   :  { %665 = vst [vmem:[%s1809_s1 + $0x4c0] sm:$0xff] %v782_v0  ;;  %666 = vst [vmem:[%s1809_s1 + $0x4c8] sm:$0xff] %v782_v0 }
  0x4f   :  { %667 = vst [vmem:[%s1809_s1 + $0x4d0] sm:$0xff] %v782_v0  ;;  %668 = vst [vmem:[%s1809_s1 + $0x4d8] sm:$0xff] %v782_v0 }
  0x50   :  { %669 = vst [vmem:[%s1809_s1 + $0x4e0] sm:$0xff] %v782_v0  ;;  %670 = vst [vmem:[%s1809_s1 + $0x4e8] sm:$0xff] %v782_v0 }
  0x51   :  { %671 = vst [vmem:[%s1809_s1 + $0x4f0] sm:$0xff] %v782_v0  ;;  %672 = vst [vmem:[%s1809_s1 + $0x4f8] sm:$0xff] %v782_v0 }
  0x52   :  { %673 = vst [vmem:[%s1809_s1 + $0x500] sm:$0xff] %v782_v0  ;;  %674 = vst [vmem:[%s1809_s1 + $0x508] sm:$0xff] %v782_v0 }
  0x53   :  { %675 = vst [vmem:[%s1809_s1 + $0x510] sm:$0xff] %v782_v0  ;;  %676 = vst [vmem:[%s1809_s1 + $0x518] sm:$0xff] %v782_v0 }
  0x54   :  { %677 = vst [vmem:[%s1809_s1 + $0x520] sm:$0xff] %v782_v0  ;;  %678 = vst [vmem:[%s1809_s1 + $0x528] sm:$0xff] %v782_v0 }
  0x55   :  { %679 = vst [vmem:[%s1809_s1 + $0x530] sm:$0xff] %v782_v0  ;;  %680 = vst [vmem:[%s1809_s1 + $0x538] sm:$0xff] %v782_v0 }
  0x56   :  { %681 = vst [vmem:[%s1809_s1 + $0x540] sm:$0xff] %v782_v0  ;;  %682 = vst [vmem:[%s1809_s1 + $0x548] sm:$0xff] %v782_v0 }
  0x57   :  { %683 = vst [vmem:[%s1809_s1 + $0x550] sm:$0xff] %v782_v0  ;;  %684 = vst [vmem:[%s1809_s1 + $0x558] sm:$0xff] %v782_v0 }
  0x58   :  { %685 = vst [vmem:[%s1809_s1 + $0x560] sm:$0xff] %v782_v0  ;;  %686 = vst [vmem:[%s1809_s1 + $0x568] sm:$0xff] %v782_v0 }
  0x59   :  { %687 = vst [vmem:[%s1809_s1 + $0x570] sm:$0xff] %v782_v0  ;;  %688 = vst [vmem:[%s1809_s1 + $0x578] sm:$0xff] %v782_v0 }
  0x5a   :  { %689 = vst [vmem:[%s1809_s1 + $0x580] sm:$0xff] %v782_v0  ;;  %690 = vst [vmem:[%s1809_s1 + $0x588] sm:$0xff] %v782_v0 }
  0x5b   :  { %691 = vst [vmem:[%s1809_s1 + $0x590] sm:$0xff] %v782_v0  ;;  %692 = vst [vmem:[%s1809_s1 + $0x598] sm:$0xff] %v782_v0 }
  0x5c   :  { %693 = vst [vmem:[%s1809_s1 + $0x5a0] sm:$0xff] %v782_v0  ;;  %694 = vst [vmem:[%s1809_s1 + $0x5a8] sm:$0xff] %v782_v0 }
  0x5d   :  { %695 = vst [vmem:[%s1809_s1 + $0x5b0] sm:$0xff] %v782_v0  ;;  %696 = vst [vmem:[%s1809_s1 + $0x5b8] sm:$0xff] %v782_v0 }
  0x5e   :  { %697 = vst [vmem:[%s1809_s1 + $0x5c0] sm:$0xff] %v782_v0  ;;  %698 = vst [vmem:[%s1809_s1 + $0x5c8] sm:$0xff] %v782_v0 }
  0x5f   :  { %699 = vst [vmem:[%s1809_s1 + $0x5d0] sm:$0xff] %v782_v0  ;;  %700 = vst [vmem:[%s1809_s1 + $0x5d8] sm:$0xff] %v782_v0 }
  0x60   :  { %701 = vst [vmem:[%s1809_s1 + $0x5e0] sm:$0xff] %v782_v0  ;;  %702 = vst [vmem:[%s1809_s1 + $0x5e8] sm:$0xff] %v782_v0 }
  0x61   :  { %703 = vst [vmem:[%s1809_s1 + $0x5f0] sm:$0xff] %v782_v0  ;;  %704 = vst [vmem:[%s1809_s1 + $0x5f8] sm:$0xff] %v782_v0 }
  0x62   :  { %705 = vst [vmem:[%s1809_s1 + $0x600] sm:$0xff] %v782_v0  ;;  %706 = vst [vmem:[%s1809_s1 + $0x608] sm:$0xff] %v782_v0 }
  0x63   :  { %707 = vst [vmem:[%s1809_s1 + $0x610] sm:$0xff] %v782_v0  ;;  %708 = vst [vmem:[%s1809_s1 + $0x618] sm:$0xff] %v782_v0 }
  0x64   :  { %709 = vst [vmem:[%s1809_s1 + $0x620] sm:$0xff] %v782_v0  ;;  %710 = vst [vmem:[%s1809_s1 + $0x628] sm:$0xff] %v782_v0 }
  0x65   :  { %711 = vst [vmem:[%s1809_s1 + $0x630] sm:$0xff] %v782_v0  ;;  %712 = vst [vmem:[%s1809_s1 + $0x638] sm:$0xff] %v782_v0 }
  0x66   :  { %713 = vst [vmem:[%s1809_s1 + $0x640] sm:$0xff] %v782_v0  ;;  %714 = vst [vmem:[%s1809_s1 + $0x648] sm:$0xff] %v782_v0 }
  0x67   :  { %715 = vst [vmem:[%s1809_s1 + $0x650] sm:$0xff] %v782_v0  ;;  %716 = vst [vmem:[%s1809_s1 + $0x658] sm:$0xff] %v782_v0 }
  0x68   :  { %717 = vst [vmem:[%s1809_s1 + $0x660] sm:$0xff] %v782_v0  ;;  %718 = vst [vmem:[%s1809_s1 + $0x668] sm:$0xff] %v782_v0 }
  0x69   :  { %719 = vst [vmem:[%s1809_s1 + $0x670] sm:$0xff] %v782_v0  ;;  %720 = vst [vmem:[%s1809_s1 + $0x678] sm:$0xff] %v782_v0 }
  0x6a   :  { %721 = vst [vmem:[%s1809_s1 + $0x680] sm:$0xff] %v782_v0  ;;  %722 = vst [vmem:[%s1809_s1 + $0x688] sm:$0xff] %v782_v0 }
  0x6b   :  { %723 = vst [vmem:[%s1809_s1 + $0x690] sm:$0xff] %v782_v0  ;;  %724 = vst [vmem:[%s1809_s1 + $0x698] sm:$0xff] %v782_v0 }
  0x6c   :  { %725 = vst [vmem:[%s1809_s1 + $0x6a0] sm:$0xff] %v782_v0  ;;  %726 = vst [vmem:[%s1809_s1 + $0x6a8] sm:$0xff] %v782_v0 }
  0x6d   :  { %727 = vst [vmem:[%s1809_s1 + $0x6b0] sm:$0xff] %v782_v0  ;;  %728 = vst [vmem:[%s1809_s1 + $0x6b8] sm:$0xff] %v782_v0 }
  0x6e   :  { %729 = vst [vmem:[%s1809_s1 + $0x6c0] sm:$0xff] %v782_v0  ;;  %730 = vst [vmem:[%s1809_s1 + $0x6c8] sm:$0xff] %v782_v0 }
  0x6f   :  { %731 = vst [vmem:[%s1809_s1 + $0x6d0] sm:$0xff] %v782_v0  ;;  %732 = vst [vmem:[%s1809_s1 + $0x6d8] sm:$0xff] %v782_v0 }
  0x70   :  { %733 = vst [vmem:[%s1809_s1 + $0x6e0] sm:$0xff] %v782_v0  ;;  %734 = vst [vmem:[%s1809_s1 + $0x6e8] sm:$0xff] %v782_v0 }
  0x71   :  { %735 = vst [vmem:[%s1809_s1 + $0x6f0] sm:$0xff] %v782_v0  ;;  %736 = vst [vmem:[%s1809_s1 + $0x6f8] sm:$0xff] %v782_v0 }
  0x72   :  { %737 = vst [vmem:[%s1809_s1 + $0x700] sm:$0xff] %v782_v0  ;;  %738 = vst [vmem:[%s1809_s1 + $0x708] sm:$0xff] %v782_v0 }
  0x73   :  { %739 = vst [vmem:[%s1809_s1 + $0x710] sm:$0xff] %v782_v0  ;;  %740 = vst [vmem:[%s1809_s1 + $0x718] sm:$0xff] %v782_v0 }
  0x74   :  { %741 = vst [vmem:[%s1809_s1 + $0x720] sm:$0xff] %v782_v0  ;;  %742 = vst [vmem:[%s1809_s1 + $0x728] sm:$0xff] %v782_v0 }
  0x75   :  { %743 = vst [vmem:[%s1809_s1 + $0x730] sm:$0xff] %v782_v0  ;;  %744 = vst [vmem:[%s1809_s1 + $0x738] sm:$0xff] %v782_v0 }
  0x76   :  { %745 = vst [vmem:[%s1809_s1 + $0x740] sm:$0xff] %v782_v0  ;;  %746 = vst [vmem:[%s1809_s1 + $0x748] sm:$0xff] %v782_v0 }
  0x77   :  { %747 = vst [vmem:[%s1809_s1 + $0x750] sm:$0xff] %v782_v0  ;;  %748 = vst [vmem:[%s1809_s1 + $0x758] sm:$0xff] %v782_v0 }
  0x78   :  { %749 = vst [vmem:[%s1809_s1 + $0x760] sm:$0xff] %v782_v0  ;;  %750 = vst [vmem:[%s1809_s1 + $0x768] sm:$0xff] %v782_v0 }
  0x79   :  { %751 = vst [vmem:[%s1809_s1 + $0x770] sm:$0xff] %v782_v0  ;;  %752 = vst [vmem:[%s1809_s1 + $0x778] sm:$0xff] %v782_v0 }
  0x7a   :  { %753 = vst [vmem:[%s1809_s1 + $0x780] sm:$0xff] %v782_v0  ;;  %754 = vst [vmem:[%s1809_s1 + $0x788] sm:$0xff] %v782_v0 }
  0x7b   :  { %755 = vst [vmem:[%s1809_s1 + $0x790] sm:$0xff] %v782_v0  ;;  %756 = vst [vmem:[%s1809_s1 + $0x798] sm:$0xff] %v782_v0 }
  0x7c   :  { %757 = vst [vmem:[%s1809_s1 + $0x7a0] sm:$0xff] %v782_v0  ;;  %758 = vst [vmem:[%s1809_s1 + $0x7a8] sm:$0xff] %v782_v0 }
  0x7d   :  { %759 = vst [vmem:[%s1809_s1 + $0x7b0] sm:$0xff] %v782_v0  ;;  %760 = vst [vmem:[%s1809_s1 + $0x7b8] sm:$0xff] %v782_v0 }
  0x7e   :  { %761 = vst [vmem:[%s1809_s1 + $0x7c0] sm:$0xff] %v782_v0  ;;  %762 = vst [vmem:[%s1809_s1 + $0x7c8] sm:$0xff] %v782_v0 }
  0x7f   :  { %763 = vst [vmem:[%s1809_s1 + $0x7d0] sm:$0xff] %v782_v0  ;;  %764 = vst [vmem:[%s1809_s1 + $0x7d8] sm:$0xff] %v782_v0 }
  0x80   :  { %765 = vst [vmem:[%s1809_s1 + $0x7e0] sm:$0xff] %v782_v0  ;;  %766 = vst [vmem:[%s1809_s1 + $0x7e8] sm:$0xff] %v782_v0 }
  0x81   :  { %767 = vst [vmem:[%s1809_s1 + $0x7f0] sm:$0xff] %v782_v0  ;;  %768 = vst [vmem:[%s1809_s1 + $0x7f8] sm:$0xff] %v782_v0 }

// kernel: _distill_forward.1
= control target key start
LH: loop header
LB: loop body
LE: loop exit
PB: predicated region body
PF: predicated region fallthrough
CT: control target
= control target key end

     0   :  { %v5713_v0 = vmov 0   ;;  %vm947_vm0 = vcmask 293888   ;;  %vm1332_vm1 = vcmask 1041408   ;;  %vm4737_vm2 = vcmask 1040384   ;;  %s8319_s3 = inlined_call_operand.vmem [shape: f32[2048,1], index: 3, kind: input, shape index: {}]   ;;  %s8320_s1 = inlined_call_operand.vmem [shape: bf16[36,128], index: 1, kind: input, shape index: {}]   ;;  %s8321_s0 = inlined_call_operand.vmem [shape: bf16[2048,36], index: 0, kind: input, shape index: {}]   ;;  %s8322_s2 = inlined_call_operand.vmem [shape: f32[1,128], index: 2, kind: input, shape index: {}]   ;;  %s8323_s4 = inlined_call_operand.vmem [shape: bf16[128,128], index: 4, kind: input, shape index: {}]   ;;  %s8324_s5 = inlined_call_operand.vmem [shape: f32[1,128], index: 5, kind: input, shape index: {}]   ;;  %s8325_s6 = inlined_call_operand.vmem [shape: f32[8,128], index: 6, kind: output, shape index: {}]  }
   0x1   :  { %5570 = vset.pattern.permute.xlu1 %v5713_v0  ;;  %5569 = vset.pattern.permute.xlu0 %v5713_v0  ;;  %v2651_v1 = vld [vmem:[%s8319_s3 + $0x10] sm:$0xff]  ;;  %v2649_v2 = vld [vmem:[%s8319_s3] sm:$0xff]  ;;  %v2652_v4 = vld [vmem:[%s8319_s3 + $0x18] sm:$0xff]  ;;  %vm4740_vm3 = vcmask 1042432   ;;  %vm5715_vm4 = vmmov 0   ;;  %vm4742_vm5 = vcmask 1043456  }
   0x2   :  { %2917 = vperm.xlu1 %5570, %v2651_v1   ;;  %2907 = vperm.xlu0 %5569, %v2649_v2   ;;  %v5571_v3 = vld [vmem:[%s8320_s1] sm:$0xff]   ;;  %v2650_v5 = vld [vmem:[%s8319_s3 + $0x8] sm:$0xff]  ;;  %v5573_v8 = vld [vmem:[%s8320_s1 + $0x10] ss:$0 sps:$4 sm:$0x33]   ;;  %vm4744_vm6 = vcmask 1044480  }
   0x3   :  { %5276 = vmatprep.subr.bf16.mxu0 %v5571_v3  ;;  %v5572_v6 = vld [vmem:[%s8320_s1 + $0x8] sm:$0xff]   ;;  %5558 = vmatprep.subr.bf16.mxu1 %v5571_v3  ;;  %v2653_v9 = vld [vmem:[%s8319_s3 + $0x20] sm:$0xff]  ;;  %v1334_v11 = vsel %vm1332_vm1, %v5573_v8, 0  ;;  %v2656_v12 = vld [vmem:[%s8319_s3 + $0x38] sm:$0xff]  ;;  %vm4746_vm7 = vcmask 1045504   ;;  %vm4748_vm8 = vcmask 1046528  }
   0x4   :  { %5277 = vmatpush3.bf16.msra.mxu0 %v5571_v3  ;;  %v2654_v7 = vld [vmem:[%s8319_s3 + $0x28] sm:$0xff]  ;;  %5561 = vmatpush3.bf16.msra.mxu1 %v5571_v3  ;;  %v5574_v10 = vld [vmem:[%s8321_s0] sm:$0xff]   ;;  %v2655_v13 = vld [vmem:[%s8319_s3 + $0x30] sm:$0xff] }
   0x5   :  { %5278 = vmatprep.subr.bf16.mxu0 %v5572_v6  ;;  %5559 = vmatprep.subr.bf16.mxu1 %v5572_v6  ;;  %v5575_v14 = vld [vmem:[%s8321_s0 + $0x8] sm:$0xff]   ;;  %v5576_v15 = vld [vmem:[%s8321_s0 + $0x10] sm:$0xff]   ;;  %v2657_v17 = vld [vmem:[%s8319_s3 + $0x40] sm:$0xff] }
   0x6   :  { %2922 = vperm.xlu1 %5570, %v2652_v4   ;;  %2912 = vperm.xlu0 %5569, %v2650_v5   ;;  %v2658_v16 = vld [vmem:[%s8319_s3 + $0x48] sm:$0xff]  ;;  %v2660_v18 = vld [vmem:[%s8319_s3 + $0x58] sm:$0xff]  ;;  %v2659_v19 = vld [vmem:[%s8319_s3 + $0x50] sm:$0xff] }
   0x7   :  { %5282 = vmatprep.mubr.msk.bf16.mxu0 %vm947_vm0, %v5574_v10  ;;  %v5577_v20 = vld [vmem:[%s8321_s0 + $0x18] sm:$0xff]   ;;  %v5578_v21 = vld [vmem:[%s8321_s0 + $0x20] sm:$0xff]   ;;  %v2662_v22 = vld [vmem:[%s8319_s3 + $0x68] sm:$0xff] }
   0x8   :  { %5279 = vmatpush3.bf16.msra.mxu0 %v5572_v6  ;;  %5562 = vmatpush3.bf16.msra.mxu1 %v5572_v6  ;;  %v2661_v23 = vld [vmem:[%s8319_s3 + $0x60] sm:$0xff]  ;;  %v2664_v24 = vld [vmem:[%s8319_s3 + $0x78] sm:$0xff]  ;;  %v2663_v25 = vld [vmem:[%s8319_s3 + $0x70] sm:$0xff] }
   0x9   :  { %5564 = vmatprep.subr.msk.bf16.mxu0 %vm1332_vm1, %v5573_v8  ;;  %5565 = vmatprep.subr.msk.bf16.mxu1 %vm1332_vm1, %v5573_v8  ;;  %v5579_v26 = vld [vmem:[%s8321_s0 + $0x28] sm:$0xff]   ;;  %v5580_v27 = vld [vmem:[%s8321_s0 + $0x30] sm:$0xff]   ;;  %v5589_v29 = vld [vmem:[%s8321_s0 + $0x218] sm:$0xff]  }
   0xa   :  { %2932 = vperm.xlu1 %5570, %v2654_v7   ;;  %2927 = vperm.xlu0 %5569, %v2653_v9   ;;  %v5588_v28 = vld [vmem:[%s8321_s0 + $0x210] sm:$0xff]   ;;  %v2666_v30 = vld [vmem:[%s8319_s3 + $0x88] sm:$0xff]  ;;  %v2665_v31 = vld [vmem:[%s8319_s3 + $0x80] sm:$0xff] }
   0xb   :  { %5414 = vmatprep.mubr.msk.bf16.mxu1 %vm947_vm0, %v5588_v28  ;;  %v5592_v32 = vld [vmem:[%s8321_s0 + $0x220] sm:$0xff]   ;;  %v2668_v33 = vld [vmem:[%s8319_s3 + $0x98] sm:$0xff]  ;;  %v2667_v34 = vld [vmem:[%s8319_s3 + $0x90] sm:$0xff] }
   0xc   :  { %5281 = vmatpush3.bf16.msra.mxu0 %v1334_v11  ;;  %5563 = vmatpush3.bf16.msra.mxu1 %v1334_v11  ;;  %v5581_v35 = vld [vmem:[%s8321_s0 + $0x38] sm:$0xff]   ;;  %v5593_v36 = vld [vmem:[%s8321_s0 + $0x228] sm:$0xff]   ;;  %v5582_v38 = vld [vmem:[%s8321_s0 + $0x40] sm:$0xff]  }
   0xd   :  { %v2670_v37 = vld [vmem:[%s8319_s3 + $0xa8] sm:$0xff]  ;;  %v2669_v39 = vld [vmem:[%s8319_s3 + $0xa0] sm:$0xff]  ;;  %v5596_v40 = vld [vmem:[%s8321_s0 + $0x230] sm:$0xff]  }
   0xe   :  { %2942 = vperm.xlu1 %5570, %v2656_v12   ;;  %2937 = vperm.xlu0 %5569, %v2655_v13   ;;  %v2672_v41 = vld [vmem:[%s8319_s3 + $0xb8] sm:$0xff]  ;;  %v2671_v42 = vld [vmem:[%s8319_s3 + $0xb0] sm:$0xff]  ;;  %v5583_v43 = vld [vmem:[%s8321_s0 + $0x48] sm:$0xff]  }
   0xf   :  { %5283 = vmatmul.mubr.msk.bf16.vlgmr.msra.gmra.mrb[0].mxu0 %vm947_vm0, %v5575_v14  ;;  %5415 = vmatmul.mubr.msk.bf16.vlgmr.msra.gmra.mrb[0].mxu1 %vm947_vm0, %v5589_v29  ;;  %v5584_v44 = vld [vmem:[%s8321_s0 + $0x50] sm:$0xff]   ;;  %v5597_v45 = vld [vmem:[%s8321_s0 + $0x238] sm:$0xff]   ;;  %v5600_v46 = vld [vmem:[%s8321_s0 + $0x240] sm:$0xff]  }
  0x10   :  { %5286 = vmatprep.mubr.msk.bf16.mxu0 %vm947_vm0, %v5576_v15  ;;  %5418 = vmatprep.mubr.msk.bf16.mxu1 %vm947_vm0, %v5592_v32  ;;  %v2674_v47 = vld [vmem:[%s8319_s3 + $0xc8] sm:$0xff]  ;;  %v2673_v48 = vld [vmem:[%s8319_s3 + $0xc0] sm:$0xff]  ;;  %v2676_v49 = vld [vmem:[%s8319_s3 + $0xd8] sm:$0xff] }
  0x11   :  { %v2675_v50 = vld [vmem:[%s8319_s3 + $0xd0] sm:$0xff]  ;;  %v5585_v51 = vld [vmem:[%s8321_s0 + $0x58] sm:$0xff]   ;;  %v5586_v52 = vld [vmem:[%s8321_s0 + $0x60] sm:$0xff]  }
  0x12   :  { %2952 = vperm.xlu1 %5570, %v2658_v16   ;;  %2947 = vperm.xlu0 %5569, %v2657_v17   ;;  %v5601_v53 = vld [vmem:[%s8321_s0 + $0x248] sm:$0xff]   ;;  %v5604_v54 = vld [vmem:[%s8321_s0 + $0x250] sm:$0xff]   ;;  %v2677_v56 = vld [vmem:[%s8319_s3 + $0xe0] sm:$0xff] }
  0x13   :  { %v2678_v55 = vld [vmem:[%s8319_s3 + $0xe8] sm:$0xff]  ;;  %v2680_v57 = vld [vmem:[%s8319_s3 + $0xf8] sm:$0xff]  ;;  %v2679_v58 = vld [vmem:[%s8319_s3 + $0xf0] sm:$0xff] }
  0x14   :  { %v5587_v59 = vld [vmem:[%s8321_s0 + $0x68] sm:$0xff]   ;;  %v5590_v60 = vld [vmem:[%s8321_s0 + $0x70] sm:$0xff]   ;;  %v5605_v61 = vld [vmem:[%s8321_s0 + $0x258] sm:$0xff]  }
  0x15   :  { %v5608_v62 = vld [vmem:[%s8321_s0 + $0x260] sm:$0xff]   ;;  %v2682_v63 = vld [vmem:[%s8319_s3 + $0x108] sm:$0xff]  ;;  %v2684_v1 = vld [vmem:[%s8319_s3 + $0x118] sm:$0xff] }
  0x16   :  { %2962 = vperm.xlu1 %5570, %v2660_v18   ;;  %2957 = vperm.xlu0 %5569, %v2659_v19   ;;  %v2681_v0 = vld [vmem:[%s8319_s3 + $0x100] sm:$0xff]  ;;  %v2683_v2 = vld [vmem:[%s8319_s3 + $0x110] sm:$0xff]  ;;  %v5591_v3 = vld [vmem:[%s8321_s0 + $0x78] sm:$0xff]  }
  0x17   :  { %5287 = vmatmul.mubr.msk.bf16.gmra.mrb[4].mxu0 %vm947_vm0, %v5577_v20  ;;  %5419 = vmatmul.mubr.msk.bf16.gmra.mrb[4].mxu1 %vm947_vm0, %v5593_v36  ;;  %v5594_v4 = vld [vmem:[%s8321_s0 + $0x80] sm:$0xff]   ;;  %v5609_v5 = vld [vmem:[%s8321_s0 + $0x268] sm:$0xff]   ;;  %v5612_v6 = vld [vmem:[%s8321_s0 + $0x270] sm:$0xff]  }
  0x18   :  { %5290 = vmatprep.mubr.msk.bf16.mxu0 %vm947_vm0, %v5578_v21  ;;  %5422 = vmatprep.mubr.msk.bf16.mxu1 %vm947_vm0, %v5596_v40  ;;  %v2686_v7 = vld [vmem:[%s8319_s3 + $0x128] sm:$0xff]  ;;  %v2685_v8 = vld [vmem:[%s8319_s3 + $0x120] sm:$0xff]  ;;  %v2688_v9 = vld [vmem:[%s8319_s3 + $0x138] sm:$0xff] }
  0x19   :  { %v2687_v10 = vld [vmem:[%s8319_s3 + $0x130] sm:$0xff]  ;;  %v5595_v11 = vld [vmem:[%s8321_s0 + $0x88] sm:$0xff]   ;;  %v5613_v13 = vld [vmem:[%s8321_s0 + $0x278] sm:$0xff]  }
  0x1a   :  { %2972 = vperm.xlu1 %5570, %v2662_v22   ;;  %2967 = vperm.xlu0 %5569, %v2661_v23   ;;  %v5598_v12 = vld [vmem:[%s8321_s0 + $0x90] sm:$0xff]   ;;  %v5616_v14 = vld [vmem:[%s8321_s0 + $0x280] sm:$0xff]   ;;  %v2690_v15 = vld [vmem:[%s8319_s3 + $0x148] sm:$0xff] }
  0x1b   :  { %v2689_v16 = vld [vmem:[%s8319_s3 + $0x140] sm:$0xff]  ;;  %v2692_v17 = vld [vmem:[%s8319_s3 + $0x158] sm:$0xff]  ;;  %v2691_v18 = vld [vmem:[%s8319_s3 + $0x150] sm:$0xff] }
  0x1c   :  { %v5599_v19 = vld [vmem:[%s8321_s0 + $0x98] sm:$0xff]   ;;  %v5602_v20 = vld [vmem:[%s8321_s0 + $0xa0] sm:$0xff]   ;;  %v5617_v21 = vld [vmem:[%s8321_s0 + $0x288] sm:$0xff]  }
  0x1d   :  { %v5620_v22 = vld [vmem:[%s8321_s0 + $0x290] sm:$0xff]   ;;  %v2694_v23 = vld [vmem:[%s8319_s3 + $0x168] sm:$0xff]  ;;  %v5621_v29 = vld [vmem:[%s8321_s0 + $0x298] sm:$0xff]  }
  0x1e   :  { %2982 = vperm.xlu1 %5570, %v2664_v24   ;;  %2977 = vperm.xlu0 %5569, %v2663_v25   ;;  %v2693_v24 = vld [vmem:[%s8319_s3 + $0x160] sm:$0xff]  ;;  %v2696_v25 = vld [vmem:[%s8319_s3 + $0x178] sm:$0xff]  ;;  %v5606_v28 = vld [vmem:[%s8321_s0 + $0xb0] sm:$0xff]  }
  0x1f   :  { %5291 = vmatmul.mubr.msk.bf16.gmra.mrb[8].mxu0 %vm947_vm0, %v5579_v26  ;;  %5423 = vmatmul.mubr.msk.bf16.gmra.mrb[8].mxu1 %vm947_vm0, %v5597_v45  ;;  %v2695_v26 = vld [vmem:[%s8319_s3 + $0x170] sm:$0xff]  ;;  %v2697_v32 = vld [vmem:[%s8319_s3 + $0x180] sm:$0xff]  ;;  %v5629_v45 = vld [vmem:[%s8321_s0 + $0x2b8] sm:$0xff]  }
  0x20   :  { %5294 = vmatprep.mubr.msk.bf16.mxu0 %vm947_vm0, %v5580_v27  ;;  %5426 = vmatprep.mubr.msk.bf16.mxu1 %vm947_vm0, %v5600_v46  ;;  %v5603_v27 = vld [vmem:[%s8321_s0 + $0xa8] sm:$0xff]   ;;  %v5610_v36 = vld [vmem:[%s8321_s0 + $0xc0] sm:$0xff]  }
  0x21   :  { %v2701_v40 = vld [vmem:[%s8319_s3 + $0x1a0] sm:$0xff] }
  0x22   :  { %2992 = vperm.xlu1 %5570, %v2666_v30   ;;  %2987 = vperm.xlu0 %5569, %v2665_v31   ;;  %v5624_v30 = vld [vmem:[%s8321_s0 + $0x2a0] sm:$0xff]   ;;  %v2698_v31 = vld [vmem:[%s8319_s3 + $0x188] sm:$0xff] }
  0x23   :  { %v5632_v46 = vld [vmem:[%s8321_s0 + $0x2c0] sm:$0xff]  }
  0x26   :  { %3002 = vperm.xlu1 %5570, %v2668_v33   ;;  %2997 = vperm.xlu0 %5569, %v2667_v34   ;;  %v2700_v33 = vld [vmem:[%s8319_s3 + $0x198] sm:$0xff]  ;;  %v2699_v34 = vld [vmem:[%s8319_s3 + $0x190] sm:$0xff] }
  0x27   :  { %5295 = vmatmul.mubr.msk.bf16.gmra.mrb[12].mxu0 %vm947_vm0, %v5581_v35  ;;  %5427 = vmatmul.mubr.msk.bf16.gmra.mrb[12].mxu1 %vm947_vm0, %v5601_v53  ;;  %v5607_v35 = vld [vmem:[%s8321_s0 + $0xb8] sm:$0xff]   ;;  %v5633_v53 = vld [vmem:[%s8321_s0 + $0x2c8] sm:$0xff]  }
  0x28   :  { %5298 = vmatprep.mubr.msk.bf16.mxu0 %vm947_vm0, %v5582_v38  ;;  %5430 = vmatprep.mubr.msk.bf16.mxu1 %vm947_vm0, %v5604_v54  ;;  %v5628_v38 = vld [vmem:[%s8321_s0 + $0x2b0] sm:$0xff]  }
  0x29   :  { %v5636_v54 = vld [vmem:[%s8321_s0 + $0x2d0] sm:$0xff]  }
  0x2a   :  { %3012 = vperm.xlu1 %5570, %v2670_v37   ;;  %3007 = vperm.xlu0 %5569, %v2669_v39   ;;  %v5625_v37 = vld [vmem:[%s8321_s0 + $0x2a8] sm:$0xff]  }
  0x2b   :  { %v2702_v39 = vld [vmem:[%s8319_s3 + $0x1a8] sm:$0xff] }
  0x2e   :  { %3022 = vperm.xlu1 %5570, %v2672_v41   ;;  %3017 = vperm.xlu0 %5569, %v2671_v42   ;;  %v2704_v41 = vld [vmem:[%s8319_s3 + $0x1b8] sm:$0xff]  ;;  %v2703_v42 = vld [vmem:[%s8319_s3 + $0x1b0] sm:$0xff] }
  0x2f   :  { %5299 = vmatmul.mubr.msk.bf16.gmra.mrb[16].mxu0 %vm947_vm0, %v5583_v43  ;;  %5431 = vmatmul.mubr.msk.bf16.gmra.mrb[16].mxu1 %vm947_vm0, %v5605_v61  ;;  %v5611_v43 = vld [vmem:[%s8321_s0 + $0xc8] sm:$0xff]   ;;  %v5637_v61 = vld [vmem:[%s8321_s0 + $0x2d8] sm:$0xff]  }
  0x30   :  { %5302 = vmatprep.mubr.msk.bf16.mxu0 %vm947_vm0, %v5584_v44  ;;  %5434 = vmatprep.mubr.msk.bf16.mxu1 %vm947_vm0, %v5608_v62  ;;  %v5614_v44 = vld [vmem:[%s8321_s0 + $0xd0] sm:$0xff]   ;;  %v5640_v62 = vld [vmem:[%s8321_s0 + $0x2e0] sm:$0xff]  }
  0x32   :  { %3032 = vperm.xlu1 %5570, %v2674_v47   ;;  %3027 = vperm.xlu0 %5569, %v2673_v48   ;;  %v2706_v47 = vld [vmem:[%s8319_s3 + $0x1c8] sm:$0xff]  ;;  %v2705_v48 = vld [vmem:[%s8319_s3 + $0x1c0] sm:$0xff] }
  0x36   :  { %3042 = vperm.xlu1 %5570, %v2676_v49   ;;  %3037 = vperm.xlu0 %5569, %v2675_v50   ;;  %v2708_v49 = vld [vmem:[%s8319_s3 + $0x1d8] sm:$0xff]  ;;  %v2707_v50 = vld [vmem:[%s8319_s3 + $0x1d0] sm:$0xff] }
  0x37   :  { %5303 = vmatmul.mubr.msk.bf16.gmra.mrb[20].mxu0 %vm947_vm0, %v5585_v51  ;;  %5435 = vmatmul.mubr.msk.bf16.gmra.mrb[20].mxu1 %vm947_vm0, %v5609_v5  ;;  %v5615_v51 = vld [vmem:[%s8321_s0 + $0xd8] sm:$0xff]  }
  0x38   :  { %5306 = vmatprep.mubr.msk.bf16.mxu0 %vm947_vm0, %v5586_v52  ;;  %5438 = vmatprep.mubr.msk.bf16.mxu1 %vm947_vm0, %v5612_v6  ;;  %v5618_v52 = vld [vmem:[%s8321_s0 + $0xe0] sm:$0xff]   ;;  %v5623_v5 = vld [vmem:[%s8321_s0 + $0xf8] sm:$0xff]  }
  0x39   :  { %v5626_v6 = vld [vmem:[%s8321_s0 + $0x100] sm:$0xff]  }
  0x3a   :  { %3052 = vperm.xlu1 %5570, %v2678_v55   ;;  %3047 = vperm.xlu0 %5569, %v2677_v56   ;;  %v2710_v55 = vld [vmem:[%s8319_s3 + $0x1e8] sm:$0xff]  ;;  %v2709_v56 = vld [vmem:[%s8319_s3 + $0x1e0] sm:$0xff] }
  0x3e   :  { %3062 = vperm.xlu1 %5570, %v2680_v57   ;;  %3057 = vperm.xlu0 %5569, %v2679_v58   ;;  %v2712_v57 = vld [vmem:[%s8319_s3 + $0x1f8] sm:$0xff]  ;;  %v2711_v58 = vld [vmem:[%s8319_s3 + $0x1f0] sm:$0xff] }
  0x3f   :  { %5307 = vmatmul.mubr.msk.bf16.gmra.mrb[24].mxu0 %vm947_vm0, %v5587_v59  ;;  %5439 = vmatmul.mubr.msk.bf16.gmra.mrb[24].mxu1 %vm947_vm0, %v5613_v13  ;;  %v5619_v59 = vld [vmem:[%s8321_s0 + $0xe8] sm:$0xff]  }
  0x40   :  { %5310 = vmatprep.mubr.msk.bf16.mxu0 %vm947_vm0, %v5590_v60  ;;  %5442 = vmatprep.mubr.msk.bf16.mxu1 %vm947_vm0, %v5616_v14  ;;  %v5622_v60 = vld [vmem:[%s8321_s0 + $0xf0] sm:$0xff]  }
  0x42   :  { %3072 = vperm.xlu1 %5570, %v2682_v63   ;;  %3067 = vperm.xlu0 %5569, %v2681_v0   ;;  %v2714_v63 = vld [vmem:[%s8319_s3 + $0x208] sm:$0xff]  ;;  %v2713_v0 = vld [vmem:[%s8319_s3 + $0x200] sm:$0xff] }
  0x46   :  { %3082 = vperm.xlu1 %5570, %v2684_v1   ;;  %3077 = vperm.xlu0 %5569, %v2683_v2  }
  0x47   :  { %5311 = vmatmul.mubr.msk.bf16.gmra.mrb[28].mxu0 %vm947_vm0, %v5591_v3  ;;  %5443 = vmatmul.mubr.msk.bf16.gmra.mrb[28].mxu1 %vm947_vm0, %v5617_v21  ;;  %v2716_v3 = vld [vmem:[%s8319_s3 + $0x218] sm:$0xff] }
  0x48   :  { %5314 = vmatprep.mubr.msk.bf16.mxu0 %vm947_vm0, %v5594_v4  ;;  %5446 = vmatprep.mubr.msk.bf16.mxu1 %vm947_vm0, %v5620_v22  ;;  %v2715_v4 = vld [vmem:[%s8319_s3 + $0x210] sm:$0xff]  ;;  %v5648_v22 = vld [vmem:[%s8321_s0 + $0x300] sm:$0xff]  }
  0x4a   :  { %3092 = vperm.xlu1 %5570, %v2686_v7   ;;  %3087 = vperm.xlu0 %5569, %v2685_v8   ;;  %v5641_v7 = vld [vmem:[%s8321_s0 + $0x2e8] sm:$0xff]  }
  0x4e   :  { %3102 = vperm.xlu1 %5570, %v2688_v9   ;;  %3097 = vperm.xlu0 %5569, %v2687_v10   ;;  %v5644_v10 = vld [vmem:[%s8321_s0 + $0x2f0] sm:$0xff]  }
  0x4f   :  { %5315 = vmatmul.mubr.msk.bf16.gmra.mrb[32].mxu0 %vm947_vm0, %v5595_v11  ;;  %5447 = vmatmul.mubr.msk.bf16.gmra.mrb[32].mxu1 %vm947_vm0, %v5621_v29  ;;  %v2718_v11 = vld [vmem:[%s8319_s3 + $0x228] sm:$0xff]  ;;  %v5631_v29 = vld [vmem:[%s8321_s0 + $0x118] sm:$0xff]  }
  0x50   :  { %5318 = vmatprep.mubr.msk.bf16.mxu0 %vm947_vm0, %v5598_v12  ;;  %5450 = vmatprep.mubr.msk.bf16.mxu1 %vm947_vm0, %v5624_v30  ;;  %v2717_v12 = vld [vmem:[%s8319_s3 + $0x220] sm:$0xff] }
  0x51   :  { %v5634_v30 = vld [vmem:[%s8321_s0 + $0x120] sm:$0xff]  }
  0x52   :  { %3112 = vperm.xlu1 %5570, %v2690_v15   ;;  %3107 = vperm.xlu0 %5569, %v2689_v16   ;;  %v2720_v15 = vld [vmem:[%s8319_s3 + $0x238] sm:$0xff]  ;;  %v2719_v16 = vld [vmem:[%s8319_s3 + $0x230] sm:$0xff] }
  0x56   :  { %3122 = vperm.xlu1 %5570, %v2692_v17   ;;  %3117 = vperm.xlu0 %5569, %v2691_v18   ;;  %v5627_v17 = vld [vmem:[%s8321_s0 + $0x108] sm:$0xff]   ;;  %v5630_v18 = vld [vmem:[%s8321_s0 + $0x110] sm:$0xff]  }
  0x57   :  { %5319 = vmatmul.mubr.msk.bf16.gmra.mrb[36].mxu0 %vm947_vm0, %v5599_v19  ;;  %5451 = vmatmul.mubr.msk.bf16.gmra.mrb[36].mxu1 %vm947_vm0, %v5625_v37  ;;  %v5645_v19 = vld [vmem:[%s8321_s0 + $0x2f8] sm:$0xff]  }
  0x58   :  { %5322 = vmatprep.mubr.msk.bf16.mxu0 %vm947_vm0, %v5602_v20  ;;  %5454 = vmatprep.mubr.msk.bf16.mxu1 %vm947_vm0, %v5628_v38 }
  0x5a   :  { %3132 = vperm.xlu1 %5570, %v2694_v23   ;;  %3127 = vperm.xlu0 %5569, %v2693_v24   ;;  %v2722_v23 = vld [vmem:[%s8319_s3 + $0x248] sm:$0xff]  ;;  %v2721_v24 = vld [vmem:[%s8319_s3 + $0x240] sm:$0xff] }
  0x5e   :  { %3142 = vperm.xlu1 %5570, %v2696_v25   ;;  %3137 = vperm.xlu0 %5569, %v2695_v26  }
  0x5f   :  { %5323 = vmatmul.mubr.msk.bf16.gmra.mrb[40].mxu0 %vm947_vm0, %v5603_v27  ;;  %5455 = vmatmul.mubr.msk.bf16.gmra.mrb[40].mxu1 %vm947_vm0, %v5629_v45  ;;  %v2724_v27 = vld [vmem:[%s8319_s3 + $0x258] sm:$0xff]  ;;  %v5638_v45 = vld [vmem:[%s8321_s0 + $0x130] sm:$0xff]  }
  0x60   :  { %5326 = vmatprep.mubr.msk.bf16.mxu0 %vm947_vm0, %v5606_v28  ;;  %5458 = vmatprep.mubr.msk.bf16.mxu1 %vm947_vm0, %v5632_v46  ;;  %v2723_v28 = vld [vmem:[%s8319_s3 + $0x250] sm:$0xff]  ;;  %v5656_v46 = vld [vmem:[%s8321_s0 + $0x320] sm:$0xff]  }
  0x62   :  { %3152 = vperm.xlu1 %5570, %v2698_v31   ;;  %3147 = vperm.xlu0 %5569, %v2697_v32   ;;  %v5649_v31 = vld [vmem:[%s8321_s0 + $0x308] sm:$0xff]  }
  0x66   :  { %3162 = vperm.xlu1 %5570, %v2700_v33   ;;  %3157 = vperm.xlu0 %5569, %v2699_v34   ;;  %v5652_v34 = vld [vmem:[%s8321_s0 + $0x310] sm:$0xff]  }
  0x67   :  { %5327 = vmatmul.mubr.msk.bf16.gmra.mrb[44].mxu0 %vm947_vm0, %v5607_v35  ;;  %5459 = vmatmul.mubr.msk.bf16.gmra.mrb[44].mxu1 %vm947_vm0, %v5633_v53  ;;  %v2726_v35 = vld [vmem:[%s8319_s3 + $0x268] sm:$0xff]  ;;  %v5639_v53 = vld [vmem:[%s8321_s0 + $0x138] sm:$0xff]  }
  0x68   :  { %5330 = vmatprep.mubr.msk.bf16.mxu0 %vm947_vm0, %v5610_v36  ;;  %5462 = vmatprep.mubr.msk.bf16.mxu1 %vm947_vm0, %v5636_v54  ;;  %v2725_v36 = vld [vmem:[%s8319_s3 + $0x260] sm:$0xff]  ;;  %v5657_v54 = vld [vmem:[%s8321_s0 + $0x328] sm:$0xff]  }
  0x6a   :  { %3172 = vperm.xlu1 %5570, %v2702_v39   ;;  %3167 = vperm.xlu0 %5569, %v2701_v40   ;;  %v2728_v39 = vld [vmem:[%s8319_s3 + $0x278] sm:$0xff]  ;;  %v2727_v40 = vld [vmem:[%s8319_s3 + $0x270] sm:$0xff] }
  0x6e   :  { %3182 = vperm.xlu1 %5570, %v2704_v41   ;;  %3177 = vperm.xlu0 %5569, %v2703_v42   ;;  %v5635_v41 = vld [vmem:[%s8321_s0 + $0x128] sm:$0xff]   ;;  %v5653_v42 = vld [vmem:[%s8321_s0 + $0x318] sm:$0xff]  }
  0x6f   :  { %5331 = vmatmul.mubr.msk.bf16.gmra.mrb[48].mxu0 %vm947_vm0, %v5611_v43  ;;  %5463 = vmatmul.mubr.msk.bf16.gmra.mrb[48].mxu1 %vm947_vm0, %v5637_v61 }
  0x70   :  { %5334 = vmatprep.mubr.msk.bf16.mxu0 %vm947_vm0, %v5614_v44  ;;  %5466 = vmatprep.mubr.msk.bf16.mxu1 %vm947_vm0, %v5640_v62 }
  0x72   :  { %3192 = vperm.xlu1 %5570, %v2706_v47   ;;  %3187 = vperm.xlu0 %5569, %v2705_v48   ;;  %v2730_v47 = vld [vmem:[%s8319_s3 + $0x288] sm:$0xff]  ;;  %v2729_v48 = vld [vmem:[%s8319_s3 + $0x280] sm:$0xff] }
  0x76   :  { %3202 = vperm.xlu1 %5570, %v2708_v49   ;;  %3197 = vperm.xlu0 %5569, %v2707_v50  }
  0x77   :  { %5335 = vmatmul.mubr.msk.bf16.gmra.mrb[52].mxu0 %vm947_vm0, %v5615_v51  ;;  %5467 = vmatmul.mubr.msk.bf16.gmra.mrb[52].mxu1 %vm947_vm0, %v5641_v7  ;;  %v2732_v51 = vld [vmem:[%s8319_s3 + $0x298] sm:$0xff] }
  0x78   :  { %5338 = vmatprep.mubr.msk.bf16.mxu0 %vm947_vm0, %v5618_v52  ;;  %5470 = vmatprep.mubr.msk.bf16.mxu1 %vm947_vm0, %v5644_v10  ;;  %v2731_v52 = vld [vmem:[%s8319_s3 + $0x290] sm:$0xff] }
  0x7a   :  { %3212 = vperm.xlu1 %5570, %v2710_v55   ;;  %3207 = vperm.xlu0 %5569, %v2709_v56  }
  0x7e   :  { %3222 = vperm.xlu1 %5570, %v2712_v57   ;;  %3217 = vperm.xlu0 %5569, %v2711_v58   ;;  %v5642_v57 = vld [vmem:[%s8321_s0 + $0x140] sm:$0xff]   ;;  %v5660_v58 = vld [vmem:[%s8321_s0 + $0x330] sm:$0xff]  }
  0x7f   :  { %5339 = vmatmul.mubr.msk.bf16.gmra.mrb[56].mxu0 %vm947_vm0, %v5619_v59  ;;  %5471 = vmatmul.mubr.msk.bf16.gmra.mrb[56].mxu1 %vm947_vm0, %v5645_v19  ;;  %v2734_v59 = vld [vmem:[%s8319_s3 + $0x2a8] sm:$0xff]  ;;  %v5647_v19 = vld [vmem:[%s8321_s0 + $0x158] sm:$0xff]  }
  0x80   :  { %5342 = vmatprep.mubr.msk.bf16.mxu0 %vm947_vm0, %v5622_v60  ;;  %5474 = vmatprep.mubr.msk.bf16.mxu1 %vm947_vm0, %v5648_v22  ;;  %v2733_v60 = vld [vmem:[%s8319_s3 + $0x2a0] sm:$0xff]  ;;  %v5665_v22 = vld [vmem:[%s8321_s0 + $0x348] sm:$0xff]  }
  0x81   :  { %v6191_v1 = vpop.permute.xlu1 %2917  ;;  %v6193_v2 = vpop.permute.xlu0 %2907 }
  0x82   :  { %3232 = vperm.xlu1 %5570, %v2714_v63   ;;  %3227 = vperm.xlu0 %5569, %v2713_v0   ;;  %v2736_v63 = vld [vmem:[%s8319_s3 + $0x2b8] sm:$0xff]  ;;  %v2735_v0 = vld [vmem:[%s8319_s3 + $0x2b0] sm:$0xff] }
  0x85   :  { %v6212_v8 = vpop.permute.xlu1 %2922  ;;  %v6214_v9 = vpop.permute.xlu0 %2912 }
  0x86   :  { %3242 = vperm.xlu1 %5570, %v2716_v3   ;;  %3237 = vperm.xlu0 %5569, %v2715_v4   ;;  %v5643_v3 = vld [vmem:[%s8321_s0 + $0x148] sm:$0xff]   ;;  %v5646_v4 = vld [vmem:[%s8321_s0 + $0x150] sm:$0xff]  }
  0x87   :  { %5343 = vmatmul.mubr.msk.bf16.gmra.mrb[60].mxu0 %vm947_vm0, %v5623_v5  ;;  %5475 = vmatmul.mubr.msk.bf16.gmra.mrb[60].mxu1 %vm947_vm0, %v5649_v31  ;;  %v5661_v5 = vld [vmem:[%s8321_s0 + $0x338] sm:$0xff]  }
  0x88   :  { %5346 = vmatprep.mubr.msk.bf16.mxu0 %vm947_vm0, %v5626_v6  ;;  %5478 = vmatprep.mubr.msk.bf16.mxu1 %vm947_vm0, %v5652_v34  ;;  %v5664_v6 = vld [vmem:[%s8321_s0 + $0x340] sm:$0xff]  }
  0x89   :  { %v6227_v13 = vpop.permute.xlu1 %2932  ;;  %v6229_v14 = vpop.permute.xlu0 %2927 }
  0x8a   :  { %3252 = vperm.xlu1 %5570, %v2718_v11   ;;  %3247 = vperm.xlu0 %5569, %v2717_v12   ;;  %v2738_v11 = vld [vmem:[%s8319_s3 + $0x2c8] sm:$0xff]  ;;  %v2737_v12 = vld [vmem:[%s8319_s3 + $0x2c0] sm:$0xff] }
  0x8d   :  { %v6248_v20 = vpop.permute.xlu1 %2942  ;;  %v6250_v21 = vpop.permute.xlu0 %2937 }
  0x8e   :  { %3262 = vperm.xlu1 %5570, %v2720_v15   ;;  %3257 = vperm.xlu0 %5569, %v2719_v16  }
  0x8f   :  { %5347 = vmatmul.mubr.msk.bf16.gmra.mrb[64].mxu0 %vm947_vm0, %v5627_v17  ;;  %5479 = vmatmul.mubr.msk.bf16.gmra.mrb[64].mxu1 %vm947_vm0, %v5653_v42  ;;  %v2740_v17 = vld [vmem:[%s8319_s3 + $0x2d8] sm:$0xff] }
  0x90   :  { %5350 = vmatprep.mubr.msk.bf16.mxu0 %vm947_vm0, %v5630_v18  ;;  %5482 = vmatprep.mubr.msk.bf16.mxu1 %vm947_vm0, %v5656_v46  ;;  %v2739_v18 = vld [vmem:[%s8319_s3 + $0x2d0] sm:$0xff]  ;;  %v5672_v46 = vld [vmem:[%s8321_s0 + $0x360] sm:$0xff]  }
  0x91   :  { %v6263_v25 = vpop.permute.xlu1 %2952  ;;  %v6265_v26 = vpop.permute.xlu0 %2947 }
  0x92   :  { %3272 = vperm.xlu1 %5570, %v2722_v23   ;;  %3267 = vperm.xlu0 %5569, %v2721_v24  }
  0x95   :  { %v6284_v32 = vpop.permute.xlu1 %2962  ;;  %v6286_v33 = vpop.permute.xlu0 %2957 }
  0x96   :  { %3282 = vperm.xlu1 %5570, %v2724_v27   ;;  %3277 = vperm.xlu0 %5569, %v2723_v28   ;;  %v5650_v27 = vld [vmem:[%s8321_s0 + $0x160] sm:$0xff]   ;;  %v5668_v28 = vld [vmem:[%s8321_s0 + $0x350] sm:$0xff]  }
  0x97   :  { %5351 = vmatmul.mubr.msk.bf16.gmra.mrb[68].mxu0 %vm947_vm0, %v5631_v29  ;;  %5483 = vmatmul.mubr.msk.bf16.gmra.mrb[68].mxu1 %vm947_vm0, %v5657_v54  ;;  %v2742_v29 = vld [vmem:[%s8319_s3 + $0x2e8] sm:$0xff]  ;;  %v2747_v54 = vld [vmem:[%s8319_s3 + $0x310] sm:$0xff] }
  0x98   :  { %5354 = vmatprep.mubr.msk.bf16.mxu0 %vm947_vm0, %v5634_v30  ;;  %5486 = vmatprep.mubr.msk.bf16.mxu1 %vm947_vm0, %v5660_v58  ;;  %v2741_v30 = vld [vmem:[%s8319_s3 + $0x2e0] sm:$0xff]  ;;  %v5673_v58 = vld [vmem:[%s8321_s0 + $0x368] sm:$0xff]  }
  0x99   :  { %v6299_v37 = vpop.permute.xlu1 %2972  ;;  %v6301_v38 = vpop.permute.xlu0 %2967 }
  0x9a   :  { %3292 = vperm.xlu1 %5570, %v2726_v35   ;;  %3287 = vperm.xlu0 %5569, %v2725_v36   ;;  %v2744_v35 = vld [vmem:[%s8319_s3 + $0x2f8] sm:$0xff]  ;;  %v2743_v36 = vld [vmem:[%s8319_s3 + $0x2f0] sm:$0xff] }
  0x9d   :  { %v6317_v43 = vpop.permute.xlu1 %2982  ;;  %v6319_v44 = vpop.permute.xlu0 %2977 }
  0x9e   :  { %3302 = vperm.xlu1 %5570, %v2728_v39   ;;  %3297 = vperm.xlu0 %5569, %v2727_v40   ;;  %v5651_v39 = vld [vmem:[%s8321_s0 + $0x168] sm:$0xff]   ;;  %v5669_v40 = vld [vmem:[%s8321_s0 + $0x358] sm:$0xff]  }
  0x9f   :  { %5355 = vmatmul.mubr.msk.bf16.gmra.mrb[72].mxu0 %vm947_vm0, %v5635_v41  ;;  %5487 = vmatmul.mubr.msk.bf16.gmra.mrb[72].mxu1 %vm947_vm0, %v5661_v5 }
  0xa0   :  { %5358 = vmatprep.mubr.msk.bf16.mxu0 %vm947_vm0, %v5638_v45  ;;  %5490 = vmatprep.mubr.msk.bf16.mxu1 %vm947_vm0, %v5664_v6  ;;  %v5654_v45 = vld [vmem:[%s8321_s0 + $0x170] sm:$0xff]  }
  0xa1   :  { %v6335_v49 = vpop.permute.xlu1 %2992  ;;  %v6337_v50 = vpop.permute.xlu0 %2987 }
  0xa2   :  { %3312 = vperm.xlu1 %5570, %v2730_v47   ;;  %3307 = vperm.xlu0 %5569, %v2729_v48   ;;  %v2746_v47 = vld [vmem:[%s8319_s3 + $0x308] sm:$0xff]  ;;  %v2745_v48 = vld [vmem:[%s8319_s3 + $0x300] sm:$0xff] }
  0xa5   :  { %v6353_v55 = vpop.permute.xlu1 %3002  ;;  %v6355_v56 = vpop.permute.xlu0 %2997 }
  0xa6   :  { %3322 = vperm.xlu1 %5570, %v2732_v51   ;;  %3317 = vperm.xlu0 %5569, %v2731_v52  }
  0xa7   :  { %5359 = vmatmul.mubr.msk.bf16.gmra.mrb[76].mxu0 %vm947_vm0, %v5639_v53  ;;  %5491 = vmatmul.mubr.msk.bf16.gmra.mrb[76].mxu1 %vm947_vm0, %v5665_v22  ;;  %v2748_v53 = vld [vmem:[%s8319_s3 + $0x318] sm:$0xff] }
  0xa8   :  { %5362 = vmatprep.mubr.msk.bf16.mxu0 %vm947_vm0, %v5642_v57  ;;  %5494 = vmatprep.mubr.msk.bf16.mxu1 %vm947_vm0, %v5668_v28  ;;  %v5655_v57 = vld [vmem:[%s8321_s0 + $0x178] sm:$0xff]   ;;  %v5680_v28 = vld [vmem:[%s8321_s0 + $0x380] sm:$0xff]  }
  0xa9   :  { %v6371_v61 = vpop.permute.xlu1 %3012  ;;  %v6373_v62 = vpop.permute.xlu0 %3007 }
  0xaa   :  { %3332 = vperm.xlu1 %5570, %v2734_v59   ;;  %3327 = vperm.xlu0 %5569, %v2733_v60  }
  0xad   :  { %v6395_v7 = vpop.permute.xlu1 %3022  ;;  %v6397_v10 = vpop.permute.xlu0 %3017 }
  0xae   :  { %3342 = vperm.xlu1 %5570, %v2736_v63   ;;  %3337 = vperm.xlu0 %5569, %v2735_v0   ;;  %v5658_v63 = vld [vmem:[%s8321_s0 + $0x180] sm:$0xff]   ;;  %v5676_v0 = vld [vmem:[%s8321_s0 + $0x370] sm:$0xff]  }
  0xaf   :  { %5363 = vmatmul.mubr.msk.bf16.gmra.mrb[80].mxu0 %vm947_vm0, %v5643_v3  ;;  %5495 = vmatmul.mubr.msk.bf16.gmra.mrb[80].mxu1 %vm947_vm0, %v5669_v40  ;;  %v2750_v3 = vld [vmem:[%s8319_s3 + $0x328] sm:$0xff]  ;;  %v2755_v40 = vld [vmem:[%s8319_s3 + $0x350] sm:$0xff] }
  0xb0   :  { %5366 = vmatprep.mubr.msk.bf16.mxu0 %vm947_vm0, %v5646_v4  ;;  %5498 = vmatprep.mubr.msk.bf16.mxu1 %vm947_vm0, %v5672_v46  ;;  %v2749_v4 = vld [vmem:[%s8319_s3 + $0x320] sm:$0xff]  ;;  %v5681_v46 = vld [vmem:[%s8321_s0 + $0x388] sm:$0xff]  }
  0xb1   :  { %v6407_v15 = vpop.permute.xlu1 %3032  ;;  %v6409_v16 = vpop.permute.xlu0 %3027 }
  0xb2   :  { %3352 = vperm.xlu1 %5570, %v2738_v11   ;;  %3347 = vperm.xlu0 %5569, %v2737_v12   ;;  %v2752_v11 = vld [vmem:[%s8319_s3 + $0x338] sm:$0xff]  ;;  %v2751_v12 = vld [vmem:[%s8319_s3 + $0x330] sm:$0xff] }
  0xb5   :  { %v6425_v23 = vpop.permute.xlu1 %3042  ;;  %v6427_v24 = vpop.permute.xlu0 %3037 }
  0xb6   :  { %3362 = vperm.xlu1 %5570, %v2740_v17   ;;  %3357 = vperm.xlu0 %5569, %v2739_v18   ;;  %v5659_v17 = vld [vmem:[%s8321_s0 + $0x188] sm:$0xff]   ;;  %v5677_v18 = vld [vmem:[%s8321_s0 + $0x378] sm:$0xff]  }
  0xb7   :  { %5367 = vmatmul.mubr.msk.bf16.gmra.mrb[84].mxu0 %vm947_vm0, %v5647_v19  ;;  %5499 = vmatmul.mubr.msk.bf16.gmra.mrb[84].mxu1 %vm947_vm0, %v5673_v58  ;;  %v2757_v58 = vld [vmem:[%s8319_s3 + $0x360] sm:$0xff] }
  0xb8   :  { %5370 = vmatprep.mubr.msk.bf16.mxu0 %vm947_vm0, %v5650_v27  ;;  %5502 = vmatprep.mubr.msk.bf16.mxu1 %vm947_vm0, %v5676_v0  ;;  %v5662_v27 = vld [vmem:[%s8321_s0 + $0x190] sm:$0xff]  }
  0xb9   :  { %v6443_v31 = vpop.permute.xlu1 %3052  ;;  %v6445_v34 = vpop.permute.xlu0 %3047 }
  0xba   :  { %3372 = vperm.xlu1 %5570, %v2742_v29   ;;  %3367 = vperm.xlu0 %5569, %v2741_v30   ;;  %v2754_v29 = vld [vmem:[%s8319_s3 + $0x348] sm:$0xff]  ;;  %v2753_v30 = vld [vmem:[%s8319_s3 + $0x340] sm:$0xff] }
  0xbd   :  { %v6461_v41 = vpop.permute.xlu1 %3062  ;;  %v6463_v42 = vpop.permute.xlu0 %3057 }
  0xbe   :  { %3382 = vperm.xlu1 %5570, %v2744_v35   ;;  %3377 = vperm.xlu0 %5569, %v2743_v36  }
  0xbf   :  { %5371 = vmatmul.mubr.msk.bf16.gmra.mrb[88].mxu0 %vm947_vm0, %v5651_v39  ;;  %5503 = vmatmul.mubr.msk.bf16.gmra.mrb[88].mxu1 %vm947_vm0, %v5677_v18  ;;  %v2756_v39 = vld [vmem:[%s8319_s3 + $0x358] sm:$0xff] }
  0xc0   :  { %5374 = vmatprep.mubr.msk.bf16.mxu0 %vm947_vm0, %v5654_v45  ;;  %5506 = vmatprep.mubr.msk.bf16.mxu1 %vm947_vm0, %v5680_v28  ;;  %v5663_v45 = vld [vmem:[%s8321_s0 + $0x198] sm:$0xff]   ;;  %v5690_v28 = vld [vmem:[%s8321_s0 + $0x3a0] sm:$0xff]  }
  0xc1   :  { %v6479_v51 = vpop.permute.xlu1 %3072  ;;  %v6481_v52 = vpop.permute.xlu0 %3067 }
  0xc2   :  { %3392 = vperm.xlu1 %5570, %v2746_v47   ;;  %3387 = vperm.xlu0 %5569, %v2745_v48  }
  0xc5   :  { %v6497_v59 = vpop.permute.xlu1 %3082  ;;  %v6499_v60 = vpop.permute.xlu0 %3077 }
  0xc6   :  { %3402 = vperm.xlu1 %5570, %v2748_v53   ;;  %3397 = vperm.xlu0 %5569, %v2747_v54   ;;  %v5666_v53 = vld [vmem:[%s8321_s0 + $0x1a0] sm:$0xff]   ;;  %v5686_v54 = vld [vmem:[%s8321_s0 + $0x390] sm:$0xff]  }
  0xc7   :  { %5375 = vmatmul.mubr.msk.bf16.gmra.mrb[92].mxu0 %vm947_vm0, %v5655_v57  ;;  %v2758_v57 = vld [vmem:[%s8319_s3 + $0x368] sm:$0xff]  ;;  %5507 = vmatmul.mubr.msk.bf16.gmra.mrb[92].mxu1 %vm947_vm0, %v5681_v46 }
  0xc8   :  { %5378 = vmatprep.mubr.msk.bf16.mxu0 %vm947_vm0, %v5658_v63  ;;  %5510 = vmatprep.mubr.msk.bf16.mxu1 %vm947_vm0, %v5686_v54  ;;  %v2763_v54 = vld [vmem:[%s8319_s3 + $0x390] sm:$0xff] }
  0xc9   :  { %v6515_v5 = vpop.permute.xlu1 %3092  ;;  %v6517_v6 = vpop.permute.xlu0 %3087 }
  0xca   :  { %3412 = vperm.xlu1 %5570, %v2750_v3   ;;  %3407 = vperm.xlu0 %5569, %v2749_v4   ;;  %v2760_v3 = vld [vmem:[%s8319_s3 + $0x378] sm:$0xff]  ;;  %v2759_v4 = vld [vmem:[%s8319_s3 + $0x370] sm:$0xff] }
  0xcd   :  { %v6533_v19 = vpop.permute.xlu1 %3102  ;;  %v6535_v22 = vpop.permute.xlu0 %3097 }
  0xce   :  { %3422 = vperm.xlu1 %5570, %v2752_v11   ;;  %3417 = vperm.xlu0 %5569, %v2751_v12   ;;  %v5667_v11 = vld [vmem:[%s8321_s0 + $0x1a8] sm:$0xff]   ;;  %v5687_v12 = vld [vmem:[%s8321_s0 + $0x398] sm:$0xff]  }
  0xcf   :  { %5379 = vmatmul.mubr.msk.bf16.gmra.mrb[96].mxu0 %vm947_vm0, %v5659_v17  ;;  %5511 = vmatmul.mubr.msk.bf16.gmra.mrb[96].mxu1 %vm947_vm0, %v5687_v12 }
  0xd0   :  { %5382 = vmatprep.mubr.msk.bf16.mxu0 %vm947_vm0, %v5662_v27  ;;  %v5670_v27 = vld [vmem:[%s8321_s0 + $0x1b0] sm:$0xff]   ;;  %5514 = vmatprep.mubr.msk.bf16.mxu1 %vm947_vm0, %v5690_v28 }
  0xd1   :  { %v6551_v35 = vpop.permute.xlu1 %3112  ;;  %v6553_v36 = vpop.permute.xlu0 %3107  ;;  %v5692_v28 = vld [vmem:[%s8321_s0 + $0x3b0] sm:$0xff]  }
  0xd2   :  { %3432 = vperm.xlu1 %5570, %v2754_v29   ;;  %3427 = vperm.xlu0 %5569, %v2753_v30   ;;  %v2762_v29 = vld [vmem:[%s8319_s3 + $0x388] sm:$0xff]  ;;  %v2761_v30 = vld [vmem:[%s8319_s3 + $0x380] sm:$0xff] }
  0xd5   :  { %v6569_v47 = vpop.permute.xlu1 %3122  ;;  %v6571_v48 = vpop.permute.xlu0 %3117 }
  0xd6   :  { %8331 = vst [vmem:[#allocation2_spill] sm:$0xff] %v6569_v47  ;;  %3442 = vperm.xlu1 %5570, %v2756_v39   ;;  %3437 = vperm.xlu0 %5569, %v2755_v40  }
  0xd7   :  { %5383 = vmatmul.mubr.msk.bf16.gmra.mrb[100].mxu0 %vm947_vm0, %v5663_v45  ;;  %v6632_v45 = vld [vmem:[%s8322_s2] ss:$0 sm:$0xff] }
  0xd8   :  { %5386 = vmatprep.mubr.msk.bf16.mxu0 %vm947_vm0, %v5666_v53  ;;  %v2764_v53 = vld [vmem:[%s8319_s3 + $0x398] sm:$0xff] }
  0xd9   :  { %v6587_v63 = vpop.permute.xlu1 %3132  ;;  %v6589_v0 = vpop.permute.xlu0 %3127 }
  0xda   :  { %8332 = vst [vmem:[#allocation3_spill] sm:$0xff] %v6587_v63  ;;  %8333 = vst [vmem:[#allocation4_spill] sm:$0xff] %v6589_v0  ;;  %3452 = vperm.xlu1 %5570, %v2758_v57   ;;  %3447 = vperm.xlu0 %5569, %v2757_v58   ;;  %v5671_v58 = vld [vmem:[%s8321_s0 + $0x1b8] sm:$0xff]   ;;  %v2770_v63 = vld [vmem:[%s8319_s3 + $0x3c8] sm:$0xff] }
  0xdb   :  { %v2769_v0 = vld [vmem:[%s8319_s3 + $0x3c0] sm:$0xff] }
  0xdd   :  { %v6605_v17 = vpop.permute.xlu1 %3142  ;;  %v6607_v18 = vpop.permute.xlu0 %3137 }
  0xde   :  { %8334 = vst [vmem:[#allocation5_spill] sm:$0xff] %v6605_v17  ;;  %8335 = vst [vmem:[#allocation6_spill] sm:$0xff] %v6607_v18  ;;  %3462 = vperm.xlu1 %5570, %v2760_v3   ;;  %3457 = vperm.xlu0 %5569, %v2759_v4   ;;  %v5691_v3 = vld [vmem:[%s8321_s0 + $0x3a8] sm:$0xff]  }
  0xdf   :  { %5387 = vmatmul.mubr.msk.bf16.gmra.mrb[104].mxu0 %vm947_vm0, %v5667_v11  ;;  %5515 = vmatmul.mubr.msk.bf16.gmra.mrb[100].mxu1 %vm947_vm0, %v5691_v3  ;;  %v2767_v3 = vld [vmem:[%s8319_s3 + $0x3b0] sm:$0xff] }
  0xe0   :  { %5390 = vmatprep.mubr.msk.bf16.mxu0 %vm947_vm0, %v5670_v27  ;;  %v5674_v27 = vld [vmem:[%s8321_s0 + $0x1c0] sm:$0xff]   ;;  %5518 = vmatprep.mubr.msk.bf16.mxu1 %vm947_vm0, %v5692_v28 }
  0xe1   :  { %v6623_v39 = vpop.permute.xlu1 %3152  ;;  %v6625_v40 = vpop.permute.xlu0 %3147 }
  0xe2   :  { %8336 = vst [vmem:[#allocation7_spill] sm:$0xff] %v6623_v39  ;;  %8337 = vst [vmem:[#allocation8_spill] sm:$0xff] %v6625_v40  ;;  %3472 = vperm.xlu1 %5570, %v2762_v29   ;;  %3467 = vperm.xlu0 %5569, %v2761_v30   ;;  %v5284_v46 = vpop.f32.mrb[0].mxu0 }
  0xe3   :  { %v1370_v57 = vpop.f32.mrb[1].mxu0  ;;  %v1379_v29 = vadd.f32 %v5284_v46, %v6632_v45 }
  0xe4   :  { %v1371_v4 = vadd.f32 %v6632_v45, %v1370_v57  ;;  %v5285_v30 = vpop.f32.mrb[2].mxu0 }
  0xe5   :  { %v6647_v11 = vpop.permute.xlu1 %3162  ;;  %v6649_v12 = vpop.permute.xlu0 %3157  ;;  %v1382_v39 = vadd.f32 %v5285_v30, %v6632_v45 }
  0xe6   :  { %8338 = vst [vmem:[#allocation9_spill] sm:$0xff] %v6647_v11  ;;  %8339 = vst [vmem:[#allocation10_spill] sm:$0xff] %v6649_v12  ;;  %3482 = vperm.xlu1 %5570, %v2764_v53   ;;  %3477 = vperm.xlu0 %5569, %v2763_v54   ;;  %v1373_v57 = vpop.f32.mrb[3].mxu0  ;;  %v2766_v11 = vld [vmem:[%s8319_s3 + $0x3a8] sm:$0xff]  ;;  %v2765_v12 = vld [vmem:[%s8319_s3 + $0x3a0] sm:$0xff]  ;;  %v2393_v40 = vmax.f32 %v1371_v4, 0.0 }
  0xe7   :  { %v1374_v17 = vadd.f32 %v6632_v45, %v1373_v57  ;;  %5391 = vmatmul.mubr.msk.bf16.gmra.mrb[108].mxu0 %vm947_vm0, %v5671_v58  ;;  %v2395_v54 = vmax.f32 %v1379_v29, 0.0  ;;  %v2396_v18 = vmax.f32 %v1382_v39, 0.0  ;;  %v2768_v58 = vld [vmem:[%s8319_s3 + $0x3b8] sm:$0xff] }
  0xe8   :  { %5394 = vmatprep.mubr.msk.bf16.mxu0 %vm947_vm0, %v5674_v27  ;;  %v4185_v57 = vmul.f32 %v6193_v2, %v2393_v40  ;;  %v5693_v39 = vld [vmem:[%s8321_s0 + $0x3b8] sm:$0xff]   ;;  %v5678_v2 = vld [vmem:[%s8321_s0 + $0x1d0] sm:$0xff]  }
  0xe9   :  { %v6668_v46 = vpop.permute.xlu1 %3172  ;;  %v6670_v53 = vpop.permute.xlu0 %3167  ;;  %v2394_v30 = vmax.f32 %v1374_v17, 0.0  ;;  %v5675_v17 = vld [vmem:[%s8321_s0 + $0x1c8] sm:$0xff]   ;;  %v4187_v40 = vmul.f32 %v6191_v1, %v2395_v54  ;;  %5519 = vmatmul.mubr.msk.bf16.gmra.mrb[104].mxu1 %vm947_vm0, %v5693_v39 }
  0xea   :  { %8340 = vst [vmem:[#allocation11_spill] sm:$0xff] %v6668_v46  ;;  %8341 = vst [vmem:[#allocation12_spill] sm:$0xff] %v6670_v53  ;;  %3492 = vperm.xlu1 %5570, %v2766_v11   ;;  %3487 = vperm.xlu0 %5569, %v2765_v12   ;;  %v5288_v4 = vpop.f32.mrb[4].mxu0 }
  0xeb   :  { %v4186_v27 = vmul.f32 %v6214_v9, %v2394_v30  ;;  %v1386_v46 = vpop.f32.mrb[5].mxu0  ;;  %v5694_v9 = vld [vmem:[%s8321_s0 + $0x3c0] sm:$0xff]   ;;  %v1395_v30 = vadd.f32 %v5288_v4, %v6632_v45 }
  0xec   :  { %v1387_v11 = vadd.f32 %v6632_v45, %v1386_v46  ;;  %v5289_v53 = vpop.f32.mrb[6].mxu0  ;;  %v4188_v46 = vmul.f32 %v6212_v8, %v2396_v18  ;;  %5522 = vmatprep.mubr.msk.bf16.mxu1 %vm947_vm0, %v5694_v9 }
  0xed   :  { %v6689_v12 = vpop.permute.xlu1 %3182  ;;  %v6691_v28 = vpop.permute.xlu0 %3177  ;;  %v4441_v29 = vadd.f32 %v4186_v27, %v4185_v57  ;;  %v1398_v1 = vadd.f32 %v5289_v53, %v6632_v45  ;;  %v2772_v27 = vld [vmem:[%s8319_s3 + $0x3d8] sm:$0xff] }
  0xee   :  { %8342 = vst [vmem:[#allocation13_spill] sm:$0xff] %v6689_v12  ;;  %8343 = vst [vmem:[#allocation14_spill] sm:$0xff] %v6691_v28  ;;  %3502 = vperm.xlu1 %5570, %v2768_v58   ;;  %3497 = vperm.xlu0 %5569, %v2767_v3   ;;  %v2397_v12 = vmax.f32 %v1387_v11, 0.0  ;;  %v1389_v28 = vpop.f32.mrb[7].mxu0  ;;  %v2399_v58 = vmax.f32 %v1395_v30, 0.0 }
  0xef   :  { %v4442_v47 = vadd.f32 %v4441_v29, %v4187_v40  ;;  %v1390_v54 = vadd.f32 %v6632_v45, %v1389_v28  ;;  %5395 = vmatmul.mubr.msk.bf16.gmra.mrb[112].mxu0 %vm947_vm0, %v5675_v17  ;;  %v6725_v17 = vpop.f32.mrb[0].mxu1  ;;  %v2400_v11 = vmax.f32 %v1398_v1, 0.0  ;;  %v5696_v29 = vld [vmem:[%s8321_s0 + $0x3d0] sm:$0xff]  }
  0xf0   :  { %v4189_v8 = vmul.f32 %v6229_v14, %v2397_v12  ;;  %5398 = vmatprep.mubr.msk.bf16.mxu0 %vm947_vm0, %v5678_v2  ;;  %v2771_v14 = vld [vmem:[%s8319_s3 + $0x3d0] sm:$0xff]  ;;  %8344 = vst [vmem:[#allocation15_spill] sm:$0xff] %v6725_v17  ;;  %v4191_v30 = vmul.f32 %v6250_v21, %v2399_v58  ;;  %v2773_v21 = vld [vmem:[%s8319_s3 + $0x3e0] sm:$0xff] }
  0xf1   :  { %v6713_v18 = vpop.permute.xlu1 %3192  ;;  %v6715_v4 = vpop.permute.xlu0 %3187  ;;  %v4443_v3 = vadd.f32 %v4442_v47, %v4188_v46  ;;  %v2398_v57 = vmax.f32 %v1390_v54, 0.0  ;;  %v5679_v47 = vld [vmem:[%s8321_s0 + $0x1d8] sm:$0xff]  }
  0xf2   :  { %3512 = vperm.xlu1 %5570, %v2770_v63   ;;  %3507 = vperm.xlu0 %5569, %v2769_v0   ;;  %v5292_v53 = vpop.f32.mrb[8].mxu0  ;;  %v5695_v63 = vld [vmem:[%s8321_s0 + $0x3c8] sm:$0xff]   ;;  %v6734_v0 = vpop.f32.mrb[1].mxu1 }
  0xf3   :  { %v4444_v39 = vadd.f32 %v4443_v3, %v4189_v8  ;;  %v4190_v12 = vmul.f32 %v6227_v13, %v2398_v57  ;;  %v1402_v28 = vpop.f32.mrb[9].mxu0  ;;  %8345 = vst [vmem:[#allocation16_spill] sm:$0xff] %v6734_v0  ;;  %v5682_v13 = vld [vmem:[%s8321_s0 + $0x1e0] sm:$0xff]   ;;  %v1411_v1 = vadd.f32 %v5292_v53, %v6632_v45  ;;  %v6749_v8 = vpop.f32.mrb[2].mxu1  ;;  %v2774_v0 = vld [vmem:[%s8319_s3 + $0x3e8] sm:$0xff]  ;;  %v4192_v53 = vmul.f32 %v6248_v20, %v2400_v11 }
  0xf4   :  { %v1403_v2 = vadd.f32 %v6632_v45, %v1402_v28  ;;  %v5293_v54 = vpop.f32.mrb[10].mxu0  ;;  %8346 = vst [vmem:[#allocation17_spill] sm:$0xff] %v6749_v8  ;;  %v6758_v58 = vpop.f32.mrb[3].mxu1  ;;  %5523 = vmatmul.mubr.msk.bf16.gmra.mrb[108].mxu1 %vm947_vm0, %v5695_v63  ;;  %v2778_v8 = vld [vmem:[%s8319_s3 + $0x408] sm:$0xff] }
  0xf5   :  { %v6737_v9 = vpop.permute.xlu1 %3202  ;;  %v6739_v40 = vpop.permute.xlu0 %3197  ;;  %v4445_v46 = vadd.f32 %v4444_v39, %v4190_v12  ;;  %v1414_v57 = vadd.f32 %v5293_v54, %v6632_v45  ;;  %8347 = vst [vmem:[#allocation18_spill] sm:$0xff] %v6758_v58  ;;  %5526 = vmatprep.mubr.msk.bf16.mxu1 %vm947_vm0, %v5696_v29  ;;  %v2403_v54 = vmax.f32 %v1411_v1, 0.0  ;;  %v5697_v1 = vld [vmem:[%s8321_s0 + $0x3d8] sm:$0xff]  }
  0xf6   :  { %3522 = vperm.xlu1 %5570, %v2772_v27   ;;  %3517 = vperm.xlu0 %5569, %v2771_v14   ;;  %v2401_v3 = vmax.f32 %v1403_v2, 0.0  ;;  %v1405_v28 = vpop.f32.mrb[11].mxu0  ;;  %v6777_v63 = vpop.f32.mrb[4].mxu1 }
  0xf7   :  { %v4446_v27 = vadd.f32 %v4445_v46, %v4191_v30  ;;  %v1406_v14 = vadd.f32 %v6632_v45, %v1405_v28  ;;  %5399 = vmatmul.mubr.msk.bf16.gmra.mrb[116].mxu0 %vm947_vm0, %v5679_v47  ;;  %v2404_v11 = vmax.f32 %v1414_v57, 0.0  ;;  %v2776_v47 = vld [vmem:[%s8319_s3 + $0x3f8] sm:$0xff]  ;;  %8348 = vst [vmem:[#allocation19_spill] sm:$0xff] %v6777_v63 }
  0xf8   :  { %v4193_v39 = vmul.f32 %v6265_v26, %v2401_v3  ;;  %5402 = vmatprep.mubr.msk.bf16.mxu0 %vm947_vm0, %v5682_v13  ;;  %v2775_v26 = vld [vmem:[%s8319_s3 + $0x3f0] sm:$0xff]  ;;  %v6786_v3 = vpop.f32.mrb[5].mxu1 }
  0xf9   :  { %v6765_v12 = vpop.permute.xlu1 %3212  ;;  %v6767_v2 = vpop.permute.xlu0 %3207  ;;  %v4447_v58 = vadd.f32 %v4446_v27, %v4192_v53  ;;  %v2402_v20 = vmax.f32 %v1406_v14, 0.0  ;;  %8349 = vst [vmem:[#allocation20_spill] sm:$0xff] %v6786_v3  ;;  %v4195_v53 = vmul.f32 %v6286_v33, %v2403_v54  ;;  %v2777_v33 = vld [vmem:[%s8319_s3 + $0x400] sm:$0xff] }
  0xfa   :  { %3532 = vperm.xlu1 %5570, %v2774_v0   ;;  %3527 = vperm.xlu0 %5569, %v2773_v21   ;;  %v5296_v30 = vpop.f32.mrb[12].mxu0  ;;  %v5683_v0 = vld [vmem:[%s8321_s0 + $0x1e8] sm:$0xff]  }
  0xfb   :  { %v4448_v13 = vadd.f32 %v4447_v58, %v4193_v39  ;;  %v4194_v29 = vmul.f32 %v6263_v25, %v2402_v20  ;;  %v1418_v46 = vpop.f32.mrb[13].mxu0  ;;  %v5684_v25 = vld [vmem:[%s8321_s0 + $0x1f0] sm:$0xff]   ;;  %v5698_v58 = vld [vmem:[%s8321_s0 + $0x3e0] sm:$0xff]   ;;  %v1427_v14 = vadd.f32 %v5296_v30, %v6632_v45  ;;  %v6801_v20 = vpop.f32.mrb[6].mxu1 }
  0xfc   :  { %v1419_v57 = vadd.f32 %v6632_v45, %v1418_v46  ;;  %v5297_v39 = vpop.f32.mrb[14].mxu0  ;;  %8350 = vst [vmem:[#allocation21_spill] sm:$0xff] %v6801_v20  ;;  %v4196_v46 = vmul.f32 %v6284_v32, %v2404_v11  ;;  %v6810_v54 = vpop.f32.mrb[7].mxu1  ;;  %5527 = vmatmul.mubr.msk.bf16.gmra.mrb[112].mxu1 %vm947_vm0, %v5697_v1 }
  0xfd   :  { %v6789_v28 = vpop.permute.xlu1 %3222  ;;  %v6791_v21 = vpop.permute.xlu0 %3217  ;;  %v4449_v27 = vadd.f32 %v4448_v13, %v4194_v29  ;;  %8351 = vst [vmem:[#allocation22_spill] sm:$0xff] %v6810_v54  ;;  %5530 = vmatprep.mubr.msk.bf16.mxu1 %vm947_vm0, %v5698_v58  ;;  %v2407_v29 = vmax.f32 %v1427_v14, 0.0  ;;  %v2781_v54 = vld [vmem:[%s8319_s3 + $0x420] sm:$0xff] }
  0xfe   :  { %3542 = vperm.xlu1 %5570, %v2776_v47   ;;  %3537 = vperm.xlu0 %5569, %v2775_v26   ;;  %v2405_v3 = vmax.f32 %v1419_v57, 0.0  ;;  %v1421_v63 = vpop.f32.mrb[15].mxu0  ;;  %v1430_v47 = vadd.f32 %v5297_v39, %v6632_v45  ;;  %v6829_v1 = vpop.f32.mrb[8].mxu1 }
  0xff   :  { %v4450_v30 = vadd.f32 %v4449_v27, %v4195_v53  ;;  %v1422_v26 = vadd.f32 %v6632_v45, %v1421_v63  ;;  %5403 = vmatmul.mubr.msk.bf16.gmra.mrb[120].mxu0 %vm947_vm0, %v5683_v0  ;;  %v2780_v0 = vld [vmem:[%s8319_s3 + $0x418] sm:$0xff]  ;;  %8352 = vst [vmem:[#allocation23_spill] sm:$0xff] %v6829_v1  ;;  %v6835_v14 = vpop.f32.mrb[9].mxu1  ;;  %v2782_v1 = vld [vmem:[%s8319_s3 + $0x428] sm:$0xff] }
 0x100   :  { %v4197_v32 = vmul.f32 %v6301_v38, %v2405_v3  ;;  %5406 = vmatprep.mubr.msk.bf16.mxu0 %vm947_vm0, %v5684_v25  ;;  %v2779_v38 = vld [vmem:[%s8319_s3 + $0x410] sm:$0xff]  ;;  %v2408_v25 = vmax.f32 %v1430_v47, 0.0  ;;  %8353 = vst [vmem:[#allocation24_spill] sm:$0xff] %v6835_v14  ;;  %v4199_v47 = vmul.f32 %v6319_v44, %v2407_v29 }
 0x101   :  { %v6817_v11 = vpop.permute.xlu1 %3232  ;;  %v6819_v13 = vpop.permute.xlu0 %3227  ;;  %v4451_v57 = vadd.f32 %v4450_v30, %v4196_v46  ;;  %v2406_v53 = vmax.f32 %v1422_v26, 0.0  ;;  %v5688_v30 = vld [vmem:[%s8321_s0 + $0x200] sm:$0xff]  }
 0x102   :  { %3552 = vperm.xlu1 %5570, %v2778_v8   ;;  %3547 = vperm.xlu0 %5569, %v2777_v33   ;;  %v5300_v63 = vpop.f32.mrb[16].mxu0  ;;  %v5685_v8 = vld [vmem:[%s8321_s0 + $0x1f8] sm:$0xff]   ;;  %v4200_v44 = vmul.f32 %v6317_v43, %v2408_v25 }
 0x103   :  { %v4452_v3 = vadd.f32 %v4451_v57, %v4197_v32  ;;  %v4198_v58 = vmul.f32 %v6299_v37, %v2406_v53  ;;  %v1434_v27 = vpop.f32.mrb[17].mxu0  ;;  %v5699_v37 = vld [vmem:[%s8321_s0 + $0x3e8] sm:$0xff]   ;;  %v1443_v32 = vadd.f32 %v5300_v63, %v6632_v45  ;;  %v6850_v53 = vpop.f32.mrb[10].mxu1 }
 0x104   :  { %v1435_v39 = vadd.f32 %v6632_v45, %v1434_v27  ;;  %v5301_v57 = vpop.f32.mrb[18].mxu0  ;;  %8354 = vst [vmem:[#allocation25_spill] sm:$0xff] %v6850_v53  ;;  %v6858_v20 = vpop.f32.mrb[11].mxu1  ;;  %5531 = vmatmul.mubr.msk.bf16.gmra.mrb[116].mxu1 %vm947_vm0, %v5699_v37 }
 0x105   :  { %v6838_v46 = vpop.permute.xlu1 %3242  ;;  %v6840_v33 = vpop.permute.xlu0 %3237  ;;  %v4453_v26 = vadd.f32 %v4452_v3, %v4198_v58  ;;  %8355 = vst [vmem:[#allocation26_spill] sm:$0xff] %v6858_v20  ;;  %v1446_v63 = vadd.f32 %v5301_v57, %v6632_v45 }
 0x106   :  { %3562 = vperm.xlu1 %5570, %v2780_v0   ;;  %3557 = vperm.xlu0 %5569, %v2779_v38   ;;  %v2409_v27 = vmax.f32 %v1435_v39, 0.0  ;;  %v1437_v14 = vpop.f32.mrb[19].mxu0  ;;  %v2411_v39 = vmax.f32 %v1443_v32, 0.0 }
 0x107   :  { %v4454_v29 = vadd.f32 %v4453_v26, %v4199_v47  ;;  %v1438_v0 = vadd.f32 %v6632_v45, %v1437_v14  ;;  %5407 = vmatmul.mubr.msk.bf16.gmra.mrb[124].mxu0 %vm947_vm0, %v5685_v8  ;;  %v2784_v8 = vld [vmem:[%s8319_s3 + $0x438] sm:$0xff]  ;;  %v6877_v14 = vpop.f32.mrb[12].mxu1 }
 0x108   :  { %v4201_v38 = vmul.f32 %v6337_v50, %v2409_v27  ;;  %5410 = vmatprep.mubr.msk.bf16.mxu0 %vm947_vm0, %v5688_v30  ;;  %v2783_v50 = vld [vmem:[%s8319_s3 + $0x430] sm:$0xff]  ;;  %8356 = vst [vmem:[#allocation27_spill] sm:$0xff] %v6877_v14  ;;  %v2412_v30 = vmax.f32 %v1446_v63, 0.0 }
 0x109   :  { %v6865_v3 = vpop.permute.xlu1 %3252  ;;  %v6867_v58 = vpop.permute.xlu0 %3247  ;;  %v4455_v20 = vadd.f32 %v4454_v29, %v4200_v44  ;;  %v2410_v43 = vmax.f32 %v1438_v0, 0.0  ;;  %v4203_v44 = vmul.f32 %v6355_v56, %v2411_v39 }
 0x10a   :  { %3572 = vperm.xlu1 %5570, %v2782_v1   ;;  %3567 = vperm.xlu0 %5569, %v2781_v54   ;;  %v5304_v25 = vpop.f32.mrb[20].mxu0  ;;  %v5689_v54 = vld [vmem:[%s8321_s0 + $0x208] sm:$0xff]   ;;  %v6883_v1 = vpop.f32.mrb[13].mxu1  ;;  %v4204_v56 = vmul.f32 %v6353_v55, %v2412_v30  ;;  %v2788_v55 = vld [vmem:[%s8319_s3 + $0x458] sm:$0xff]  ;;  %v2787_v30 = vld [vmem:[%s8319_s3 + $0x450] sm:$0xff] }
 0x10b   :  { %v4456_v47 = vadd.f32 %v4455_v20, %v4201_v38  ;;  %v4202_v37 = vmul.f32 %v6335_v49, %v2410_v43  ;;  %v1450_v26 = vpop.f32.mrb[21].mxu0  ;;  %8357 = vst [vmem:[#allocation28_spill] sm:$0xff] %v6883_v1  ;;  %v1459_v20 = vadd.f32 %v5304_v25, %v6632_v45  ;;  %v6892_v49 = vpop.f32.mrb[14].mxu1  ;;  %v2786_v43 = vld [vmem:[%s8319_s3 + $0x448] sm:$0xff] }
 0x10c   :  { %v1451_v32 = vadd.f32 %v6632_v45, %v1450_v26  ;;  %v5305_v63 = vpop.f32.mrb[22].mxu0  ;;  %8358 = vst [vmem:[#allocation29_spill] sm:$0xff] %v6892_v49  ;;  %v2785_v26 = vld [vmem:[%s8319_s3 + $0x440] sm:$0xff]  ;;  %v6900_v1 = vpop.f32.mrb[15].mxu1 }
 0x10d   :  { %v6886_v57 = vpop.permute.xlu1 %3262  ;;  %v6888_v27 = vpop.permute.xlu0 %3257  ;;  %v4457_v29 = vadd.f32 %v4456_v47, %v4202_v37  ;;  %8359 = vst [vmem:[#allocation30_spill] sm:$0xff] %v6900_v1  ;;  %v1462_v25 = vadd.f32 %v5305_v63, %v6632_v45 }
 0x10e   :  { %3582 = vperm.xlu1 %5570, %v2784_v8   ;;  %3577 = vperm.xlu0 %5569, %v2783_v50   ;;  %v2413_v0 = vmax.f32 %v1451_v32, 0.0  ;;  %v1453_v38 = vpop.f32.mrb[23].mxu0  ;;  %v2415_v32 = vmax.f32 %v1459_v20, 0.0 }
 0x10f   :  { %v4458_v39 = vadd.f32 %v4457_v29, %v4203_v44  ;;  %v1454_v8 = vadd.f32 %v6632_v45, %v1453_v38  ;;  %5411 = vmatmul.mubr.msk.bf16.gmra.mrb[128].mxu0 %vm947_vm0, %v5689_v54  ;;  %v6917_v54 = vpop.f32.mrb[16].mxu1  ;;  %v2416_v44 = vmax.f32 %v1462_v25, 0.0 }
 0x110   :  { %v4205_v50 = vmul.f32 %v6373_v62, %v2413_v0  ;;  %8360 = vst [vmem:[#allocation31_spill] sm:$0xff] %v6917_v54  ;;  %v6920_v63 = vpop.f32.mrb[17].mxu1  ;;  %v5700_v0 = vld [vmem:[%s8321_s0 + $0x3f0] sm:$0xff]   ;;  %v2789_v54 = vld [vmem:[%s8319_s3 + $0x460] sm:$0xff] }
 0x111   :  { %v6907_v47 = vpop.permute.xlu1 %3272  ;;  %v6909_v37 = vpop.permute.xlu0 %3267  ;;  %v4459_v49 = vadd.f32 %v4458_v39, %v4204_v56  ;;  %v2414_v14 = vmax.f32 %v1454_v8, 0.0  ;;  %8361 = vst [vmem:[#allocation32_spill] sm:$0xff] %v6920_v63  ;;  %v4207_v56 = vmul.f32 %v6397_v10, %v2415_v32  ;;  %5534 = vmatprep.mubr.msk.bf16.mxu1 %vm947_vm0, %v5700_v0  ;;  %v4208_v10 = vmul.f32 %v6395_v7, %v2416_v44  ;;  %v2792_v7 = vld [vmem:[%s8319_s3 + $0x478] sm:$0xff]  ;;  %v2791_v44 = vld [vmem:[%s8319_s3 + $0x470] sm:$0xff] }
 0x112   :  { %3592 = vperm.xlu1 %5570, %v2786_v43   ;;  %3587 = vperm.xlu0 %5569, %v2785_v26   ;;  %v5308_v1 = vpop.f32.mrb[24].mxu0  ;;  %v6935_v25 = vpop.f32.mrb[18].mxu1 }
 0x113   :  { %v4460_v62 = vadd.f32 %v4459_v49, %v4205_v50  ;;  %v4206_v29 = vmul.f32 %v6371_v61, %v2414_v14  ;;  %v1466_v20 = vpop.f32.mrb[25].mxu0  ;;  %v5701_v49 = vld [vmem:[%s8321_s0 + $0x3f8] sm:$0xff]   ;;  %v1475_v14 = vadd.f32 %v5308_v1, %v6632_v45  ;;  %8362 = vst [vmem:[#allocation33_spill] sm:$0xff] %v6935_v25  ;;  %v6943_v63 = vpop.f32.mrb[19].mxu1 }
 0x114   :  { %v1467_v38 = vadd.f32 %v6632_v45, %v1466_v20  ;;  %v5309_v39 = vpop.f32.mrb[26].mxu0  ;;  %v2790_v20 = vld [vmem:[%s8319_s3 + $0x468] sm:$0xff]  ;;  %8363 = vst [vmem:[#allocation34_spill] sm:$0xff] %v6943_v63  ;;  %5535 = vmatmul.mubr.msk.bf16.gmra.mrb[120].mxu1 %vm947_vm0, %v5701_v49  ;;  %v6961_v49 = vpop.f32.mrb[20].mxu1 }
 0x115   :  { %v6926_v43 = vpop.permute.xlu1 %3282  ;;  %v6928_v26 = vpop.permute.xlu0 %3277  ;;  %v4461_v61 = vadd.f32 %v4460_v62, %v4206_v29  ;;  %v1478_v32 = vadd.f32 %v5309_v39, %v6632_v45  ;;  %8364 = vst [vmem:[#allocation35_spill] sm:$0xff] %v6961_v49 }
 0x116   :  { %3602 = vperm.xlu1 %5570, %v2788_v55   ;;  %3597 = vperm.xlu0 %5569, %v2787_v30   ;;  %v2417_v8 = vmax.f32 %v1467_v38, 0.0  ;;  %v1469_v50 = vpop.f32.mrb[27].mxu0  ;;  %v2419_v38 = vmax.f32 %v1475_v14, 0.0  ;;  %v6964_v39 = vpop.f32.mrb[21].mxu1 }
 0x117   :  { %v4462_v1 = vadd.f32 %v4461_v61, %v4207_v56  ;;  %v1470_v55 = vadd.f32 %v6632_v45, %v1469_v50  ;;  %v2420_v56 = vmax.f32 %v1478_v32, 0.0  ;;  %8365 = vst [vmem:[#allocation36_spill] sm:$0xff] %v6964_v39 }
 0x118   :  { %v4209_v30 = vmul.f32 %v6409_v16, %v2417_v8 }
 0x119   :  { %v6951_v62 = vpop.permute.xlu1 %3292  ;;  %v6953_v29 = vpop.permute.xlu0 %3287  ;;  %v4463_v25 = vadd.f32 %v4462_v1, %v4208_v10  ;;  %v2418_v63 = vmax.f32 %v1470_v55, 0.0 }
 0x11a   :  { %3612 = vperm.xlu1 %5570, %v2790_v20   ;;  %3607 = vperm.xlu0 %5569, %v2789_v54   ;;  %v5312_v0 = vpop.f32.mrb[28].mxu0  ;;  %v4211_v20 = vmul.f32 %v6427_v24, %v2419_v38  ;;  %v2793_v24 = vld [vmem:[%s8319_s3 + $0x480] sm:$0xff] }
 0x11b   :  { %v4464_v16 = vadd.f32 %v4463_v25, %v4209_v30  ;;  %v4210_v61 = vmul.f32 %v6407_v15, %v2418_v63  ;;  %v1482_v14 = vpop.f32.mrb[29].mxu0  ;;  %v1491_v1 = vadd.f32 %v5312_v0, %v6632_v45  ;;  %v6973_v25 = vpop.f32.mrb[22].mxu1  ;;  %v2794_v30 = vld [vmem:[%s8319_s3 + $0x488] sm:$0xff]  ;;  %v4212_v0 = vmul.f32 %v6425_v23, %v2420_v56 }
 0x11c   :  { %v1483_v54 = vadd.f32 %v6632_v45, %v1482_v14  ;;  %v5313_v55 = vpop.f32.mrb[30].mxu0  ;;  %8366 = vst [vmem:[#allocation37_spill] sm:$0xff] %v6973_v25  ;;  %v6982_v38 = vpop.f32.mrb[23].mxu1 }
 0x11d   :  { %v6967_v8 = vpop.permute.xlu1 %3302  ;;  %v6969_v50 = vpop.permute.xlu0 %3297  ;;  %v4465_v10 = vadd.f32 %v4464_v16, %v4210_v61  ;;  %v1494_v63 = vadd.f32 %v5313_v55, %v6632_v45  ;;  %8367 = vst [vmem:[#allocation38_spill] sm:$0xff] %v6982_v38  ;;  %v5702_v55 = vld [vmem:[%s8323_s4] sm:$0xff]   ;;  %v2423_v25 = vmax.f32 %v1491_v1, 0.0 }
 0x11e   :  { %3622 = vperm.xlu1 %5570, %v2792_v7   ;;  %3617 = vperm.xlu0 %5569, %v2791_v44   ;;  %v2421_v15 = vmax.f32 %v1483_v54, 0.0  ;;  %v1485_v32 = vpop.f32.mrb[31].mxu0  ;;  %v2796_v54 = vld [vmem:[%s8319_s3 + $0x498] sm:$0xff] }
 0x11f   :  { %v4466_v7 = vadd.f32 %v4465_v10, %v4211_v20  ;;  %v1486_v44 = vadd.f32 %v6632_v45, %v1485_v32  ;;  %v2424_v56 = vmax.f32 %v1494_v63, 0.0  ;;  %v7000_v10 = vpop.f32.mrb[24].mxu1 }
 0x120   :  { %v4213_v16 = vmul.f32 %v6445_v34, %v2421_v15  ;;  %v2795_v34 = vld [vmem:[%s8319_s3 + $0x490] sm:$0xff]  ;;  %8368 = vst [vmem:[#allocation39_spill] sm:$0xff] %v7000_v10  ;;  %v8326_v15 = vmov 0.0   ;;  %v7004_v1 = vpop.f32.mrb[25].mxu1 }
 0x121   :  { %v6987_v61 = vpop.permute.xlu1 %3312  ;;  %v6989_v14 = vpop.permute.xlu0 %3307  ;;  %v4467_v38 = vadd.f32 %v4466_v7, %v4212_v0  ;;  %v2422_v23 = vmax.f32 %v1486_v44, 0.0  ;;  %5538 = vmatprep.subr.bf16.mxu1 %v8326_v15  ;;  %8369 = vst [vmem:[#allocation40_spill] sm:$0xff] %v7004_v1  ;;  %v4215_v0 = vmul.f32 %v6463_v42, %v2423_v25  ;;  %v4216_v42 = vmul.f32 %v6461_v41, %v2424_v56  ;;  %v2800_v41 = vld [vmem:[%s8319_s3 + $0x4b8] sm:$0xff]  ;;  %v2799_v56 = vld [vmem:[%s8319_s3 + $0x4b0] sm:$0xff] }
 0x122   :  { %3632 = vperm.xlu1 %5570, %v2794_v30   ;;  %3627 = vperm.xlu0 %5569, %v2793_v24   ;;  %v5316_v20 = vpop.f32.mrb[32].mxu0 }
 0x123   :  { %v4468_v32 = vadd.f32 %v4467_v38, %v4213_v16  ;;  %v4214_v49 = vmul.f32 %v6443_v31, %v2422_v23  ;;  %v1498_v39 = vpop.f32.mrb[33].mxu0  ;;  %5539 = vmatpush3.bf16.msra.mxu1 %v5702_v55  ;;  %v1507_v44 = vadd.f32 %v5316_v20, %v6632_v45  ;;  %v7014_v31 = vpop.f32.mrb[26].mxu1  ;;  %v2797_v23 = vld [vmem:[%s8319_s3 + $0x4a0] sm:$0xff] }
 0x124   :  { %v1499_v30 = vadd.f32 %v6632_v45, %v1498_v39  ;;  %5540 = vmatprep.subr.bf16.mxu1 %v8326_v15  ;;  %v5317_v38 = vpop.f32.mrb[34].mxu0  ;;  %8370 = vst [vmem:[#allocation41_spill] sm:$0xff] %v7014_v31  ;;  %v2798_v39 = vld [vmem:[%s8319_s3 + $0x4a8] sm:$0xff]  ;;  %v7022_v15 = vpop.f32.mrb[27].mxu1 }
 0x125   :  { %v7007_v63 = vpop.permute.xlu1 %3322  ;;  %v7009_v24 = vpop.permute.xlu0 %3317  ;;  %v4469_v7 = vadd.f32 %v4468_v32, %v4214_v49  ;;  %8371 = vst [vmem:[#allocation42_spill] sm:$0xff] %v7022_v15  ;;  %v1510_v25 = vadd.f32 %v5317_v38, %v6632_v45 }
 0x126   :  { %3642 = vperm.xlu1 %5570, %v2796_v54   ;;  %3637 = vperm.xlu0 %5569, %v2795_v34   ;;  %v2425_v16 = vmax.f32 %v1499_v30, 0.0  ;;  %v1501_v55 = vpop.f32.mrb[35].mxu0  ;;  %v2427_v30 = vmax.f32 %v1507_v44, 0.0 }
 0x127   :  { %v4470_v49 = vadd.f32 %v4469_v7, %v4215_v0  ;;  %v1502_v54 = vadd.f32 %v6632_v45, %v1501_v55  ;;  %v7039_v0 = vpop.f32.mrb[28].mxu1  ;;  %v2428_v38 = vmax.f32 %v1510_v25, 0.0  ;;  %v2801_v25 = vld [vmem:[%s8319_s3 + $0x4c0] sm:$0xff] }
 0x128   :  { %8372 = vst [vmem:[#allocation43_spill] sm:$0xff] %v7039_v0  ;;  %v4217_v7 = vmul.f32 %v6481_v52, %v2425_v16  ;;  %v2802_v16 = vld [vmem:[%s8319_s3 + $0x4c8] sm:$0xff] }
 0x129   :  { %v7027_v20 = vpop.permute.xlu1 %3332  ;;  %v7029_v34 = vpop.permute.xlu0 %3327  ;;  %v7031_v32 = vadd.f32 %v4470_v49, %v4216_v42  ;;  %v2426_v1 = vmax.f32 %v1502_v54, 0.0  ;;  %v4219_v54 = vmul.f32 %v6499_v60, %v2427_v30  ;;  %v4220_v60 = vmul.f32 %v6497_v59, %v2428_v38  ;;  %v2804_v59 = vld [vmem:[%s8319_s3 + $0x4d8] sm:$0xff] }
 0x12a   :  { %3652 = vperm.xlu1 %5570, %v2798_v39   ;;  %3647 = vperm.xlu0 %5569, %v2797_v23   ;;  %v5320_v53 = vpop.f32.mrb[36].mxu0  ;;  %v7043_v42 = vpop.f32.mrb[29].mxu1 }
 0x12b   :  { %v4218_v55 = vmul.f32 %v6479_v51, %v2426_v1  ;;  %v1514_v44 = vpop.f32.mrb[37].mxu0  ;;  %8373 = vst [vmem:[#allocation44_spill] sm:$0xff] %v7043_v42  ;;  %v1523_v31 = vadd.f32 %v5320_v53, %v6632_v45  ;;  %v7052_v52 = vpop.f32.mrb[30].mxu1 }
 0x12c   :  { %v1515_v39 = vadd.f32 %v6632_v45, %v1514_v44  ;;  %v5321_v0 = vpop.f32.mrb[38].mxu0  ;;  %8374 = vst [vmem:[#allocation45_spill] sm:$0xff] %v7052_v52  ;;  %v7060_v44 = vpop.f32.mrb[31].mxu1 }
 0x12d   :  { %v7046_v23 = vpop.permute.xlu1 %3342  ;;  %v7048_v49 = vpop.permute.xlu0 %3337  ;;  %v4478_v15 = vadd.f32 %v4218_v55, %v4217_v7  ;;  %8375 = vst [vmem:[#allocation46_spill] sm:$0xff] %v7060_v44  ;;  %v1526_v30 = vadd.f32 %v5321_v0, %v6632_v45 }
 0x12e   :  { %3662 = vperm.xlu1 %5570, %v2800_v41   ;;  %3657 = vperm.xlu0 %5569, %v2799_v56   ;;  %v2429_v51 = vmax.f32 %v1515_v39, 0.0  ;;  %v1517_v1 = vpop.f32.mrb[39].mxu0  ;;  %v2431_v39 = vmax.f32 %v1523_v31, 0.0  ;;  %v7076_v0 = vpop.f32.mrb[32].mxu1 }
 0x12f   :  { %v4479_v53 = vadd.f32 %v4478_v15, %v4219_v54  ;;  %v1518_v41 = vadd.f32 %v6632_v45, %v1517_v1  ;;  %v2803_v15 = vld [vmem:[%s8319_s3 + $0x4d0] sm:$0xff]  ;;  %8376 = vst [vmem:[#allocation47_spill] sm:$0xff] %v7076_v0  ;;  %v2432_v38 = vmax.f32 %v1526_v30, 0.0  ;;  %v2806_v30 = vld [vmem:[%s8319_s3 + $0x4e8] sm:$0xff] }
 0x130   :  { %v4221_v56 = vmul.f32 %v6517_v6, %v2429_v51  ;;  %v7079_v51 = vpop.f32.mrb[33].mxu1 }
 0x131   :  { %v7066_v7 = vpop.permute.xlu1 %3352  ;;  %v7068_v55 = vpop.permute.xlu0 %3347  ;;  %v4480_v52 = vadd.f32 %v4479_v53, %v4220_v60  ;;  %v2430_v42 = vmax.f32 %v1518_v41, 0.0  ;;  %8377 = vst [vmem:[#allocation48_spill] sm:$0xff] %v7079_v51  ;;  %v4223_v60 = vmul.f32 %v6535_v22, %v2431_v39  ;;  %v4224_v22 = vmul.f32 %v6533_v19, %v2432_v38  ;;  %v2808_v19 = vld [vmem:[%s8319_s3 + $0x4f8] sm:$0xff] }
 0x132   :  { %3672 = vperm.xlu1 %5570, %v2802_v16   ;;  %3667 = vperm.xlu0 %5569, %v2801_v25   ;;  %v5324_v10 = vpop.f32.mrb[40].mxu0 }
 0x133   :  { %v4481_v6 = vadd.f32 %v4480_v52, %v4221_v56  ;;  %v4222_v54 = vmul.f32 %v6515_v5, %v2430_v42  ;;  %v1530_v31 = vpop.f32.mrb[41].mxu0  ;;  %v1539_v41 = vadd.f32 %v5324_v10, %v6632_v45  ;;  %v7088_v52 = vpop.f32.mrb[34].mxu1  ;;  %v2805_v56 = vld [vmem:[%s8319_s3 + $0x4e0] sm:$0xff] }
 0x134   :  { %v1531_v1 = vadd.f32 %v6632_v45, %v1530_v31  ;;  %v5325_v44 = vpop.f32.mrb[42].mxu0  ;;  %8378 = vst [vmem:[#allocation49_spill] sm:$0xff] %v7088_v52  ;;  %v7096_v31 = vpop.f32.mrb[35].mxu1 }
 0x135   :  { %v7082_v16 = vpop.permute.xlu1 %3362  ;;  %v7084_v25 = vpop.permute.xlu0 %3357  ;;  %v4482_v53 = vadd.f32 %v4481_v6, %v4222_v54  ;;  %8379 = vst [vmem:[#allocation50_spill] sm:$0xff] %v7096_v31  ;;  %v1542_v39 = vadd.f32 %v5325_v44, %v6632_v45  ;;  %v2807_v44 = vld [vmem:[%s8319_s3 + $0x4f0] sm:$0xff] }
 0x136   :  { %3682 = vperm.xlu1 %5570, %v2804_v59   ;;  %3677 = vperm.xlu0 %5569, %v2803_v15   ;;  %v2433_v5 = vmax.f32 %v1531_v1, 0.0  ;;  %v1533_v42 = vpop.f32.mrb[43].mxu0  ;;  %v2435_v1 = vmax.f32 %v1539_v41, 0.0  ;;  %v7112_v38 = vpop.f32.mrb[36].mxu1 }
 0x137   :  { %v4483_v10 = vadd.f32 %v4482_v53, %v4223_v60  ;;  %v1534_v59 = vadd.f32 %v6632_v45, %v1533_v42  ;;  %8380 = vst [vmem:[#allocation51_spill] sm:$0xff] %v7112_v38  ;;  %v2436_v60 = vmax.f32 %v1542_v39, 0.0  ;;  %v2810_v39 = vld [vmem:[%s8319_s3 + $0x508] sm:$0xff] }
 0x138   :  { %v4225_v15 = vmul.f32 %v6553_v36, %v2433_v5  ;;  %v7115_v5 = vpop.f32.mrb[37].mxu1 }
 0x139   :  { %v7102_v6 = vpop.permute.xlu1 %3372  ;;  %v7104_v54 = vpop.permute.xlu0 %3367  ;;  %v4484_v52 = vadd.f32 %v4483_v10, %v4224_v22  ;;  %v2434_v51 = vmax.f32 %v1534_v59, 0.0  ;;  %8381 = vst [vmem:[#allocation52_spill] sm:$0xff] %v7115_v5  ;;  %v4227_v22 = vmul.f32 %v6571_v48, %v2435_v1  ;;  %v8386_v48 = vld [vmem:[#allocation2_spill] sm:$0xff] }
 0x13a   :  { %3692 = vperm.xlu1 %5570, %v2806_v30   ;;  %3687 = vperm.xlu0 %5569, %v2805_v56   ;;  %v5328_v0 = vpop.f32.mrb[44].mxu0  ;;  %v4228_v1 = vmul.f32 %v8386_v48, %v2436_v60  ;;  %v8391_v48 = vld [vmem:[#allocation3_spill] sm:$0xff] }
 0x13b   :  { %v4485_v36 = vadd.f32 %v4484_v52, %v4225_v15  ;;  %v4226_v53 = vmul.f32 %v6551_v35, %v2434_v51  ;;  %v1546_v41 = vpop.f32.mrb[45].mxu0  ;;  %v1555_v59 = vadd.f32 %v5328_v0, %v6632_v45  ;;  %v7124_v52 = vpop.f32.mrb[38].mxu1  ;;  %v2809_v15 = vld [vmem:[%s8319_s3 + $0x500] sm:$0xff] }
 0x13c   :  { %v1547_v42 = vadd.f32 %v6632_v45, %v1546_v41  ;;  %v5329_v31 = vpop.f32.mrb[46].mxu0  ;;  %8384 = vst [vmem:[#allocation55_spill] sm:$0xff] %v7124_v52  ;;  %v7132_v41 = vpop.f32.mrb[39].mxu1 }
 0x13d   :  { %v7118_v30 = vpop.permute.xlu1 %3382  ;;  %v7120_v56 = vpop.permute.xlu0 %3377  ;;  %v4486_v10 = vadd.f32 %v4485_v36, %v4226_v53  ;;  %8385 = vst [vmem:[#allocation56_spill] sm:$0xff] %v7132_v41  ;;  %v5703_v36 = vld [vmem:[%s8323_s4 + $0x8] sm:$0xff]   ;;  %v8387_v53 = vld [vmem:[#allocation4_spill] sm:$0xff]  ;;  %v2439_v5 = vmax.f32 %v1555_v59, 0.0 }
 0x13e   :  { %8382 = vst [vmem:[#allocation53_spill] sm:$0xff] %v7118_v30  ;;  %8383 = vst [vmem:[#allocation54_spill] sm:$0xff] %v7120_v56  ;;  %3702 = vperm.xlu1 %5570, %v2808_v19   ;;  %3697 = vperm.xlu0 %5569, %v2807_v44   ;;  %v2437_v35 = vmax.f32 %v1547_v42, 0.0  ;;  %v1549_v51 = vpop.f32.mrb[47].mxu0  ;;  %v1558_v19 = vadd.f32 %v5329_v31, %v6632_v45  ;;  %v2812_v31 = vld [vmem:[%s8319_s3 + $0x518] sm:$0xff] }
 0x13f   :  { %v4487_v0 = vadd.f32 %v4486_v10, %v4227_v22  ;;  %v1550_v44 = vadd.f32 %v6632_v45, %v1549_v51  ;;  %v2811_v22 = vld [vmem:[%s8319_s3 + $0x510] sm:$0xff]  ;;  %v7151_v10 = vpop.f32.mrb[40].mxu1  ;;  %5541 = vmatpush3.bf16.msra.mxu1 %v5703_v36 }
 0x140   :  { %v4229_v42 = vmul.f32 %v8387_v53, %v2437_v35  ;;  %8390 = vst [vmem:[#allocation57_spill] sm:$0xff] %v7151_v10  ;;  %v2440_v51 = vmax.f32 %v1558_v19, 0.0 }
 0x141   :  { %v7141_v52 = vpop.permute.xlu1 %3392  ;;  %v7143_v38 = vpop.permute.xlu0 %3387  ;;  %v4488_v17 = vadd.f32 %v4487_v0, %v4228_v1  ;;  %v2438_v41 = vmax.f32 %v1550_v44, 0.0 }
 0x142   :  { %8388 = vst [vmem:[#allocation2_spill] sm:$0xff] %v7141_v52  ;;  %8389 = vst [vmem:[#allocation4_spill] sm:$0xff] %v7143_v38  ;;  %3712 = vperm.xlu1 %5570, %v2810_v39   ;;  %3707 = vperm.xlu0 %5569, %v2809_v15   ;;  %v5332_v60 = vpop.f32.mrb[48].mxu0  ;;  %v7154_v0 = vpop.f32.mrb[41].mxu1  ;;  %v8393_v39 = vmov 0.0   ;;  %v8396_v52 = vld [vmem:[#allocation6_spill] sm:$0xff] }
 0x143   :  { %v4489_v35 = vadd.f32 %v4488_v17, %v4229_v42  ;;  %v4230_v59 = vmul.f32 %v8391_v48, %v2438_v41  ;;  %v1562_v1 = vpop.f32.mrb[49].mxu0  ;;  %8392 = vst [vmem:[#allocation3_spill] sm:$0xff] %v7154_v0  ;;  %5542 = vmatprep.subr.bf16.mxu1 %v8393_v39  ;;  %v4231_v38 = vmul.f32 %v8396_v52, %v2439_v5  ;;  %v7164_v41 = vpop.f32.mrb[42].mxu1  ;;  %v2814_v48 = vld [vmem:[%s8319_s3 + $0x528] sm:$0xff]  ;;  %v8399_v5 = vld [vmem:[#allocation5_spill] sm:$0xff] }
 0x144   :  { %v1563_v15 = vadd.f32 %v6632_v45, %v1562_v1  ;;  %v1571_v36 = vadd.f32 %v5332_v60, %v6632_v45  ;;  %v5333_v17 = vpop.f32.mrb[50].mxu0  ;;  %8397 = vst [vmem:[#allocation6_spill] sm:$0xff] %v7164_v41  ;;  %v2813_v1 = vld [vmem:[%s8319_s3 + $0x520] sm:$0xff]  ;;  %v7172_v10 = vpop.f32.mrb[43].mxu1  ;;  %v4232_v52 = vmul.f32 %v8399_v5, %v2440_v51  ;;  %5554 = vmatprep.mubr.msk.bf16.mxu1 %vm5715_vm4, %v8393_v39 }
 0x145   :  { %v7158_v44 = vpop.permute.xlu1 %3402  ;;  %v7160_v53 = vpop.permute.xlu0 %3397  ;;  %v4490_v30 = vadd.f32 %v4489_v35, %v4230_v59  ;;  %8398 = vst [vmem:[#allocation60_spill] sm:$0xff] %v7172_v10  ;;  %v8400_v35 = vld [vmem:[#allocation8_spill] sm:$0xff] }
 0x146   :  { %8394 = vst [vmem:[#allocation58_spill] sm:$0xff] %v7158_v44  ;;  %8395 = vst [vmem:[#allocation59_spill] sm:$0xff] %v7160_v53  ;;  %3722 = vperm.xlu1 %5570, %v2812_v31   ;;  %3717 = vperm.xlu0 %5569, %v2811_v22   ;;  %v2441_v19 = vmax.f32 %v1563_v15, 0.0  ;;  %v1565_v42 = vpop.f32.mrb[51].mxu0  ;;  %v1574_v31 = vadd.f32 %v5333_v17, %v6632_v45  ;;  %v2443_v0 = vmax.f32 %v1571_v36, 0.0 }
 0x147   :  { %v4491_v60 = vadd.f32 %v4490_v30, %v4231_v38  ;;  %v1566_v22 = vadd.f32 %v6632_v45, %v1565_v42  ;;  %v2841_v38 = vld [vmem:[%s8319_s3 + $0x600] sm:$0xff]  ;;  %v2815_v45 = vld [vmem:[%s8319_s3 + $0x530] sm:$0xff]  ;;  %v7188_v30 = vpop.f32.mrb[44].mxu1 }
 0x148   :  { %v4233_v59 = vmul.f32 %v8400_v35, %v2441_v19  ;;  %8403 = vst [vmem:[#allocation61_spill] sm:$0xff] %v7188_v30  ;;  %v2444_v17 = vmax.f32 %v1574_v31, 0.0  ;;  %v8404_v19 = vld [vmem:[#allocation7_spill] sm:$0xff]  ;;  %v7191_v5 = vpop.f32.mrb[45].mxu1 }
 0x149   :  { %v7178_v15 = vpop.permute.xlu1 %3412  ;;  %v7180_v41 = vpop.permute.xlu0 %3407  ;;  %v4492_v44 = vadd.f32 %v4491_v60, %v4232_v52  ;;  %v2442_v53 = vmax.f32 %v1566_v22, 0.0  ;;  %8405 = vst [vmem:[#allocation7_spill] sm:$0xff] %v7191_v5  ;;  %v8408_v22 = vld [vmem:[#allocation10_spill] sm:$0xff]  ;;  %v2842_v5 = vld [vmem:[%s8319_s3 + $0x608] sm:$0xff] }
 0x14a   :  { %8401 = vst [vmem:[#allocation5_spill] sm:$0xff] %v7178_v15  ;;  %8402 = vst [vmem:[#allocation8_spill] sm:$0xff] %v7180_v41  ;;  %3732 = vperm.xlu1 %5570, %v2814_v48   ;;  %3727 = vperm.xlu0 %5569, %v2813_v1   ;;  %v5336_v56 = vpop.f32.mrb[52].mxu0  ;;  %v7196_v48 = vld [vmem:[%s8322_s2] ss:$0 sm:$0xff]  ;;  %v4235_v35 = vmul.f32 %v8408_v22, %v2443_v0  ;;  %v8411_v0 = vld [vmem:[#allocation9_spill] sm:$0xff] }
 0x14b   :  { %v4493_v51 = vadd.f32 %v4492_v44, %v4233_v59  ;;  %v4234_v42 = vmul.f32 %v8404_v19, %v2442_v53  ;;  %v1578_v36 = vpop.f32.mrb[53].mxu0  ;;  %v1587_v31 = vadd.f32 %v7196_v48, %v5336_v56  ;;  %v7205_v59 = vpop.f32.mrb[46].mxu1 }
 0x14c   :  { %v1579_v1 = vadd.f32 %v7196_v48, %v1578_v36  ;;  %v5337_v53 = vpop.f32.mrb[54].mxu0  ;;  %8409 = vst [vmem:[#allocation10_spill] sm:$0xff] %v7205_v59  ;;  %v2873_v36 = vld [vmem:[%s8319_s3 + $0x700] sm:$0xff]  ;;  %v7213_v10 = vpop.f32.mrb[47].mxu1 }
 0x14d   :  { %v7199_v52 = vpop.permute.xlu1 %3422  ;;  %v7201_v60 = vpop.permute.xlu0 %3417  ;;  %v4494_v44 = vadd.f32 %v4493_v51, %v4234_v42  ;;  %8410 = vst [vmem:[#allocation64_spill] sm:$0xff] %v7213_v10  ;;  %v4236_v51 = vmul.f32 %v8411_v0, %v2444_v17  ;;  %v8412_v42 = vld [vmem:[#allocation12_spill] sm:$0xff] }
 0x14e   :  { %8406 = vst [vmem:[#allocation62_spill] sm:$0xff] %v7199_v52  ;;  %8407 = vst [vmem:[#allocation63_spill] sm:$0xff] %v7201_v60  ;;  %3867 = vperm.xlu1 %5570, %v2841_v38   ;;  %3737 = vperm.xlu0 %5569, %v2815_v45   ;;  %v2445_v19 = vmax.f32 %v1579_v1, 0.0  ;;  %v1581_v30 = vpop.f32.mrb[55].mxu0  ;;  %v1590_v38 = vadd.f32 %v7196_v48, %v5337_v53  ;;  %v2447_v52 = vmax.f32 %v1587_v31, 0.0  ;;  %v2843_v17 = vld [vmem:[%s8319_s3 + $0x610] sm:$0xff] }
 0x14f   :  { %v4495_v56 = vadd.f32 %v4494_v44, %v4235_v35  ;;  %v1582_v45 = vadd.f32 %v7196_v48, %v1581_v30  ;;  %v2874_v30 = vld [vmem:[%s8319_s3 + $0x708] sm:$0xff]  ;;  %v7229_v35 = vpop.f32.mrb[48].mxu1 }
 0x150   :  { %v4237_v1 = vmul.f32 %v8412_v42, %v2445_v19  ;;  %8415 = vst [vmem:[#allocation65_spill] sm:$0xff] %v7229_v35  ;;  %v2448_v53 = vmax.f32 %v1590_v38, 0.0  ;;  %v8416_v19 = vld [vmem:[#allocation11_spill] sm:$0xff] }
 0x151   :  { %v7219_v22 = vpop.permute.xlu1 %3432  ;;  %v7221_v59 = vpop.permute.xlu0 %3427  ;;  %v4496_v60 = vadd.f32 %v4495_v56, %v4236_v51  ;;  %v2446_v15 = vmax.f32 %v1582_v45, 0.0  ;;  %v8419_v45 = vld [vmem:[#allocation14_spill] sm:$0xff] }
 0x152   :  { %8413 = vst [vmem:[#allocation9_spill] sm:$0xff] %v7219_v22  ;;  %8414 = vst [vmem:[#allocation12_spill] sm:$0xff] %v7221_v59  ;;  %4027 = vperm.xlu1 %5570, %v2873_v36   ;;  %3872 = vperm.xlu0 %5569, %v2842_v5   ;;  %v5340_v41 = vpop.f32.mrb[56].mxu0  ;;  %v7232_v51 = vpop.f32.mrb[49].mxu1  ;;  %v4239_v42 = vmul.f32 %v8419_v45, %v2447_v52  ;;  %v8422_v52 = vld [vmem:[#allocation13_spill] sm:$0xff] }
 0x153   :  { %v4497_v44 = vadd.f32 %v4496_v60, %v4237_v1  ;;  %v4238_v0 = vmul.f32 %v8416_v19, %v2446_v15  ;;  %v1594_v31 = vpop.f32.mrb[57].mxu0  ;;  %8417 = vst [vmem:[#allocation11_spill] sm:$0xff] %v7232_v51  ;;  %v1603_v22 = vadd.f32 %v7196_v48, %v5340_v41  ;;  %v7241_v60 = vpop.f32.mrb[50].mxu1  ;;  %v2844_v1 = vld [vmem:[%s8319_s3 + $0x618] sm:$0xff]  ;;  %v2875_v19 = vld [vmem:[%s8319_s3 + $0x710] sm:$0xff] }
 0x154   :  { %v1595_v5 = vadd.f32 %v7196_v48, %v1594_v31  ;;  %v5341_v59 = vpop.f32.mrb[58].mxu0  ;;  %8420 = vst [vmem:[#allocation14_spill] sm:$0xff] %v7241_v60  ;;  %v7249_v31 = vpop.f32.mrb[51].mxu1 }
 0x155   :  { %v7235_v36 = vpop.permute.xlu1 %3442  ;;  %v7237_v56 = vpop.permute.xlu0 %3437  ;;  %v4498_v10 = vadd.f32 %v4497_v44, %v4238_v0  ;;  %8421 = vst [vmem:[#allocation67_spill] sm:$0xff] %v7249_v31  ;;  %v4240_v44 = vmul.f32 %v8422_v52, %v2448_v53  ;;  %v2451_v60 = vmax.f32 %v1603_v22, 0.0 }
 0x156   :  { %8418 = vst [vmem:[#allocation66_spill] sm:$0xff] %v7235_v36  ;;  %3877 = vperm.xlu1 %5570, %v2843_v17   ;;  %4032 = vperm.xlu0 %5569, %v2874_v30   ;;  %v2449_v15 = vmax.f32 %v1595_v5, 0.0  ;;  %v1597_v38 = vpop.f32.mrb[59].mxu0  ;;  %v1606_v17 = vadd.f32 %v7196_v48, %v5341_v59  ;;  %v2876_v59 = vld [vmem:[%s8319_s3 + $0x718] sm:$0xff]  ;;  %v7265_v53 = vpop.f32.mrb[52].mxu1 }
 0x157   :  { %v4499_v41 = vadd.f32 %v4498_v10, %v4239_v42  ;;  %v1598_v30 = vadd.f32 %v7196_v48, %v1597_v38  ;;  %v2845_v10 = vld [vmem:[%s8319_s3 + $0x620] sm:$0xff]  ;;  %8423 = vst [vmem:[#allocation13_spill] sm:$0xff] %v7265_v53  ;;  %v7268_v38 = vpop.f32.mrb[53].mxu1 }
 0x158   :  { %v4241_v0 = vmul.f32 %v6715_v4, %v2449_v15  ;;  %v2452_v42 = vmax.f32 %v1606_v17, 0.0  ;;  %8424 = vst [vmem:[#allocation68_spill] sm:$0xff] %v7268_v38 }
 0x159   :  { %v7255_v5 = vpop.permute.xlu1 %3452  ;;  %v7257_v45 = vpop.permute.xlu0 %3447  ;;  %v4500_v35 = vadd.f32 %v4499_v41, %v4240_v44  ;;  %v2450_v51 = vmax.f32 %v1598_v30, 0.0  ;;  %v4243_v44 = vmul.f32 %v6739_v40, %v2451_v60  ;;  %v2877_v40 = vld [vmem:[%s8319_s3 + $0x720] sm:$0xff] }
 0x15a   :  { %3882 = vperm.xlu1 %5570, %v2844_v1   ;;  %4037 = vperm.xlu0 %5569, %v2875_v19   ;;  %v5344_v36 = vpop.f32.mrb[60].mxu0 }
 0x15b   :  { %v4501_v4 = vadd.f32 %v4500_v35, %v4241_v0  ;;  %v4242_v15 = vmul.f32 %v6713_v18, %v2450_v51  ;;  %v1610_v22 = vpop.f32.mrb[61].mxu0  ;;  %v1619_v30 = vadd.f32 %v7196_v48, %v5344_v36  ;;  %v7277_v35 = vpop.f32.mrb[54].mxu1  ;;  %v2846_v0 = vld [vmem:[%s8319_s3 + $0x628] sm:$0xff]  ;;  %v4244_v36 = vmul.f32 %v6737_v9, %v2452_v42 }
 0x15c   :  { %v1611_v1 = vadd.f32 %v7196_v48, %v1610_v22  ;;  %v5345_v31 = vpop.f32.mrb[62].mxu0  ;;  %8425 = vst [vmem:[#allocation69_spill] sm:$0xff] %v7277_v35  ;;  %v7286_v60 = vpop.f32.mrb[55].mxu1 }
 0x15d   :  { %v7271_v19 = vpop.permute.xlu1 %3462  ;;  %v7273_v52 = vpop.permute.xlu0 %3457  ;;  %v4502_v41 = vadd.f32 %v4501_v4, %v4242_v15  ;;  %v1622_v51 = vadd.f32 %v7196_v48, %v5345_v31  ;;  %8426 = vst [vmem:[#allocation70_spill] sm:$0xff] %v7286_v60  ;;  %v4472_v4 = vrot.slane %v7031_v32, 4  ;;  %v2455_v35 = vmax.f32 %v1619_v30, 0.0 }
 0x15e   :  { %3887 = vperm.xlu1 %5570, %v2845_v10   ;;  %4042 = vperm.xlu0 %5569, %v2876_v59   ;;  %v2453_v18 = vmax.f32 %v1611_v1, 0.0  ;;  %v1613_v17 = vpop.f32.mrb[63].mxu0  ;;  %v5704_v1 = vld [vmem:[%s8323_s4 + $0x10] sm:$0xff]  }
 0x15f   :  { %v4503_v10 = vadd.f32 %v4502_v41, %v4243_v44  ;;  %v1614_v59 = vadd.f32 %v7196_v48, %v1613_v17  ;;  %v2456_v9 = vmax.f32 %v1622_v51, 0.0  ;;  %v2847_v44 = vld [vmem:[%s8319_s3 + $0x630] sm:$0xff]  ;;  %v7305_v41 = vpop.f32.mrb[56].mxu1  ;;  %5543 = vmatpush3.bf16.msra.mxu1 %v5704_v1  ;;  %v4473_v51 = vadd.f32 %v4472_v4, %v7031_v32  ;;  %v2816_v4 = vld [vmem:[%s8319_s3 + $0x538] sm:$0xff] }
 0x160   :  { %v4245_v31 = vmul.f32 %v6767_v2, %v2453_v18  ;;  %v2878_v2 = vld [vmem:[%s8319_s3 + $0x728] sm:$0xff]  ;;  %8427 = vst [vmem:[#allocation71_spill] sm:$0xff] %v7305_v41  ;;  %5544 = vmatprep.subr.bf16.mxu1 %v8393_v39  ;;  %v2879_v32 = vld [vmem:[%s8319_s3 + $0x730] sm:$0xff] }
 0x161   :  { %v7292_v15 = vpop.permute.xlu1 %3472  ;;  %v7294_v22 = vpop.permute.xlu0 %3467  ;;  %v4504_v53 = vadd.f32 %v4503_v10, %v4244_v36  ;;  %v2454_v60 = vmax.f32 %v1614_v59, 0.0  ;;  %v4247_v59 = vmul.f32 %v6791_v21, %v2455_v35 }
 0x162   :  { %3892 = vperm.xlu1 %5570, %v2846_v0   ;;  %4047 = vperm.xlu0 %5569, %v2877_v40   ;;  %v5348_v42 = vpop.f32.mrb[64].mxu0  ;;  %v7308_v36 = vpop.f32.mrb[57].mxu1 }
 0x163   :  { %v4505_v18 = vadd.f32 %v4504_v53, %v4245_v31  ;;  %v4246_v30 = vmul.f32 %v6765_v12, %v2454_v60  ;;  %v1626_v17 = vpop.f32.mrb[65].mxu0  ;;  %8428 = vst [vmem:[#allocation72_spill] sm:$0xff] %v7308_v36  ;;  %v1635_v53 = vadd.f32 %v7196_v48, %v5348_v42  ;;  %v7319_v12 = vpop.f32.mrb[58].mxu1  ;;  %v4248_v60 = vmul.f32 %v6789_v28, %v2456_v9 }
 0x164   :  { %v1627_v0 = vadd.f32 %v7196_v48, %v1626_v17  ;;  %v5349_v31 = vpop.f32.mrb[66].mxu0  ;;  %8431 = vst [vmem:[#allocation75_spill] sm:$0xff] %v7319_v12  ;;  %v7328_v21 = vpop.f32.mrb[59].mxu1 }
 0x165   :  { %v7313_v40 = vpop.permute.xlu1 %3482  ;;  %v7315_v10 = vpop.permute.xlu0 %3477  ;;  %v4506_v41 = vadd.f32 %v4505_v18, %v4246_v30  ;;  %8432 = vst [vmem:[#allocation76_spill] sm:$0xff] %v7328_v21  ;;  %v4474_v18 = vrot.slane %v4473_v51, 2  ;;  %v2459_v17 = vmax.f32 %v1635_v53, 0.0 }
 0x166   :  { %8429 = vst [vmem:[#allocation73_spill] sm:$0xff] %v7313_v40  ;;  %8430 = vst [vmem:[#allocation74_spill] sm:$0xff] %v7315_v10  ;;  %3897 = vperm.xlu1 %5570, %v2847_v44   ;;  %4052 = vperm.xlu0 %5569, %v2878_v2   ;;  %v1629_v1 = vpop.f32.mrb[67].mxu0  ;;  %v2457_v42 = vmax.f32 %v1627_v0, 0.0  ;;  %v1638_v44 = vadd.f32 %v7196_v48, %v5349_v31  ;;  %v2848_v0 = vld [vmem:[%s8319_s3 + $0x638] sm:$0xff] }
 0x167   :  { %v4507_v35 = vadd.f32 %v4506_v41, %v4247_v59  ;;  %v1630_v2 = vadd.f32 %v7196_v48, %v1629_v1  ;;  %v2817_v41 = vld [vmem:[%s8319_s3 + $0x540] sm:$0xff]  ;;  %v7342_v59 = vpop.f32.mrb[60].mxu1  ;;  %v4251_v40 = vmul.f32 %v6840_v33, %v2459_v17 }
 0x168   :  { %v4249_v1 = vmul.f32 %v6819_v13, %v2457_v42  ;;  %v2460_v21 = vmax.f32 %v1638_v44, 0.0  ;;  %v2880_v44 = vld [vmem:[%s8319_s3 + $0x738] sm:$0xff] }
 0x169   :  { %v7332_v30 = vpop.permute.xlu1 %3492  ;;  %v7334_v28 = vpop.permute.xlu0 %3487  ;;  %v4508_v9 = vadd.f32 %v4507_v35, %v4248_v60  ;;  %v2458_v12 = vmax.f32 %v1630_v2, 0.0 }
 0x16a   :  { %8433 = vst [vmem:[#allocation77_spill] sm:$0xff] %v7332_v30  ;;  %8434 = vst [vmem:[#allocation78_spill] sm:$0xff] %v7334_v28  ;;  %4057 = vperm.xlu1 %5570, %v2879_v32   ;;  %3742 = vperm.xlu0 %5569, %v2816_v4   ;;  %v5352_v36 = vpop.f32.mrb[68].mxu0  ;;  %v7346_v32 = vpop.f32.mrb[61].mxu1  ;;  %v4475_v4 = vadd.f32 %v4474_v18, %v4473_v51 }
 0x16b   :  { %v4509_v31 = vrot.slane %v4508_v9, 4  ;;  %v4250_v53 = vmul.f32 %v6817_v11, %v2458_v12  ;;  %v1642_v60 = vpop.f32.mrb[69].mxu0  ;;  %v1651_v35 = vadd.f32 %v7196_v48, %v5352_v36  ;;  %v7355_v11 = vpop.f32.mrb[62].mxu1  ;;  %v2849_v36 = vld [vmem:[%s8319_s3 + $0x640] sm:$0xff] }
 0x16c   :  { %v1643_v2 = vadd.f32 %v7196_v48, %v1642_v60  ;;  %v5353_v13 = vpop.f32.mrb[70].mxu0  ;;  %8437 = vst [vmem:[#allocation81_spill] sm:$0xff] %v7355_v11  ;;  %v7364_v18 = vpop.f32.mrb[63].mxu1 }
 0x16d   :  { %v7350_v38 = vpop.permute.xlu1 %3502  ;;  %v7352_v30 = vpop.permute.xlu0 %3497  ;;  %v4510_v28 = vadd.f32 %v4509_v31, %v4508_v9  ;;  %v4515_v10 = vadd.f32 %v4250_v53, %v4249_v1  ;;  %v1654_v51 = vadd.f32 %v7196_v48, %v5353_v13  ;;  %v4252_v9 = vmul.f32 %v6838_v46, %v2460_v21  ;;  %v2881_v46 = vld [vmem:[%s8319_s3 + $0x740] sm:$0xff] }
 0x16e   :  { %8435 = vst [vmem:[#allocation79_spill] sm:$0xff] %v7350_v38  ;;  %8436 = vst [vmem:[#allocation80_spill] sm:$0xff] %v7352_v30  ;;  %3747 = vperm.xlu1 %5570, %v2817_v41   ;;  %3902 = vperm.xlu0 %5569, %v2848_v0   ;;  %v2461_v12 = vmax.f32 %v1643_v2, 0.0  ;;  %v1645_v42 = vpop.f32.mrb[71].mxu0  ;;  %v4476_v0 = vrot.slane %v4475_v4, 1  ;;  %v2463_v31 = vmax.f32 %v1651_v35, 0.0 }
 0x16f   :  { %v4511_v33 = vrot.slane %v4510_v28, 2  ;;  %v4516_v17 = vadd.f32 %v4515_v10, %v4251_v40  ;;  %v1646_v41 = vadd.f32 %v7196_v48, %v1645_v42  ;;  %v2464_v30 = vmax.f32 %v1654_v51, 0.0  ;;  %v2818_v40 = vld [vmem:[%s8319_s3 + $0x548] sm:$0xff] }
 0x170   :  { %v4253_v1 = vmul.f32 %v6867_v58, %v2461_v12  ;;  %v7379_v58 = vpop.f32.mrb[64].mxu1  ;;  %v4477_v42 = vadd.f32 %v4476_v0, %v4475_v4  ;;  %v4255_v51 = vmul.f32 %v6888_v27, %v2463_v31  ;;  %v2819_v27 = vld [vmem:[%s8319_s3 + $0x550] sm:$0xff]  ;;  %v2850_v31 = vld [vmem:[%s8319_s3 + $0x648] sm:$0xff] }
 0x171   :  { %v7369_v53 = vpop.permute.xlu1 %3512  ;;  %v7371_v60 = vpop.permute.xlu0 %3507  ;;  %v4512_v2 = vadd.f32 %v4511_v33, %v4510_v28  ;;  %v4517_v13 = vadd.f32 %v4516_v17, %v4252_v9  ;;  %v2462_v38 = vmax.f32 %v1646_v41, 0.0 }
 0x172   :  { %3907 = vperm.xlu1 %5570, %v2849_v36   ;;  %4062 = vperm.xlu0 %5569, %v2880_v44   ;;  %v5356_v11 = vpop.f32.mrb[72].mxu0  ;;  %v7382_v12 = vpop.f32.mrb[65].mxu1 }
 0x173   :  { %v4513_v10 = vrot.slane %v4512_v2, 1  ;;  %v4518_v21 = vadd.f32 %v4517_v13, %v4253_v1  ;;  %v4254_v28 = vmul.f32 %v6865_v3, %v2462_v38  ;;  %v1658_v35 = vpop.f32.mrb[73].mxu0  ;;  %v1667_v41 = vadd.f32 %v7196_v48, %v5356_v11  ;;  %v7391_v3 = vpop.f32.mrb[66].mxu1 }
 0x174   :  { %v1659_v36 = vadd.f32 %v7196_v48, %v1658_v35  ;;  %v5357_v1 = vpop.f32.mrb[74].mxu0  ;;  %v4256_v38 = vmul.f32 %v6886_v57, %v2464_v30 }
 0x175   :  { %v7386_v44 = vpop.permute.xlu1 %3522  ;;  %v7388_v33 = vpop.permute.xlu0 %3517  ;;  %v4514_v9 = vadd.f32 %v4513_v10, %v4512_v2  ;;  %v4519_v17 = vadd.f32 %v4518_v21, %v4254_v28  ;;  %v2467_v21 = vmax.f32 %v1667_v41, 0.0 }
 0x176   :  { %4067 = vperm.xlu1 %5570, %v2881_v46   ;;  %3752 = vperm.xlu0 %5569, %v2818_v40   ;;  %v2465_v4 = vmax.f32 %v1659_v36, 0.0  ;;  %v1661_v0 = vpop.f32.mrb[75].mxu0  ;;  %v7400_v2 = vpop.f32.mrb[67].mxu1  ;;  %v1670_v46 = vadd.f32 %v7196_v48, %v5357_v1 }
 0x177   :  { %v7403_v11 = vsel %vm4737_vm2, %v4477_v42, %v4514_v9  ;;  %v4520_v13 = vadd.f32 %v4519_v17, %v4255_v51  ;;  %v1662_v57 = vadd.f32 %v7196_v48, %v1661_v0  ;;  %v2851_v42 = vld [vmem:[%s8319_s3 + $0x650] sm:$0xff]  ;;  %v2882_v51 = vld [vmem:[%s8319_s3 + $0x748] sm:$0xff]  ;;  %v7418_v9 = vpop.f32.mrb[68].mxu1 }
 0x178   :  { %v4257_v30 = vmul.f32 %v6909_v37, %v2465_v4  ;;  %8439 = vst [vmem:[#allocation83_spill] sm:$0xff] %v7418_v9  ;;  %v2468_v17 = vmax.f32 %v1670_v46, 0.0 }
 0x179   :  { %v7408_v40 = vpop.permute.xlu1 %3532  ;;  %v7410_v10 = vpop.permute.xlu0 %3527  ;;  %v4521_v28 = vadd.f32 %v4520_v13, %v4256_v38  ;;  %v2466_v35 = vmax.f32 %v1662_v57, 0.0 }
 0x17a   :  { %8438 = vst [vmem:[#allocation82_spill] sm:$0xff] %v7408_v40  ;;  %3757 = vperm.xlu1 %5570, %v2819_v27   ;;  %3912 = vperm.xlu0 %5569, %v2850_v31   ;;  %v5360_v36 = vpop.f32.mrb[76].mxu0  ;;  %v7421_v38 = vpop.f32.mrb[69].mxu1  ;;  %v4259_v31 = vmul.f32 %v6928_v26, %v2467_v21  ;;  %v4260_v26 = vmul.f32 %v6926_v43, %v2468_v17  ;;  %v2821_v43 = vld [vmem:[%s8319_s3 + $0x560] sm:$0xff] }
 0x17b   :  { %v4522_v37 = vadd.f32 %v4521_v28, %v4257_v30  ;;  %v4258_v1 = vmul.f32 %v6907_v47, %v2466_v35  ;;  %v1674_v41 = vpop.f32.mrb[77].mxu0  ;;  %v1683_v57 = vadd.f32 %v7196_v48, %v5360_v36  ;;  %v7430_v46 = vpop.f32.mrb[70].mxu1  ;;  %v2883_v28 = vld [vmem:[%s8319_s3 + $0x750] sm:$0xff]  ;;  %v2820_v35 = vld [vmem:[%s8319_s3 + $0x558] sm:$0xff] }
 0x17c   :  { %v1675_v4 = vadd.f32 %v7196_v48, %v1674_v41  ;;  %v5361_v40 = vpop.f32.mrb[78].mxu0  ;;  %8441 = vst [vmem:[#allocation85_spill] sm:$0xff] %v7430_v46  ;;  %v7438_v41 = vpop.f32.mrb[71].mxu1 }
 0x17d   :  { %v7424_v0 = vpop.permute.xlu1 %3542  ;;  %v7426_v27 = vpop.permute.xlu0 %3537  ;;  %v4523_v13 = vadd.f32 %v4522_v37, %v4258_v1  ;;  %8442 = vst [vmem:[#allocation86_spill] sm:$0xff] %v7438_v41  ;;  %v1686_v36 = vadd.f32 %v7196_v48, %v5361_v40  ;;  %v2852_v40 = vld [vmem:[%s8319_s3 + $0x658] sm:$0xff] }
 0x17e   :  { %8440 = vst [vmem:[#allocation84_spill] sm:$0xff] %v7424_v0  ;;  %3917 = vperm.xlu1 %5570, %v2851_v42   ;;  %4072 = vperm.xlu0 %5569, %v2882_v51   ;;  %v2469_v47 = vmax.f32 %v1675_v4, 0.0  ;;  %v1677_v30 = vpop.f32.mrb[79].mxu0  ;;  %v2471_v4 = vmax.f32 %v1683_v57, 0.0  ;;  %v7454_v17 = vpop.f32.mrb[72].mxu1 }
 0x17f   :  { %v4524_v21 = vadd.f32 %v4523_v13, %v4259_v31  ;;  %v1678_v42 = vadd.f32 %v7196_v48, %v1677_v30  ;;  %8443 = vst [vmem:[#allocation87_spill] sm:$0xff] %v7454_v17  ;;  %v2472_v31 = vmax.f32 %v1686_v36, 0.0  ;;  %v2853_v36 = vld [vmem:[%s8319_s3 + $0x660] sm:$0xff] }
 0x180   :  { %v4261_v51 = vmul.f32 %v6953_v29, %v2469_v47  ;;  %v7457_v47 = vpop.f32.mrb[73].mxu1 }
 0x181   :  { %v7444_v37 = vpop.permute.xlu1 %3552  ;;  %v7446_v1 = vpop.permute.xlu0 %3547  ;;  %v4525_v46 = vadd.f32 %v4524_v21, %v4260_v26  ;;  %v2470_v9 = vmax.f32 %v1678_v42, 0.0  ;;  %8444 = vst [vmem:[#allocation88_spill] sm:$0xff] %v7457_v47  ;;  %v4263_v26 = vmul.f32 %v6969_v50, %v2471_v4  ;;  %v4264_v50 = vmul.f32 %v6967_v8, %v2472_v31  ;;  %v2885_v8 = vld [vmem:[%s8319_s3 + $0x760] sm:$0xff] }
 0x182   :  { %4077 = vperm.xlu1 %5570, %v2883_v28   ;;  %3762 = vperm.xlu0 %5569, %v2820_v35   ;;  %v5364_v0 = vpop.f32.mrb[80].mxu0 }
 0x183   :  { %v4526_v29 = vadd.f32 %v4525_v46, %v4261_v51  ;;  %v4262_v13 = vmul.f32 %v6951_v62, %v2470_v9  ;;  %v1690_v57 = vpop.f32.mrb[81].mxu0  ;;  %v1699_v42 = vadd.f32 %v7196_v48, %v5364_v0  ;;  %v7466_v46 = vpop.f32.mrb[74].mxu1  ;;  %v2884_v51 = vld [vmem:[%s8319_s3 + $0x758] sm:$0xff] }
 0x184   :  { %v1691_v30 = vadd.f32 %v7196_v48, %v1690_v57  ;;  %v5365_v41 = vpop.f32.mrb[82].mxu0  ;;  %8446 = vst [vmem:[#allocation90_spill] sm:$0xff] %v7466_v46  ;;  %v7474_v57 = vpop.f32.mrb[75].mxu1 }
 0x185   :  { %v7460_v28 = vpop.permute.xlu1 %3562  ;;  %v7462_v35 = vpop.permute.xlu0 %3557  ;;  %v4527_v21 = vadd.f32 %v4526_v29, %v4262_v13  ;;  %8447 = vst [vmem:[#allocation91_spill] sm:$0xff] %v7474_v57  ;;  %v1702_v4 = vadd.f32 %v7196_v48, %v5365_v41  ;;  %v2822_v41 = vld [vmem:[%s8319_s3 + $0x568] sm:$0xff] }
 0x186   :  { %8445 = vst [vmem:[#allocation89_spill] sm:$0xff] %v7460_v28  ;;  %3767 = vperm.xlu1 %5570, %v2821_v43   ;;  %3922 = vperm.xlu0 %5569, %v2852_v40   ;;  %v2473_v62 = vmax.f32 %v1691_v30, 0.0  ;;  %v1693_v9 = vpop.f32.mrb[83].mxu0  ;;  %v2475_v30 = vmax.f32 %v1699_v42, 0.0  ;;  %v7490_v31 = vpop.f32.mrb[76].mxu1 }
 0x187   :  { %v4528_v0 = vadd.f32 %v4527_v21, %v4263_v26  ;;  %v1694_v43 = vadd.f32 %v7196_v48, %v1693_v9  ;;  %8450 = vst [vmem:[#allocation94_spill] sm:$0xff] %v7490_v31  ;;  %v2476_v26 = vmax.f32 %v1702_v4, 0.0  ;;  %v2823_v4 = vld [vmem:[%s8319_s3 + $0x570] sm:$0xff] }
 0x188   :  { %v4265_v40 = vmul.f32 %v6989_v14, %v2473_v62  ;;  %v7493_v62 = vpop.f32.mrb[77].mxu1 }
 0x189   :  { %v7480_v29 = vpop.permute.xlu1 %3572  ;;  %v7482_v13 = vpop.permute.xlu0 %3567  ;;  %v4529_v46 = vadd.f32 %v4528_v0, %v4264_v50  ;;  %v2474_v17 = vmax.f32 %v1694_v43, 0.0  ;;  %8451 = vst [vmem:[#allocation95_spill] sm:$0xff] %v7493_v62  ;;  %v4267_v50 = vmul.f32 %v7009_v24, %v2475_v30  ;;  %v4268_v24 = vmul.f32 %v7007_v63, %v2476_v26  ;;  %v2855_v63 = vld [vmem:[%s8319_s3 + $0x670] sm:$0xff] }
 0x18a   :  { %8448 = vst [vmem:[#allocation92_spill] sm:$0xff] %v7480_v29  ;;  %8449 = vst [vmem:[#allocation93_spill] sm:$0xff] %v7482_v13  ;;  %3927 = vperm.xlu1 %5570, %v2853_v36   ;;  %4082 = vperm.xlu0 %5569, %v2884_v51   ;;  %v5368_v47 = vpop.f32.mrb[84].mxu0  ;;  %v8520_v13 = vld [vmem:[#allocation47_spill] sm:$0xff] }
 0x18b   :  { %v4530_v14 = vadd.f32 %v4529_v46, %v4265_v40  ;;  %v4266_v21 = vmul.f32 %v6987_v61, %v2474_v17  ;;  %v1706_v42 = vpop.f32.mrb[85].mxu0  ;;  %v1715_v43 = vadd.f32 %v7196_v48, %v5368_v47  ;;  %v7502_v46 = vpop.f32.mrb[78].mxu1  ;;  %v2854_v40 = vld [vmem:[%s8319_s3 + $0x668] sm:$0xff] }
 0x18c   :  { %v1707_v9 = vadd.f32 %v7196_v48, %v1706_v42  ;;  %v5369_v57 = vpop.f32.mrb[86].mxu0  ;;  %8454 = vst [vmem:[#allocation98_spill] sm:$0xff] %v7502_v46  ;;  %v7510_v42 = vpop.f32.mrb[79].mxu1 }
 0x18d   :  { %v7496_v36 = vpop.permute.xlu1 %3582  ;;  %v7498_v51 = vpop.permute.xlu0 %3577  ;;  %v4531_v0 = vadd.f32 %v4530_v14, %v4266_v21  ;;  %8455 = vst [vmem:[#allocation99_spill] sm:$0xff] %v7510_v42  ;;  %v1718_v30 = vadd.f32 %v7196_v48, %v5369_v57  ;;  %v2886_v57 = vld [vmem:[%s8319_s3 + $0x768] sm:$0xff] }
 0x18e   :  { %8452 = vst [vmem:[#allocation96_spill] sm:$0xff] %v7496_v36  ;;  %8453 = vst [vmem:[#allocation97_spill] sm:$0xff] %v7498_v51  ;;  %4087 = vperm.xlu1 %5570, %v2885_v8   ;;  %3772 = vperm.xlu0 %5569, %v2822_v41   ;;  %v2477_v61 = vmax.f32 %v1707_v9, 0.0  ;;  %v1709_v17 = vpop.f32.mrb[87].mxu0  ;;  %v2479_v9 = vmax.f32 %v1715_v43, 0.0  ;;  %v7526_v26 = vpop.f32.mrb[80].mxu1 }
 0x18f   :  { %v4532_v47 = vadd.f32 %v4531_v0, %v4267_v50  ;;  %v1710_v8 = vadd.f32 %v7196_v48, %v1709_v17  ;;  %8458 = vst [vmem:[#allocation102_spill] sm:$0xff] %v7526_v26  ;;  %v2480_v50 = vmax.f32 %v1718_v30, 0.0  ;;  %v8505_v36 = vld [vmem:[#allocation43_spill] sm:$0xff] }
 0x190   :  { %v4269_v41 = vmul.f32 %v7029_v34, %v2477_v61  ;;  %v7529_v61 = vpop.f32.mrb[81].mxu1 }
 0x191   :  { %v7516_v14 = vpop.permute.xlu1 %3592  ;;  %v7518_v21 = vpop.permute.xlu0 %3587  ;;  %v4533_v46 = vadd.f32 %v4532_v47, %v4268_v24  ;;  %v2478_v31 = vmax.f32 %v1710_v8, 0.0  ;;  %8459 = vst [vmem:[#allocation103_spill] sm:$0xff] %v7529_v61  ;;  %v4271_v24 = vmul.f32 %v7048_v49, %v2479_v9  ;;  %v2824_v49 = vld [vmem:[%s8319_s3 + $0x578] sm:$0xff]  ;;  %v4272_v9 = vmul.f32 %v7046_v23, %v2480_v50 }
 0x192   :  { %8456 = vst [vmem:[#allocation100_spill] sm:$0xff] %v7516_v14  ;;  %8457 = vst [vmem:[#allocation101_spill] sm:$0xff] %v7518_v21  ;;  %3777 = vperm.xlu1 %5570, %v2823_v4   ;;  %3932 = vperm.xlu0 %5569, %v2854_v40   ;;  %v5372_v62 = vpop.f32.mrb[88].mxu0  ;;  %v8504_v21 = vld [vmem:[#allocation41_spill] sm:$0xff] }
 0x193   :  { %v4534_v34 = vadd.f32 %v4533_v46, %v4269_v41  ;;  %v4270_v0 = vmul.f32 %v7027_v20, %v2478_v31  ;;  %v1722_v43 = vpop.f32.mrb[89].mxu0  ;;  %v1731_v8 = vadd.f32 %v7196_v48, %v5372_v62  ;;  %v7538_v46 = vpop.f32.mrb[82].mxu1  ;;  %v5705_v20 = vld [vmem:[%s8323_s4 + $0x18] sm:$0xff]   ;;  %v2887_v41 = vld [vmem:[%s8319_s3 + $0x770] sm:$0xff] }
 0x194   :  { %v1723_v17 = vadd.f32 %v7196_v48, %v1722_v43  ;;  %v5373_v42 = vpop.f32.mrb[90].mxu0  ;;  %8462 = vst [vmem:[#allocation106_spill] sm:$0xff] %v7538_v46  ;;  %v7549_v62 = vpop.f32.mrb[83].mxu1  ;;  %5545 = vmatpush3.bf16.msra.mxu1 %v5705_v20 }
 0x195   :  { %v7532_v4 = vpop.permute.xlu1 %3602  ;;  %v7534_v40 = vpop.permute.xlu0 %3597  ;;  %v4535_v47 = vadd.f32 %v4534_v34, %v4270_v0  ;;  %8463 = vst [vmem:[#allocation107_spill] sm:$0xff] %v7549_v62  ;;  %v5706_v0 = vld [vmem:[%s8323_s4 + $0x20] sm:$0xff]   ;;  %5546 = vmatprep.subr.bf16.mxu1 %v8393_v39  ;;  %v2483_v26 = vmax.f32 %v1731_v8, 0.0 }
 0x196   :  { %8460 = vst [vmem:[#allocation104_spill] sm:$0xff] %v7532_v4  ;;  %8461 = vst [vmem:[#allocation105_spill] sm:$0xff] %v7534_v40  ;;  %3937 = vperm.xlu1 %5570, %v2855_v63   ;;  %4092 = vperm.xlu0 %5569, %v2886_v57   ;;  %v2481_v31 = vmax.f32 %v1723_v17, 0.0  ;;  %v1725_v30 = vpop.f32.mrb[91].mxu0  ;;  %v1734_v57 = vadd.f32 %v7196_v48, %v5373_v42 }
 0x197   :  { %v4536_v63 = vadd.f32 %v4535_v47, %v4271_v24  ;;  %v1726_v34 = vadd.f32 %v7196_v48, %v1725_v30  ;;  %v2825_v24 = vld [vmem:[%s8319_s3 + $0x580] sm:$0xff]  ;;  %v7569_v47 = vpop.f32.mrb[84].mxu1 }
 0x198   :  { %v4273_v43 = vmul.f32 %v7068_v55, %v2481_v31  ;;  %v2856_v55 = vld [vmem:[%s8319_s3 + $0x678] sm:$0xff]  ;;  %8466 = vst [vmem:[#allocation110_spill] sm:$0xff] %v7569_v47  ;;  %v2484_v31 = vmax.f32 %v1734_v57, 0.0  ;;  %5547 = vmatpush3.bf16.msra.mxu1 %v5706_v0 }
 0x199   :  { %v7558_v17 = vpop.permute.xlu1 %3612  ;;  %v7560_v46 = vpop.permute.xlu0 %3607  ;;  %v4537_v23 = vadd.f32 %v4536_v63, %v4272_v9  ;;  %v2482_v50 = vmax.f32 %v1726_v34, 0.0  ;;  %5548 = vmatprep.subr.bf16.mxu1 %v8393_v39  ;;  %v4275_v34 = vmul.f32 %v7084_v25, %v2483_v26  ;;  %v2888_v25 = vld [vmem:[%s8319_s3 + $0x778] sm:$0xff] }
 0x19a   :  { %8464 = vst [vmem:[#allocation108_spill] sm:$0xff] %v7558_v17  ;;  %8465 = vst [vmem:[#allocation109_spill] sm:$0xff] %v7560_v46  ;;  %4097 = vperm.xlu1 %5570, %v2887_v41   ;;  %3782 = vperm.xlu0 %5569, %v2824_v49   ;;  %v5376_v42 = vpop.f32.mrb[92].mxu0  ;;  %v7572_v9 = vpop.f32.mrb[85].mxu1  ;;  %v8493_v46 = vld [vmem:[#allocation15_spill] sm:$0xff] }
 0x19b   :  { %v4538_v20 = vadd.f32 %v4537_v23, %v4273_v43  ;;  %v4274_v30 = vmul.f32 %v7066_v7, %v2482_v50  ;;  %v1738_v8 = vpop.f32.mrb[93].mxu0  ;;  %8467 = vst [vmem:[#allocation111_spill] sm:$0xff] %v7572_v9  ;;  %v1747_v43 = vadd.f32 %v7196_v48, %v5376_v42  ;;  %v7582_v7 = vpop.f32.mrb[86].mxu1  ;;  %v4276_v42 = vmul.f32 %v7082_v16, %v2484_v31  ;;  %v2889_v16 = vld [vmem:[%s8319_s3 + $0x780] sm:$0xff] }
 0x19c   :  { %v1739_v41 = vadd.f32 %v7196_v48, %v1738_v8  ;;  %v5377_v57 = vpop.f32.mrb[94].mxu0  ;;  %8470 = vst [vmem:[#allocation114_spill] sm:$0xff] %v7582_v7  ;;  %v2857_v8 = vld [vmem:[%s8319_s3 + $0x680] sm:$0xff]  ;;  %v7591_v26 = vpop.f32.mrb[87].mxu1  ;;  %v7674_v4 = vadd.f32 %v7196_v48, %v8493_v46  ;;  %v8497_v46 = vld [vmem:[#allocation5_spill] sm:$0xff] }
 0x19d   :  { %v7575_v49 = vpop.permute.xlu1 %3622  ;;  %v7577_v63 = vpop.permute.xlu0 %3617  ;;  %v4539_v62 = vadd.f32 %v4538_v20, %v4274_v30  ;;  %v1750_v0 = vadd.f32 %v7196_v48, %v5377_v57  ;;  %8471 = vst [vmem:[#allocation115_spill] sm:$0xff] %v7591_v26  ;;  %v2487_v57 = vmax.f32 %v1747_v43, 0.0 }
 0x19e   :  { %8468 = vst [vmem:[#allocation112_spill] sm:$0xff] %v7575_v49  ;;  %8469 = vst [vmem:[#allocation113_spill] sm:$0xff] %v7577_v63  ;;  %3787 = vperm.xlu1 %5570, %v2825_v24   ;;  %3942 = vperm.xlu0 %5569, %v2856_v55   ;;  %v2485_v23 = vmax.f32 %v1739_v41, 0.0  ;;  %v1741_v50 = vpop.f32.mrb[95].mxu0 }
 0x19f   :  { %v4540_v24 = vadd.f32 %v4539_v62, %v4275_v34  ;;  %v1742_v55 = vadd.f32 %v7196_v48, %v1741_v50  ;;  %v2488_v9 = vmax.f32 %v1750_v0, 0.0  ;;  %v2826_v62 = vld [vmem:[%s8319_s3 + $0x588] sm:$0xff] }
 0x1a0   :  { %v4277_v20 = vmul.f32 %v7104_v54, %v2485_v23  ;;  %v7606_v54 = vpop.f32.mrb[88].mxu1 }
 0x1a1   :  { %v7596_v30 = vpop.permute.xlu1 %3632  ;;  %v7598_v41 = vpop.permute.xlu0 %3627  ;;  %v4541_v7 = vadd.f32 %v4540_v24, %v4276_v42  ;;  %v2486_v47 = vmax.f32 %v1742_v55, 0.0  ;;  %8474 = vst [vmem:[#allocation118_spill] sm:$0xff] %v7606_v54  ;;  %v8478_v42 = vld [vmem:[#allocation54_spill] sm:$0xff] }
 0x1a2   :  { %8472 = vst [vmem:[#allocation116_spill] sm:$0xff] %v7596_v30  ;;  %8473 = vst [vmem:[#allocation117_spill] sm:$0xff] %v7598_v41  ;;  %3947 = vperm.xlu1 %5570, %v2857_v8   ;;  %4102 = vperm.xlu0 %5569, %v2888_v25   ;;  %v5380_v61 = vpop.f32.mrb[96].mxu0  ;;  %v7609_v23 = vpop.f32.mrb[89].mxu1  ;;  %v4279_v24 = vmul.f32 %v8478_v42, %v2487_v57 }
 0x1a3   :  { %v4542_v31 = vadd.f32 %v4541_v7, %v4277_v20  ;;  %v4278_v34 = vmul.f32 %v7102_v6, %v2486_v47  ;;  %v1754_v43 = vpop.f32.mrb[97].mxu0  ;;  %8475 = vst [vmem:[#allocation119_spill] sm:$0xff] %v7609_v23  ;;  %v1763_v50 = vadd.f32 %v7196_v48, %v5380_v61  ;;  %v7618_v7 = vpop.f32.mrb[90].mxu1  ;;  %v8480_v6 = vld [vmem:[#allocation53_spill] sm:$0xff]  ;;  %v2827_v61 = vld [vmem:[%s8319_s3 + $0x590] sm:$0xff] }
 0x1a4   :  { %v1755_v0 = vadd.f32 %v7196_v48, %v1754_v43  ;;  %v5381_v26 = vpop.f32.mrb[98].mxu0  ;;  %8479 = vst [vmem:[#allocation54_spill] sm:$0xff] %v7618_v7  ;;  %v4280_v47 = vmul.f32 %v8480_v6, %v2488_v9  ;;  %v2858_v43 = vld [vmem:[%s8319_s3 + $0x688] sm:$0xff]  ;;  %v7627_v54 = vpop.f32.mrb[91].mxu1 }
 0x1a5   :  { %v7613_v8 = vpop.permute.xlu1 %3642  ;;  %v7615_v25 = vpop.permute.xlu0 %3637  ;;  %v4543_v55 = vadd.f32 %v4542_v31, %v4278_v34  ;;  %8481 = vst [vmem:[#allocation53_spill] sm:$0xff] %v7627_v54  ;;  %v2491_v34 = vmax.f32 %v1763_v50, 0.0  ;;  %v2859_v54 = vld [vmem:[%s8319_s3 + $0x690] sm:$0xff] }
 0x1a6   :  { %8476 = vst [vmem:[#allocation120_spill] sm:$0xff] %v7613_v8  ;;  %8477 = vst [vmem:[#allocation121_spill] sm:$0xff] %v7615_v25  ;;  %4107 = vperm.xlu1 %5570, %v2889_v16   ;;  %3792 = vperm.xlu0 %5569, %v2826_v62   ;;  %v1757_v20 = vpop.f32.mrb[99].mxu0  ;;  %v2489_v31 = vmax.f32 %v1755_v0, 0.0  ;;  %v1766_v16 = vadd.f32 %v7196_v48, %v5381_v26  ;;  %v2890_v26 = vld [vmem:[%s8319_s3 + $0x788] sm:$0xff]  ;;  %v7641_v0 = vpop.f32.mrb[92].mxu1 }
 0x1a7   :  { %v4544_v57 = vadd.f32 %v4543_v55, %v4279_v24  ;;  %v1758_v62 = vadd.f32 %v7196_v48, %v1757_v20  ;;  %v8484_v24 = vld [vmem:[#allocation4_spill] sm:$0xff] }
 0x1a8   :  { %v4281_v55 = vmul.f32 %v8484_v24, %v2489_v31  ;;  %v2492_v20 = vmax.f32 %v1766_v16, 0.0  ;;  %v8489_v24 = vld [vmem:[#allocation58_spill] sm:$0xff] }
 0x1a9   :  { %v7631_v42 = vpop.permute.xlu1 %3652  ;;  %v7633_v9 = vpop.permute.xlu0 %3647  ;;  %v4545_v6 = vadd.f32 %v4544_v57, %v4280_v47  ;;  %v2490_v7 = vmax.f32 %v1758_v62, 0.0 }
 0x1aa   :  { %8482 = vst [vmem:[#allocation122_spill] sm:$0xff] %v7631_v42  ;;  %8483 = vst [vmem:[#allocation123_spill] sm:$0xff] %v7633_v9  ;;  %3797 = vperm.xlu1 %5570, %v2827_v61   ;;  %3952 = vperm.xlu0 %5569, %v2858_v43   ;;  %v5384_v23 = vpop.f32.mrb[100].mxu0  ;;  %v8485_v42 = vld [vmem:[#allocation2_spill] sm:$0xff]  ;;  %v7645_v61 = vpop.f32.mrb[93].mxu1  ;;  %v8486_v43 = vld [vmem:[#allocation59_spill] sm:$0xff] }
 0x1ab   :  { %v4546_v50 = vrot.slane %v4545_v6, 4  ;;  %v4282_v47 = vmul.f32 %v8485_v42, %v2490_v7  ;;  %v1770_v57 = vpop.f32.mrb[101].mxu0  ;;  %v4283_v62 = vmul.f32 %v8486_v43, %v2491_v34  ;;  %v1779_v49 = vadd.f32 %v7196_v48, %v5384_v23  ;;  %v7654_v31 = vpop.f32.mrb[94].mxu1  ;;  %v2891_v34 = vld [vmem:[%s8319_s3 + $0x790] sm:$0xff] }
 0x1ac   :  { %v1771_v9 = vadd.f32 %v7196_v48, %v1770_v57  ;;  %v5385_v63 = vpop.f32.mrb[102].mxu0 }
 0x1ad   :  { %v7649_v8 = vpop.permute.xlu1 %3662  ;;  %v7651_v25 = vpop.permute.xlu0 %3657  ;;  %v4547_v30 = vadd.f32 %v4546_v50, %v4545_v6  ;;  %v4552_v41 = vadd.f32 %v4282_v47, %v4281_v55  ;;  %v1782_v16 = vadd.f32 %v7196_v48, %v5385_v63  ;;  %v2828_v6 = vld [vmem:[%s8319_s3 + $0x598] sm:$0xff] }
 0x1ae   :  { %8487 = vst [vmem:[#allocation4_spill] sm:$0xff] %v7649_v8  ;;  %8488 = vst [vmem:[#allocation2_spill] sm:$0xff] %v7651_v25  ;;  %3957 = vperm.xlu1 %5570, %v2859_v54   ;;  %4112 = vperm.xlu0 %5569, %v2890_v26   ;;  %v2493_v7 = vmax.f32 %v1771_v9, 0.0  ;;  %v1773_v42 = vpop.f32.mrb[103].mxu0  ;;  %v7663_v50 = vpop.f32.mrb[95].mxu1  ;;  %v4284_v54 = vmul.f32 %v8489_v24, %v2492_v20  ;;  %v8490_v9 = vld [vmem:[#allocation8_spill] sm:$0xff] }
 0x1af   :  { %v4548_v23 = vrot.slane %v4547_v30, 2  ;;  %v4553_v26 = vadd.f32 %v4552_v41, %v4283_v62  ;;  %v1774_v55 = vadd.f32 %v7196_v48, %v1773_v42  ;;  %v2495_v8 = vmax.f32 %v1779_v49, 0.0  ;;  %8494 = vst [vmem:[#allocation8_spill] sm:$0xff] %v7674_v4  ;;  %v2829_v62 = vld [vmem:[%s8319_s3 + $0x5a0] sm:$0xff]  ;;  %v8495_v49 = vld [vmem:[#allocation16_spill] sm:$0xff] }
 0x1b0   :  { %v4285_v47 = vmul.f32 %v8490_v9, %v2493_v7  ;;  %v2496_v20 = vmax.f32 %v1782_v16, 0.0  ;;  %v2860_v7 = vld [vmem:[%s8319_s3 + $0x698] sm:$0xff]  ;;  %v7686_v42 = vadd.f32 %v7196_v48, %v8495_v49 }
 0x1b1   :  { %v7668_v63 = vpop.permute.xlu1 %3672  ;;  %v7670_v57 = vpop.permute.xlu0 %3667  ;;  %v4549_v43 = vadd.f32 %v4548_v23, %v4547_v30  ;;  %v4554_v25 = vadd.f32 %v4553_v26, %v4284_v54  ;;  %v2494_v17 = vmax.f32 %v1774_v55, 0.0  ;;  %v8498_v54 = vld [vmem:[#allocation17_spill] sm:$0xff]  ;;  %v8500_v55 = vld [vmem:[#allocation39_spill] sm:$0xff] }
 0x1b2   :  { %8491 = vst [vmem:[#allocation59_spill] sm:$0xff] %v7668_v63  ;;  %8492 = vst [vmem:[#allocation58_spill] sm:$0xff] %v7670_v57  ;;  %4117 = vperm.xlu1 %5570, %v2891_v34   ;;  %3802 = vperm.xlu0 %5569, %v2828_v6   ;;  %v5388_v41 = vpop.f32.mrb[104].mxu0  ;;  %v7682_v30 = vpop.f32.mrb[96].mxu1  ;;  %v7693_v26 = vadd.f32 %v7196_v48, %v8498_v54  ;;  %v7697_v9 = vadd.f32 %v7196_v48, %v8500_v55 }
 0x1b3   :  { %8496 = vst [vmem:[#allocation15_spill] sm:$0xff] %v7686_v42  ;;  %v4550_v34 = vrot.slane %v4549_v43, 1  ;;  %v4555_v6 = vadd.f32 %v4554_v25, %v4285_v47  ;;  %v4286_v23 = vmul.f32 %v8497_v46, %v2494_v17  ;;  %v1786_v16 = vpop.f32.mrb[105].mxu0  ;;  %v7689_v24 = vpop.f32.mrb[97].mxu1  ;;  %v1795_v63 = vadd.f32 %v7196_v48, %v5388_v41  ;;  %v8503_v47 = vld [vmem:[#allocation63_spill] sm:$0xff] }
 0x1b4   :  { %8499 = vst [vmem:[#allocation16_spill] sm:$0xff] %v7693_v26  ;;  %v1787_v49 = vadd.f32 %v7196_v48, %v1786_v16  ;;  %v4287_v46 = vmul.f32 %v8503_v47, %v2495_v8  ;;  %v5389_v14 = vpop.f32.mrb[106].mxu0  ;;  %v7706_v54 = vpop.f32.mrb[98].mxu1  ;;  %v2006_v55 = vadd.f32 %v7196_v48, %v8504_v21  ;;  %v7712_v41 = vadd.f32 %v7196_v48, %v8505_v36  ;;  %v8506_v16 = vld [vmem:[#allocation62_spill] sm:$0xff] }
 0x1b5   :  { %v7701_v57 = vpop.permute.xlu1 %3682  ;;  %v7703_v25 = vpop.permute.xlu0 %3677  ;;  %v4551_v17 = vadd.f32 %v4550_v34, %v4549_v43  ;;  %v4556_v40 = vadd.f32 %v4555_v6, %v4286_v23  ;;  %v2861_v8 = vld [vmem:[%s8319_s3 + $0x6a0] sm:$0xff]  ;;  %v2892_v43 = vld [vmem:[%s8319_s3 + $0x798] sm:$0xff]  ;;  %v5707_v34 = vld [vmem:[%s8323_s4 + $0x28] sm:$0xff]   ;;  %v2551_v6 = vmax.f32 %v7697_v9, 0.0 }
 0x1b6   :  { %8501 = vst [vmem:[#allocation5_spill] sm:$0xff] %v7701_v57  ;;  %8502 = vst [vmem:[#allocation17_spill] sm:$0xff] %v7703_v25  ;;  %3807 = vperm.xlu1 %5570, %v2829_v62   ;;  %3962 = vperm.xlu0 %5569, %v2860_v7   ;;  %v4288_v57 = vmul.f32 %v8506_v16, %v2496_v20  ;;  %v2497_v51 = vmax.f32 %v1787_v49, 0.0  ;;  %v1789_v25 = vpop.f32.mrb[107].mxu0  ;;  %v7721_v62 = vpop.f32.mrb[99].mxu1  ;;  %v8508_v49 = vld [vmem:[#allocation12_spill] sm:$0xff] }
 0x1b7   :  { %v7725_v21 = vsel %vm1332_vm1, %v7403_v11, %v4551_v17  ;;  %v4557_v48 = vadd.f32 %v4556_v40, %v4287_v46  ;;  %v7730_v36 = vld [vmem:[%s8322_s2] ss:$0 sm:$0xff]  ;;  %v2499_v11 = vmax.f32 %v1795_v63, 0.0  ;;  %v2552_v4 = vmax.f32 %v2006_v55, 0.0  ;;  %v2830_v46 = vld [vmem:[%s8319_s3 + $0x5a8] sm:$0xff]  ;;  %5549 = vmatpush3.bf16.msra.mxu1 %v5707_v34  ;;  %v8514_v55 = vld [vmem:[#allocation9_spill] sm:$0xff] }
 0x1b8   :  { %8507 = vst [vmem:[#allocation39_spill] sm:$0xff] %v7725_v21  ;;  %v1798_v20 = vadd.f32 %v7730_v36, %v5389_v14  ;;  %v1790_v7 = vadd.f32 %v7730_v36, %v1789_v25  ;;  %v4289_v40 = vmul.f32 %v8508_v49, %v2497_v51  ;;  %v8511_v14 = vld [vmem:[#allocation44_spill] sm:$0xff]  ;;  %v8512_v23 = vld [vmem:[#allocation46_spill] sm:$0xff]  ;;  %5550 = vmatprep.subr.bf16.mxu1 %v8393_v39 }
 0x1b9   :  { %v7740_v17 = vpop.permute.xlu1 %3692  ;;  %v7742_v47 = vpop.permute.xlu0 %3687  ;;  %v2011_v25 = vadd.f32 %v7730_v36, %v8511_v14  ;;  %v4558_v16 = vadd.f32 %v4557_v48, %v4288_v57  ;;  %v2014_v63 = vadd.f32 %v7730_v36, %v8512_v23  ;;  %v2893_v49 = vld [vmem:[%s8319_s3 + $0x7a0] sm:$0xff]  ;;  %v8516_v23 = vld [vmem:[#allocation45_spill] sm:$0xff] }
 0x1ba   :  { %8509 = vst [vmem:[#allocation63_spill] sm:$0xff] %v7740_v17  ;;  %8510 = vst [vmem:[#allocation41_spill] sm:$0xff] %v7742_v47  ;;  %v2498_v21 = vmax.f32 %v1790_v7, 0.0  ;;  %3967 = vperm.xlu1 %5570, %v2861_v8   ;;  %4122 = vperm.xlu0 %5569, %v2892_v43   ;;  %v5392_v51 = vpop.f32.mrb[108].mxu0  ;;  %v7756_v14 = vpop.f32.mrb[100].mxu1  ;;  %v2500_v9 = vmax.f32 %v1798_v20, 0.0  ;;  %v2022_v17 = vadd.f32 %v7730_v36, %v8516_v23 }
 0x1bb   :  { %8513 = vst [vmem:[#allocation43_spill] sm:$0xff] %v7756_v14  ;;  %v4559_v8 = vadd.f32 %v4558_v16, %v4289_v40  ;;  %v1802_v48 = vpop.f32.mrb[109].mxu0  ;;  %v7760_v7 = vpop.f32.mrb[101].mxu1  ;;  %v4291_v47 = vmul.f32 %v7237_v56, %v2499_v11  ;;  %v1811_v26 = vadd.f32 %v7730_v36, %v5392_v51  ;;  %v2553_v40 = vmax.f32 %v2011_v25, 0.0  ;;  %v8522_v25 = vld [vmem:[#allocation48_spill] sm:$0xff] }
 0x1bc   :  { %v4290_v43 = vmul.f32 %v8514_v55, %v2498_v21  ;;  %8515 = vst [vmem:[#allocation62_spill] sm:$0xff] %v7760_v7  ;;  %v1803_v34 = vadd.f32 %v7730_v36, %v1802_v48  ;;  %v5393_v55 = vpop.f32.mrb[110].mxu0  ;;  %v7772_v29 = vpop.f32.mrb[102].mxu1  ;;  %v2554_v23 = vmax.f32 %v2014_v63, 0.0  ;;  %v7776_v56 = vadd.f32 %v7730_v36, %v8520_v13  ;;  %v8523_v13 = vld [vmem:[#allocation66_spill] sm:$0xff] }
 0x1bd   :  { %v3703_v14 = vpop.permute.xlu1 %3702  ;;  %v3698_v57 = vpop.permute.xlu0 %3697  ;;  %8519 = vst [vmem:[#allocation46_spill] sm:$0xff] %v7772_v29  ;;  %v1814_v51 = vadd.f32 %v7730_v36, %v5393_v55  ;;  %v7789_v63 = vadd.f32 %v7730_v36, %v8522_v25  ;;  %v2503_v55 = vmax.f32 %v1811_v26, 0.0 }
 0x1be   :  { %v4560_v20 = vadd.f32 %v4559_v8, %v4290_v43  ;;  %v7768_v16 = vmul.f32 %v3703_v14, %v2552_v4  ;;  %v7770_v21 = vmul.f32 %v3698_v57, %v2551_v6  ;;  %4127 = vperm.xlu1 %5570, %v2893_v49   ;;  %3812 = vperm.xlu0 %5569, %v2830_v46   ;;  %v2501_v11 = vmax.f32 %v1803_v34, 0.0  ;;  %v1805_v48 = vpop.f32.mrb[111].mxu0  ;;  %v2831_v4 = vld [vmem:[%s8319_s3 + $0x5b0] sm:$0xff]  ;;  %v2862_v6 = vld [vmem:[%s8319_s3 + $0x6a8] sm:$0xff]  ;;  %v7785_v46 = vpop.f32.mrb[103].mxu1  ;;  %v8524_v43 = vld [vmem:[#allocation50_spill] sm:$0xff] }
 0x1bf   :  { %8521 = vst [vmem:[#allocation9_spill] sm:$0xff] %v7785_v46  ;;  %v4292_v49 = vmul.f32 %v8523_v13, %v2500_v9  ;;  %v1806_v57 = vadd.f32 %v7730_v36, %v1805_v48  ;;  %v2556_v8 = vmax.f32 %v2022_v17, 0.0  ;;  %v2030_v34 = vadd.f32 %v7730_v36, %v8524_v43  ;;  %v2863_v17 = vld [vmem:[%s8319_s3 + $0x6b0] sm:$0xff]  ;;  %v7803_v26 = vpop.f32.mrb[104].mxu1  ;;  %v2832_v43 = vld [vmem:[%s8319_s3 + $0x5b8] sm:$0xff] }
 0x1c0   :  { %8517 = vst [vmem:[#allocation12_spill] sm:$0xff] %v7768_v16  ;;  %8518 = vst [vmem:[#allocation44_spill] sm:$0xff] %v7770_v21  ;;  %v4561_v14 = vadd.f32 %v4560_v20, %v4291_v47  ;;  %v4293_v16 = vmul.f32 %v7257_v45, %v2501_v11  ;;  %v2559_v9 = vmax.f32 %v7776_v56, 0.0  ;;  %v2504_v47 = vmax.f32 %v1814_v51, 0.0  ;;  %v2894_v45 = vld [vmem:[%s8319_s3 + $0x7a8] sm:$0xff]  ;;  %v7807_v48 = vpop.f32.mrb[105].mxu1 }
 0x1c1   :  { %v3713_v21 = vpop.permute.xlu1 %3712  ;;  %v3708_v29 = vpop.permute.xlu0 %3707  ;;  %v2502_v46 = vmax.f32 %v1806_v57, 0.0  ;;  %v2557_v11 = vmax.f32 %v7789_v63, 0.0  ;;  %v2139_v51 = vadd.f32 %v7730_v36, %v7346_v32  ;;  %v7824_v32 = vadd.f32 %v7730_v36, %v7364_v18  ;;  %v2865_v56 = vld [vmem:[%s8319_s3 + $0x6c0] sm:$0xff] }
 0x1c2   :  { %v4562_v42 = vadd.f32 %v4561_v14, %v4292_v49  ;;  %v4346_v28 = vmul.f32 %v3713_v21, %v2554_v23  ;;  %v4345_v7 = vmul.f32 %v3708_v29, %v2553_v40  ;;  %3817 = vperm.xlu1 %5570, %v2831_v4   ;;  %3972 = vperm.xlu0 %5569, %v2862_v6   ;;  %v5396_v20 = vpop.f32.mrb[112].mxu0  ;;  %v2558_v14 = vmax.f32 %v2030_v34, 0.0 }
 0x1c3   :  { %v4294_v29 = vmul.f32 %v7255_v5, %v2502_v46  ;;  %v1818_v23 = vpop.f32.mrb[113].mxu0  ;;  %v4295_v4 = vmul.f32 %v7273_v52, %v2503_v55  ;;  %v1827_v6 = vadd.f32 %v7730_v36, %v5396_v20  ;;  %v8525_v5 = vmax.f32 %v7712_v41, 0.0  ;;  %v2895_v41 = vld [vmem:[%s8319_s3 + $0x7b0] sm:$0xff] }
 0x1c4   :  { %v4563_v21 = vadd.f32 %v4562_v42, %v4293_v16  ;;  %v4626_v40 = vadd.f32 %v4346_v28, %v4345_v7  ;;  %v1819_v25 = vadd.f32 %v7730_v36, %v1818_v23  ;;  %v5397_v7 = vpop.f32.mrb[114].mxu0  ;;  %v7816_v16 = vpop.f32.mrb[106].mxu1  ;;  %v7820_v52 = vadd.f32 %v7730_v36, %v7342_v59 }
 0x1c5   :  { %v3723_v13 = vpop.permute.xlu1 %3722  ;;  %v3718_v49 = vpop.permute.xlu0 %3717  ;;  %v4296_v46 = vmul.f32 %v7271_v19, %v2504_v47  ;;  %v1830_v20 = vadd.f32 %v7730_v36, %v5397_v7  ;;  %v2507_v19 = vmax.f32 %v1827_v6, 0.0  ;;  %v2586_v6 = vmax.f32 %v7824_v32, 0.0 }
 0x1c6   :  { %v4564_v63 = vadd.f32 %v4563_v21, %v4294_v29  ;;  %v4348_v42 = vmul.f32 %v3723_v13, %v2556_v8  ;;  %v4347_v28 = vmul.f32 %v3718_v49, %v8525_v5  ;;  %3977 = vperm.xlu1 %5570, %v2863_v17   ;;  %4132 = vperm.xlu0 %5569, %v2894_v45   ;;  %v2505_v57 = vmax.f32 %v1819_v25, 0.0  ;;  %v1821_v8 = vpop.f32.mrb[115].mxu0  ;;  %v7833_v34 = vpop.f32.mrb[107].mxu1 }
 0x1c7   :  { %v1822_v18 = vadd.f32 %v7730_v36, %v1821_v8  ;;  %v2585_v17 = vmax.f32 %v2139_v51, 0.0  ;;  %v2267_v29 = vadd.f32 %v7730_v36, %v7645_v61  ;;  %v2833_v61 = vld [vmem:[%s8319_s3 + $0x5c0] sm:$0xff]  ;;  %v7857_v32 = vadd.f32 %v7730_v36, %v7663_v50 }
 0x1c8   :  { %v4565_v59 = vadd.f32 %v4564_v63, %v4295_v4  ;;  %v4627_v55 = vadd.f32 %v4626_v40, %v4347_v28  ;;  %v4297_v47 = vmul.f32 %v7294_v22, %v2505_v57  ;;  %v8526_v40 = vld [vmem:[#allocation18_spill] sm:$0xff]  ;;  %v2508_v28 = vmax.f32 %v1830_v20, 0.0 }
 0x1c9   :  { %v3733_v45 = vpop.permute.xlu1 %3732  ;;  %v3728_v21 = vpop.permute.xlu0 %3727  ;;  %v2506_v25 = vmax.f32 %v1822_v18, 0.0  ;;  %v7842_v4 = vadd.f32 %v7730_v36, %v8526_v40  ;;  %v8527_v57 = vld [vmem:[#allocation74_spill] sm:$0xff] }
 0x1ca   :  { %v4566_v23 = vadd.f32 %v4565_v59, %v4296_v46  ;;  %v4350_v13 = vmul.f32 %v3733_v45, %v2558_v14  ;;  %v4349_v49 = vmul.f32 %v3728_v21, %v2557_v11  ;;  %4137 = vperm.xlu1 %5570, %v2895_v41   ;;  %3822 = vperm.xlu0 %5569, %v2832_v43   ;;  %v5400_v63 = vpop.f32.mrb[116].mxu0  ;;  %v2864_v11 = vld [vmem:[%s8319_s3 + $0x6b8] sm:$0xff]  ;;  %v7852_v14 = vpop.f32.mrb[108].mxu1  ;;  %v2617_v21 = vmax.f32 %v2267_v29, 0.0 }
 0x1cb   :  { %v4628_v22 = vadd.f32 %v4627_v55, %v4348_v42  ;;  %v4298_v7 = vmul.f32 %v7292_v15, %v2506_v25  ;;  %v1834_v46 = vpop.f32.mrb[117].mxu0  ;;  %v7859_v42 = vpop.f32.mrb[109].mxu1  ;;  %v4299_v8 = vmul.f32 %v8527_v57, %v2507_v19  ;;  %v1843_v43 = vadd.f32 %v7730_v36, %v5400_v63 }
 0x1cc   :  { %v4567_v5 = vadd.f32 %v4566_v23, %v4297_v47  ;;  %v1835_v59 = vadd.f32 %v7730_v36, %v1834_v46  ;;  %v5401_v45 = vpop.f32.mrb[118].mxu0  ;;  %v7866_v50 = vpop.f32.mrb[110].mxu1  ;;  %v8528_v23 = vld [vmem:[#allocation81_spill] sm:$0xff] }
 0x1cd   :  { %v4629_v41 = vadd.f32 %v4628_v22, %v4349_v49  ;;  %v3868_v55 = vpop.permute.xlu1 %3867  ;;  %v3738_v18 = vpop.permute.xlu0 %3737  ;;  %v7870_v19 = vadd.f32 %v7730_v36, %v8528_v23  ;;  %v7874_v49 = vadd.f32 %v7730_v36, %v7641_v0  ;;  %v8529_v22 = vld [vmem:[#allocation73_spill] sm:$0xff] }
 0x1ce   :  { %v4568_v47 = vadd.f32 %v4567_v5, %v4298_v7  ;;  %v4377_v20 = vmul.f32 %v3868_v55, %v2585_v17  ;;  %v4351_v15 = vmul.f32 %v3738_v18, %v2559_v9  ;;  %3827 = vperm.xlu1 %5570, %v2833_v61   ;;  %3982 = vperm.xlu0 %5569, %v2864_v11   ;;  %v2509_v25 = vmax.f32 %v1835_v59, 0.0  ;;  %v1837_v17 = vpop.f32.mrb[119].mxu0  ;;  %v2896_v9 = vld [vmem:[%s8319_s3 + $0x7b8] sm:$0xff]  ;;  %v7882_v29 = vpop.f32.mrb[111].mxu1 }
 0x1cf   :  { %v4630_v40 = vadd.f32 %v4629_v41, %v4350_v13  ;;  %v4300_v63 = vmul.f32 %v8529_v22, %v2508_v28  ;;  %v1846_v11 = vadd.f32 %v7730_v36, %v5401_v45  ;;  %v1838_v0 = vadd.f32 %v7730_v36, %v1837_v17  ;;  %v8530_v13 = vld [vmem:[#allocation78_spill] sm:$0xff]  ;;  %v8532_v22 = vld [vmem:[#allocation80_spill] sm:$0xff] }
 0x1d0   :  { %v4569_v61 = vadd.f32 %v4568_v47, %v4299_v8  ;;  %v2511_v5 = vmax.f32 %v1843_v43, 0.0  ;;  %v4301_v7 = vmul.f32 %v8530_v13, %v2509_v25  ;;  %v2618_v59 = vmax.f32 %v7857_v32, 0.0  ;;  %v2834_v32 = vld [vmem:[%s8319_s3 + $0x5c8] sm:$0xff]  ;;  %v8531_v25 = vld [vmem:[#allocation77_spill] sm:$0xff] }
 0x1d1   :  { %v7888_v46 = vadd.f32 %v4630_v40, %v4351_v15  ;;  %v4028_v57 = vpop.permute.xlu1 %4027  ;;  %v3873_v41 = vpop.permute.xlu0 %3872  ;;  %v2510_v18 = vmax.f32 %v1838_v0, 0.0  ;;  %v2588_v8 = vmax.f32 %v7870_v19, 0.0  ;;  %v7895_v43 = vadd.f32 %v7730_v36, %v7382_v12  ;;  %v2897_v15 = vld [vmem:[%s8319_s3 + $0x7c0] sm:$0xff]  ;;  %v5708_v12 = vld [vmem:[%s8323_s4 + $0x30] sm:$0xff]  }
 0x1d2   :  { %v4570_v55 = vadd.f32 %v4569_v61, %v4300_v63  ;;  %v4409_v23 = vmul.f32 %v4028_v57, %v2617_v21  ;;  %v4378_v51 = vmul.f32 %v3873_v41, %v2586_v6  ;;  %3987 = vperm.xlu1 %5570, %v2865_v56   ;;  %4142 = vperm.xlu0 %5569, %v2896_v9   ;;  %v5404_v47 = vpop.f32.mrb[120].mxu0  ;;  %v7903_v6 = vpop.f32.mrb[112].mxu1  ;;  %v2512_v21 = vmax.f32 %v1846_v11, 0.0 }
 0x1d3   :  { %v4302_v40 = vmul.f32 %v8531_v25, %v2510_v18  ;;  %v1850_v17 = vpop.f32.mrb[121].mxu0  ;;  %v7906_v56 = vpop.f32.mrb[113].mxu1  ;;  %v7913_v9 = vadd.f32 %v7730_v36, %v7379_v58  ;;  %v4303_v63 = vmul.f32 %v8532_v22, %v2511_v5  ;;  %v2278_v61 = vadd.f32 %v7730_v36, %v7654_v31  ;;  %5551 = vmatpush3.bf16.msra.mxu1 %v5708_v12 }
 0x1d4   :  { %v4571_v45 = vadd.f32 %v4570_v55, %v4301_v7  ;;  %v4663_v19 = vadd.f32 %v4378_v51, %v4377_v20  ;;  %v1851_v11 = vadd.f32 %v7730_v36, %v1850_v17  ;;  %v2619_v20 = vmax.f32 %v7874_v49, 0.0  ;;  %v5405_v55 = vpop.f32.mrb[122].mxu0  ;;  %v7922_v58 = vpop.f32.mrb[114].mxu1  ;;  %5552 = vmatprep.subr.bf16.mxu1 %v8393_v39  ;;  %v8597_v39 = vld [vmem:[#allocation36_spill] sm:$0xff] }
 0x1d5   :  { %v3878_v0 = vpop.permute.xlu1 %3877  ;;  %v4033_v51 = vpop.permute.xlu0 %4032  ;;  %v8533_v7 = vmax.f32 %v7820_v52, 0.0  ;;  %v2589_v5 = vmax.f32 %v7895_v43, 0.0  ;;  %v7927_v31 = vadd.f32 %v7730_v36, %v7400_v2  ;;  %v1859_v18 = vadd.f32 %v7730_v36, %v5404_v47  ;;  %v2835_v52 = vld [vmem:[%s8319_s3 + $0x5d0] sm:$0xff]  ;;  %v8534_v43 = vld [vmem:[#allocation79_spill] sm:$0xff] }
 0x1d6   :  { %v4572_v13 = vadd.f32 %v4571_v45, %v4302_v40  ;;  %v4410_v41 = vmul.f32 %v4033_v51, %v2618_v59  ;;  %4147 = vperm.xlu1 %5570, %v2897_v15   ;;  %3832 = vperm.xlu0 %5569, %v2834_v32   ;;  %v2513_v25 = vmax.f32 %v1851_v11, 0.0  ;;  %v1853_v49 = vpop.f32.mrb[123].mxu0  ;;  %v2866_v59 = vld [vmem:[%s8319_s3 + $0x6c8] sm:$0xff]  ;;  %v7936_v15 = vpop.f32.mrb[115].mxu1  ;;  %v4304_v32 = vmul.f32 %v8534_v43, %v2512_v21 }
 0x1d7   :  { %v4379_v57 = vmul.f32 %v3878_v0, %v8533_v7  ;;  %v1862_v17 = vadd.f32 %v7730_v36, %v5405_v55  ;;  %v1854_v22 = vadd.f32 %v7730_v36, %v1853_v49  ;;  %v2283_v51 = vadd.f32 %v7730_v36, %v7689_v24  ;;  %v2867_v24 = vld [vmem:[%s8319_s3 + $0x6d0] sm:$0xff] }
 0x1d8   :  { %v4573_v45 = vadd.f32 %v4572_v13, %v4303_v63  ;;  %v4700_v40 = vadd.f32 %v4410_v41, %v4409_v23  ;;  %v4305_v47 = vmul.f32 %v7371_v60, %v2513_v25  ;;  %v2620_v7 = vmax.f32 %v2278_v61, 0.0  ;;  %v8535_v23 = vld [vmem:[#allocation19_spill] sm:$0xff]  ;;  %v8536_v60 = vld [vmem:[#allocation49_spill] sm:$0xff] }
 0x1d9   :  { %v4664_v2 = vadd.f32 %v4663_v19, %v4379_v57  ;;  %v3883_v11 = vpop.permute.xlu1 %3882  ;;  %v4038_v0 = vpop.permute.xlu0 %4037  ;;  %v7947_v19 = vadd.f32 %v7730_v36, %v8535_v23  ;;  %v7951_v63 = vadd.f32 %v7730_v36, %v8536_v60  ;;  %v2515_v13 = vmax.f32 %v1859_v18, 0.0 }
 0x1da   :  { %v4574_v12 = vadd.f32 %v4573_v45, %v4304_v32  ;;  %v4380_v28 = vmul.f32 %v3883_v11, %v2588_v8  ;;  %v4411_v21 = vmul.f32 %v4038_v0, %v2619_v20  ;;  %3837 = vperm.xlu1 %5570, %v2835_v52   ;;  %3992 = vperm.xlu0 %5569, %v2866_v59   ;;  %v2514_v57 = vmax.f32 %v1854_v22, 0.0  ;;  %v5408_v41 = vpop.f32.mrb[124].mxu0  ;;  %v2898_v8 = vld [vmem:[%s8319_s3 + $0x7c8] sm:$0xff]  ;;  %v7960_v52 = vpop.f32.mrb[116].mxu1 }
 0x1db   :  { %v2591_v61 = vmax.f32 %v7913_v9, 0.0  ;;  %v1866_v49 = vpop.f32.mrb[125].mxu0  ;;  %v2590_v18 = vmax.f32 %v7927_v31, 0.0  ;;  %v2516_v59 = vmax.f32 %v1862_v17, 0.0  ;;  %v2621_v60 = vmax.f32 %v2283_v51, 0.0  ;;  %v2836_v51 = vld [vmem:[%s8319_s3 + $0x5d8] sm:$0xff] }
 0x1dc   :  { %v4575_v20 = vadd.f32 %v4574_v12, %v4305_v47  ;;  %v4665_v55 = vadd.f32 %v4664_v2, %v4380_v28  ;;  %v4701_v25 = vadd.f32 %v4700_v40, %v4411_v21  ;;  %v4306_v43 = vmul.f32 %v7369_v53, %v2514_v57  ;;  %v5409_v23 = vpop.f32.mrb[126].mxu0  ;;  %v7967_v2 = vpop.f32.mrb[117].mxu1  ;;  %v2900_v9 = vld [vmem:[%s8319_s3 + $0x7d8] sm:$0xff] }
 0x1dd   :  { %v1867_v32 = vadd.f32 %v7730_v36, %v1866_v49  ;;  %v3888_v45 = vpop.permute.xlu1 %3887  ;;  %v4043_v22 = vpop.permute.xlu0 %4042  ;;  %v2286_v28 = vadd.f32 %v7730_v36, %v7721_v62  ;;  %v4307_v31 = vmul.f32 %v7388_v33, %v2515_v13  ;;  %v1875_v53 = vadd.f32 %v7730_v36, %v5408_v41 }
 0x1de   :  { %v4381_v11 = vmul.f32 %v3888_v45, %v2589_v5  ;;  %v4412_v0 = vmul.f32 %v4043_v22, %v2620_v7  ;;  %3997 = vperm.xlu1 %5570, %v2867_v24   ;;  %4152 = vperm.xlu0 %5569, %v2898_v8   ;;  %v4576_v40 = vadd.f32 %v4575_v20, %v4306_v43  ;;  %v1869_v17 = vpop.f32.mrb[127].mxu0  ;;  %v2899_v5 = vld [vmem:[%s8319_s3 + $0x7d0] sm:$0xff]  ;;  %v7977_v7 = vpop.f32.mrb[118].mxu1 }
 0x1df   :  { %v2517_v47 = vmax.f32 %v1867_v32, 0.0  ;;  %v2291_v62 = vadd.f32 %v7730_v36, %v7682_v30  ;;  %v1870_v21 = vadd.f32 %v7730_v36, %v1869_v17  ;;  %v7982_v13 = vpop.f32.mrb[119].mxu1  ;;  %v4308_v57 = vmul.f32 %v7386_v44, %v2516_v59  ;;  %v8537_v30 = vld [vmem:[#allocation20_spill] sm:$0xff] }
 0x1e0   :  { %v4666_v12 = vadd.f32 %v4665_v55, %v4381_v11  ;;  %v4702_v33 = vadd.f32 %v4701_v25, %v4412_v0  ;;  %v4577_v41 = vadd.f32 %v4576_v40, %v4307_v31  ;;  %v1878_v8 = vadd.f32 %v7730_v36, %v5409_v23  ;;  %v2837_v11 = vld [vmem:[%s8319_s3 + $0x5e0] sm:$0xff] }
 0x1e1   :  { %v4309_v24 = vmul.f32 %v7410_v10, %v2517_v47  ;;  %v3893_v20 = vpop.permute.xlu1 %3892  ;;  %v4048_v49 = vpop.permute.xlu0 %4047  ;;  %v2518_v43 = vmax.f32 %v1870_v21, 0.0  ;;  %v2622_v22 = vmax.f32 %v2286_v28, 0.0  ;;  %v7989_v55 = vadd.f32 %v7730_v36, %v8537_v30  ;;  %v8538_v23 = vld [vmem:[#allocation82_spill] sm:$0xff]  ;;  %v8539_v21 = vld [vmem:[#allocation52_spill] sm:$0xff] }
 0x1e2   :  { %v4382_v32 = vmul.f32 %v3893_v20, %v2590_v18  ;;  %v4413_v45 = vmul.f32 %v4048_v49, %v2621_v60  ;;  %4157 = vperm.xlu1 %5570, %v2899_v5   ;;  %3842 = vperm.xlu0 %5569, %v2836_v51   ;;  %v7993_v44 = vadd.f32 %v7730_v36, %v7391_v3  ;;  %v2519_v25 = vmax.f32 %v1875_v53, 0.0  ;;  %v5412_v59 = vpop.f32.mrb[128].mxu0  ;;  %v2868_v18 = vld [vmem:[%s8319_s3 + $0x6d8] sm:$0xff]  ;;  %v8540_v30 = vld [vmem:[#allocation84_spill] sm:$0xff] }
 0x1e3   :  { %v4578_v10 = vadd.f32 %v4577_v41, %v4308_v57  ;;  %v2560_v0 = vmax.f32 %v7951_v63, 0.0  ;;  %v4310_v60 = vmul.f32 %v8538_v23, %v2518_v43  ;;  %v1882_v40 = vpop.f32.mrb[129].mxu0  ;;  %v2520_v47 = vmax.f32 %v1878_v8, 0.0 }
 0x1e4   :  { %v4667_v28 = vadd.f32 %v4666_v12, %v4382_v32  ;;  %v4703_v31 = vadd.f32 %v4702_v33, %v4413_v45  ;;  %v1891_v53 = vadd.f32 %v7730_v36, %v5412_v59  ;;  %v1883_v17 = vadd.f32 %v7730_v36, %v1882_v40  ;;  %v5413_v49 = vpop.f32.mrb[130].mxu0  ;;  %v2869_v32 = vld [vmem:[%s8319_s3 + $0x6e0] sm:$0xff] }
 0x1e5   :  { %v4579_v3 = vadd.f32 %v4578_v10, %v4309_v24  ;;  %v3898_v5 = vpop.permute.xlu1 %3897  ;;  %v4053_v51 = vpop.permute.xlu0 %4052  ;;  %v2043_v57 = vadd.f32 %v7730_v36, %v8539_v21  ;;  %v2623_v41 = vmax.f32 %v2291_v62, 0.0  ;;  %v2592_v12 = vmax.f32 %v7993_v44, 0.0 }
 0x1e6   :  { %v4383_v63 = vmul.f32 %v3898_v5, %v2591_v61  ;;  %v4414_v20 = vmul.f32 %v4053_v51, %v2622_v22  ;;  %3847 = vperm.xlu1 %5570, %v2837_v11   ;;  %4002 = vperm.xlu0 %5569, %v2868_v18   ;;  %v4311_v33 = vmul.f32 %v7426_v27, %v2519_v25  ;;  %v2521_v8 = vmax.f32 %v1883_v17, 0.0  ;;  %v1885_v43 = vpop.f32.mrb[131].mxu0 }
 0x1e7   :  { %v4580_v24 = vadd.f32 %v4579_v3, %v4310_v60  ;;  %v1894_v45 = vadd.f32 %v7730_v36, %v5413_v49  ;;  %v1886_v22 = vadd.f32 %v7730_v36, %v1885_v43  ;;  %v2171_v27 = vadd.f32 %v7730_v36, %v7421_v38  ;;  %v8541_v49 = vld [vmem:[#allocation62_spill] sm:$0xff] }
 0x1e8   :  { %v4668_v61 = vadd.f32 %v4667_v28, %v4383_v63  ;;  %v4704_v62 = vadd.f32 %v4703_v31, %v4414_v20  ;;  %v4312_v44 = vmul.f32 %v8540_v30, %v2520_v47  ;;  %v2523_v10 = vmax.f32 %v1891_v53, 0.0  ;;  %v2901_v47 = vld [vmem:[%s8319_s3 + $0x7e0] sm:$0xff]  ;;  %v2838_v53 = vld [vmem:[%s8319_s3 + $0x5e8] sm:$0xff] }
 0x1e9   :  { %v4581_v25 = vadd.f32 %v4580_v24, %v4311_v33  ;;  %v4058_v59 = vpop.permute.xlu1 %4057  ;;  %v3743_v11 = vpop.permute.xlu0 %3742  ;;  %v2294_v18 = vadd.f32 %v7730_v36, %v7706_v54  ;;  %v2522_v23 = vmax.f32 %v1886_v22, 0.0  ;;  %v2531_v31 = vmax.f32 %v7947_v19, 0.0  ;;  %v2839_v22 = vld [vmem:[%s8319_s3 + $0x5f0] sm:$0xff] }
 0x1ea   :  { %v4415_v60 = vmul.f32 %v4058_v59, %v2623_v41  ;;  %v4352_v28 = vmul.f32 %v3743_v11, %v2560_v0  ;;  %4007 = vperm.xlu1 %5570, %v2869_v32   ;;  %4162 = vperm.xlu0 %5569, %v2900_v9   ;;  %v2561_v40 = vmax.f32 %v2043_v57, 0.0  ;;  %v4313_v38 = vmul.f32 %v7446_v1, %v2521_v8  ;;  %v8032_v54 = vpop.f32.mrb[120].mxu1  ;;  %v8545_v59 = vld [vmem:[#allocation22_spill] sm:$0xff]  ;;  %v8573_v19 = vld [vmem:[#allocation104_spill] sm:$0xff] }
 0x1eb   :  { %v4582_v3 = vadd.f32 %v4581_v25, %v4312_v44  ;;  %v2524_v17 = vmax.f32 %v1894_v45, 0.0  ;;  %v4314_v0 = vmul.f32 %v7444_v37, %v2522_v23  ;;  %v8036_v21 = vpop.f32.mrb[121].mxu1  ;;  %v2593_v57 = vmax.f32 %v2171_v27, 0.0  ;;  %v8544_v27 = vld [vmem:[#allocation89_spill] sm:$0xff] }
 0x1ec   :  { %v4705_v5 = vadd.f32 %v4704_v62, %v4415_v60  ;;  %v4632_v51 = vadd.f32 %v7888_v46, %v4352_v28  ;;  %v4315_v41 = vmul.f32 %v7462_v35, %v2523_v10  ;;  %v2299_v33 = vadd.f32 %v7730_v36, %v8541_v49  ;;  %v8542_v46 = vld [vmem:[#allocation21_spill] sm:$0xff]  ;;  %v8543_v62 = vld [vmem:[#allocation56_spill] sm:$0xff]  ;;  %v8055_v10 = vpop.f32.mrb[122].mxu1 }
 0x1ed   :  { %v4583_v1 = vrot.slane %v4582_v3, 4  ;;  %v3748_v63 = vpop.permute.xlu1 %3747  ;;  %v3903_v20 = vpop.permute.xlu0 %3902  ;;  %v2624_v24 = vmax.f32 %v2294_v18, 0.0  ;;  %v4589_v8 = vadd.f32 %v4314_v0, %v4313_v38  ;;  %v2529_v37 = vmax.f32 %v7989_v55, 0.0  ;;  %v8546_v18 = vld [vmem:[#allocation15_spill] sm:$0xff]  ;;  %v8548_v60 = vld [vmem:[#allocation93_spill] sm:$0xff]  ;;  %v2871_v49 = vld [vmem:[%s8319_s3 + $0x6f0] sm:$0xff] }
 0x1ee   :  { %v4353_v43 = vmul.f32 %v3748_v63, %v2561_v40  ;;  %v4384_v32 = vmul.f32 %v3903_v20, %v2592_v12  ;;  %4167 = vperm.xlu1 %5570, %v2901_v47   ;;  %3852 = vperm.xlu0 %5569, %v2838_v53   ;;  %v8044_v9 = vadd.f32 %v7730_v36, %v8542_v46  ;;  %v2870_v12 = vld [vmem:[%s8319_s3 + $0x6e8] sm:$0xff]  ;;  %v8547_v23 = vmax.f32 %v8546_v18, 0.0  ;;  %v8549_v40 = vld [vmem:[#allocation86_spill] sm:$0xff] }
 0x1ef   :  { %v2046_v35 = vadd.f32 %v7730_v36, %v8543_v62  ;;  %v4584_v45 = vadd.f32 %v4583_v1, %v4582_v3  ;;  %v4316_v30 = vmul.f32 %v8544_v27, %v2524_v17  ;;  %v4590_v44 = vadd.f32 %v4589_v8, %v4315_v41  ;;  %v8550_v1 = vld [vmem:[#allocation51_spill] sm:$0xff]  ;;  %v8077_v62 = vpop.f32.mrb[123].mxu1 }
 0x1f0   :  { %v4633_v55 = vadd.f32 %v4632_v51, %v4353_v43  ;;  %v4669_v25 = vadd.f32 %v4668_v61, %v4384_v32  ;;  %v8059_v11 = vadd.f32 %v7730_v36, %v8545_v59  ;;  %v4317_v28 = vmul.f32 %v8548_v60, %v8547_v23  ;;  %v2902_v8 = vld [vmem:[%s8319_s3 + $0x7e8] sm:$0xff]  ;;  %v8557_v23 = vld [vmem:[#allocation9_spill] sm:$0xff] }
 0x1f1   :  { %v2174_v3 = vadd.f32 %v7730_v36, %v8549_v40  ;;  %v4585_v38 = vrot.slane %v4584_v45, 2  ;;  %v3908_v47 = vpop.permute.xlu1 %3907  ;;  %v4063_v53 = vpop.permute.xlu0 %4062  ;;  %v4591_v17 = vadd.f32 %v4590_v44, %v4316_v30  ;;  %v2625_v61 = vmax.f32 %v2299_v33, 0.0  ;;  %v8556_v30 = vld [vmem:[#allocation83_spill] sm:$0xff] }
 0x1f2   :  { %v4385_v0 = vmul.f32 %v3908_v47, %v2593_v57  ;;  %v4416_v51 = vmul.f32 %v4063_v53, %v2624_v24  ;;  %3857 = vperm.xlu1 %5570, %v2839_v22   ;;  %4012 = vperm.xlu0 %5569, %v2870_v12   ;;  %v2051_v41 = vadd.f32 %v7730_v36, %v8550_v1  ;;  %v2562_v63 = vmax.f32 %v2046_v35, 0.0  ;;  %v8552_v24 = vld [vmem:[#allocation92_spill] sm:$0xff]  ;;  %v5709_v35 = vld [vmem:[%s8323_s4 + $0x38] sm:$0xff]   ;;  %v8558_v47 = vld [vmem:[#allocation23_spill] sm:$0xff] }
 0x1f3   :  { %v4586_v20 = vadd.f32 %v4585_v38, %v4584_v45  ;;  %v8551_v57 = vmax.f32 %v7842_v4, 0.0  ;;  %v4592_v43 = vadd.f32 %v4591_v17, %v4317_v28  ;;  %v8553_v45 = vld [vmem:[#allocation8_spill] sm:$0xff]  ;;  %v8555_v12 = vld [vmem:[#allocation97_spill] sm:$0xff]  ;;  %v2179_v44 = vadd.f32 %v7730_v36, %v8556_v30  ;;  %5553 = vmatpush3.bf16.msra.mxu1 %v5709_v35 }
 0x1f4   :  { %v4670_v32 = vadd.f32 %v4669_v25, %v4385_v0  ;;  %v4706_v46 = vadd.f32 %v4705_v5, %v4416_v51  ;;  %v8554_v22 = vmax.f32 %v8553_v45, 0.0  ;;  %v2302_v25 = vadd.f32 %v7730_v36, %v8557_v23  ;;  %v2903_v51 = vld [vmem:[%s8319_s3 + $0x7f0] sm:$0xff]  ;;  %v8567_v23 = vld [vmem:[#allocation55_spill] sm:$0xff] }
 0x1f5   :  { %v4318_v33 = vmul.f32 %v8552_v24, %v8551_v57  ;;  %v4587_v59 = vrot.slane %v4586_v20, 1  ;;  %v4068_v4 = vpop.permute.xlu1 %4067  ;;  %v3753_v18 = vpop.permute.xlu0 %3752  ;;  %v2594_v5 = vmax.f32 %v2174_v3, 0.0  ;;  %v2530_v38 = vmax.f32 %v8059_v11, 0.0  ;;  %v2840_v3 = vld [vmem:[%s8319_s3 + $0x5f8] sm:$0xff] }
 0x1f6   :  { %v4319_v27 = vmul.f32 %v8555_v12, %v8554_v22  ;;  %v4417_v28 = vmul.f32 %v4068_v4, %v2625_v61  ;;  %v4354_v40 = vmul.f32 %v3753_v18, %v2562_v63  ;;  %4017 = vperm.xlu1 %5570, %v2871_v49   ;;  %4172 = vperm.xlu0 %5569, %v2902_v8   ;;  %v2563_v17 = vmax.f32 %v2051_v41, 0.0  ;;  %v8559_v61 = vld [vmem:[#allocation16_spill] sm:$0xff]  ;;  %v8562_v24 = vld [vmem:[#allocation101_spill] sm:$0xff]  ;;  %v8564_v12 = vld [vmem:[#allocation39_spill] sm:$0xff] }
 0x1f7   :  { %v4593_v60 = vadd.f32 %v4592_v43, %v4318_v33  ;;  %v8092_v53 = vadd.f32 %v7730_v36, %v8558_v47  ;;  %v4588_v0 = vadd.f32 %v4587_v59, %v4586_v20  ;;  %v8560_v1 = vmax.f32 %v8559_v61, 0.0  ;;  %v8561_v63 = vld [vmem:[#allocation96_spill] sm:$0xff]  ;;  %v8563_v20 = vld [vmem:[#allocation43_spill] sm:$0xff]  ;;  %v8570_v61 = vld [vmem:[#allocation105_spill] sm:$0xff] }
 0x1f8   :  { %v4707_v8 = vadd.f32 %v4706_v46, %v4417_v28  ;;  %v4634_v57 = vadd.f32 %v4633_v55, %v4354_v40  ;;  %v4321_v33 = vmul.f32 %v8562_v24, %v2529_v37  ;;  %v2595_v41 = vmax.f32 %v2179_v44, 0.0  ;;  %v8565_v46 = vld [vmem:[#allocation24_spill] sm:$0xff]  ;;  %v2904_v28 = vld [vmem:[%s8319_s3 + $0x7f8] sm:$0xff] }
 0x1f9   :  { %v4320_v49 = vmul.f32 %v8561_v63, %v8560_v1  ;;  %v4594_v11 = vadd.f32 %v4593_v60, %v4319_v27  ;;  %v2307_v43 = vadd.f32 %v7730_v36, %v8563_v20  ;;  %v3758_v45 = vpop.permute.xlu1 %3757  ;;  %v3913_v22 = vpop.permute.xlu0 %3912  ;;  %v8108_v30 = vsel %vm4740_vm3, %v8564_v12, %v4588_v0  ;;  %v8566_v27 = vld [vmem:[#allocation25_spill] sm:$0xff] }
 0x1fa   :  { %v4355_v59 = vmul.f32 %v3758_v45, %v2563_v17  ;;  %v4386_v4 = vmul.f32 %v3913_v22, %v2594_v5  ;;  %v2626_v18 = vmax.f32 %v2302_v25, 0.0  ;;  %4177 = vperm.xlu1 %5570, %v2903_v51   ;;  %3862 = vperm.xlu0 %5569, %v2840_v3   ;;  %v2532_v55 = vmax.f32 %v8044_v9, 0.0  ;;  %v2872_v25 = vld [vmem:[%s8319_s3 + $0x6f8] sm:$0xff]  ;;  %v8568_v5 = vld [vmem:[#allocation100_spill] sm:$0xff]  ;;  %v8569_v51 = vld [vmem:[#allocation26_spill] sm:$0xff] }
 0x1fb   :  { %v4595_v35 = vadd.f32 %v4594_v11, %v4320_v49  ;;  %v1931_v37 = vadd.f32 %v7730_v36, %v8565_v46  ;;  %v1942_v44 = vadd.f32 %v7730_v36, %v8566_v27  ;;  %v2054_v60 = vadd.f32 %v7730_v36, %v8567_v23  ;;  %v8571_v63 = vld [vmem:[#allocation85_spill] sm:$0xff]  ;;  %v8572_v22 = vld [vmem:[#allocation3_spill] sm:$0xff]  ;;  %v8574_v23 = vld [vmem:[#allocation88_spill] sm:$0xff] }
 0x1fc   :  { %v4322_v40 = vmul.f32 %v8568_v5, %v2530_v38  ;;  %v4635_v47 = vadd.f32 %v4634_v57, %v4355_v59  ;;  %v4671_v17 = vadd.f32 %v4670_v32, %v4386_v4  ;;  %v2535_v0 = vmax.f32 %v8092_v53, 0.0 }
 0x1fd   :  { %v4596_v9 = vadd.f32 %v4595_v35, %v4321_v33  ;;  %v1934_v3 = vadd.f32 %v7730_v36, %v8569_v51  ;;  %v4323_v1 = vmul.f32 %v8570_v61, %v2531_v31  ;;  %v2182_v49 = vadd.f32 %v7730_v36, %v8571_v63  ;;  %v3918_v11 = vpop.permute.xlu1 %3917  ;;  %v4073_v24 = vpop.permute.xlu0 %4072  ;;  %v8579_v51 = vld [vmem:[#allocation29_spill] sm:$0xff] }
 0x1fe   :  { %v2627_v45 = vmax.f32 %v2307_v43, 0.0  ;;  %v4387_v38 = vmul.f32 %v3918_v11, %v2595_v41  ;;  %v4418_v33 = vmul.f32 %v4073_v24, %v2626_v18  ;;  %4182 = vperm.xlu1 %5570, %v2904_v28   ;;  %4022 = vperm.xlu0 %5569, %v2872_v25   ;;  %v2533_v32 = vmax.f32 %v1931_v37, 0.0  ;;  %v8575_v41 = vld [vmem:[#allocation46_spill] sm:$0xff] }
 0x1ff   :  { %v4597_v20 = vadd.f32 %v4596_v9, %v4322_v40  ;;  %v2536_v53 = vmax.f32 %v1942_v44, 0.0  ;;  %v2564_v57 = vmax.f32 %v2054_v60, 0.0  ;;  %v2059_v12 = vadd.f32 %v7730_v36, %v8572_v22  ;;  %v8576_v44 = vld [vmem:[#allocation109_spill] sm:$0xff]  ;;  %v8577_v9 = vld [vmem:[#allocation27_spill] sm:$0xff] }
 0x200   :  { %v4324_v35 = vmul.f32 %v8573_v19, %v2532_v55  ;;  %v4672_v59 = vadd.f32 %v4671_v17, %v4387_v38  ;;  %v4708_v4 = vadd.f32 %v4707_v8, %v4418_v33  ;;  %v2534_v46 = vmax.f32 %v1934_v3, 0.0  ;;  %v8578_v17 = vld [vmem:[#allocation28_spill] sm:$0xff] }
 0x201   :  { %v4598_v31 = vadd.f32 %v4597_v20, %v4323_v1  ;;  %v2596_v27 = vmax.f32 %v2182_v49, 0.0  ;;  %v2187_v43 = vadd.f32 %v7730_v36, %v8574_v23  ;;  %v2310_v18 = vadd.f32 %v7730_v36, %v8575_v41  ;;  %v4078_v28 = vpop.permute.xlu1 %4077  ;;  %v3763_v37 = vpop.permute.xlu0 %3762  ;;  %v8580_v1 = vld [vmem:[#allocation108_spill] sm:$0xff]  ;;  %v8581_v20 = vld [vmem:[#allocation30_spill] sm:$0xff] }
 0x202   :  { %v4325_v60 = vmul.f32 %v8576_v44, %v2533_v32  ;;  %v4419_v5 = vmul.f32 %v4078_v28, %v2627_v45  ;;  %v4356_v40 = vmul.f32 %v3763_v37, %v2564_v57  ;;  %v1955_v55 = vadd.f32 %v7730_v36, %v8577_v9  ;;  %v8582_v45 = vld [vmem:[#allocation113_spill] sm:$0xff]  ;;  %v8583_v28 = vld [vmem:[#allocation60_spill] sm:$0xff] }
 0x203   :  { %v4599_v25 = vadd.f32 %v4598_v31, %v4324_v35  ;;  %v1947_v8 = vadd.f32 %v7730_v36, %v8578_v17  ;;  %v1958_v3 = vadd.f32 %v7730_v36, %v8579_v51  ;;  %v2565_v61 = vmax.f32 %v2059_v12, 0.0 }
 0x204   :  { %v4326_v63 = vmul.f32 %v8580_v1, %v2534_v46  ;;  %v4709_v11 = vadd.f32 %v4708_v4, %v4419_v5  ;;  %v4636_v24 = vadd.f32 %v4635_v47, %v4356_v40  ;;  %v1950_v38 = vadd.f32 %v7730_v36, %v8581_v20  ;;  %v8584_v4 = vld [vmem:[#allocation112_spill] sm:$0xff]  ;;  %v8586_v40 = vld [vmem:[#allocation91_spill] sm:$0xff] }
 0x205   :  { %v4600_v49 = vadd.f32 %v4599_v25, %v4325_v60  ;;  %v4327_v33 = vmul.f32 %v8582_v45, %v2535_v0  ;;  %v2597_v32 = vmax.f32 %v2187_v43, 0.0  ;;  %v2628_v57 = vmax.f32 %v2310_v18, 0.0  ;;  %v3768_v22 = vpop.permute.xlu1 %3767  ;;  %v3923_v19 = vpop.permute.xlu0 %3922  ;;  %v8585_v25 = vld [vmem:[#allocation117_spill] sm:$0xff] }
 0x206   :  { %v4357_v31 = vmul.f32 %v3768_v22, %v2565_v61  ;;  %v4388_v23 = vmul.f32 %v3923_v19, %v2596_v27  ;;  %v2315_v12 = vadd.f32 %v7730_v36, %v7807_v48  ;;  %v2539_v41 = vmax.f32 %v1955_v55, 0.0  ;;  %v8587_v61 = vld [vmem:[#allocation32_spill] sm:$0xff]  ;;  %v8591_v22 = vld [vmem:[#allocation121_spill] sm:$0xff] }
 0x207   :  { %v4601_v35 = vadd.f32 %v4600_v49, %v4326_v63  ;;  %v2537_v46 = vmax.f32 %v1947_v8, 0.0  ;;  %v2062_v47 = vadd.f32 %v7730_v36, %v8583_v28  ;;  %v4328_v37 = vmul.f32 %v8584_v4, %v2536_v53  ;;  %v8588_v53 = vld [vmem:[#allocation34_spill] sm:$0xff] }
 0x208   :  { %v4637_v60 = vadd.f32 %v4636_v24, %v4357_v31  ;;  %v4673_v0 = vadd.f32 %v4672_v59, %v4388_v23  ;;  %v2540_v43 = vmax.f32 %v1958_v3, 0.0  ;;  %v2538_v18 = vmax.f32 %v1950_v38, 0.0  ;;  %v8589_v59 = vld [vmem:[#allocation57_spill] sm:$0xff]  ;;  %v8590_v24 = vld [vmem:[#allocation116_spill] sm:$0xff] }
 0x209   :  { %v4602_v44 = vadd.f32 %v4601_v35, %v4327_v33  ;;  %v4329_v5 = vmul.f32 %v8585_v25, %v2537_v46  ;;  %v2190_v27 = vadd.f32 %v7730_v36, %v8586_v40  ;;  %v3928_v9 = vpop.permute.xlu1 %3927  ;;  %v4083_v17 = vpop.permute.xlu0 %4082  ;;  %v2629_v51 = vmax.f32 %v2315_v12, 0.0 }
 0x20a   :  { %v4389_v55 = vmul.f32 %v3928_v9, %v2597_v32  ;;  %v4420_v8 = vmul.f32 %v4083_v17, %v2628_v57  ;;  %v1963_v1 = vadd.f32 %v7730_v36, %v8587_v61  ;;  %v1966_v63 = vadd.f32 %v7730_v36, %v8588_v53  ;;  %v8592_v32 = vld [vmem:[#allocation87_spill] sm:$0xff] }
 0x20b   :  { %v4603_v48 = vadd.f32 %v4602_v44, %v4328_v37  ;;  %v2067_v3 = vadd.f32 %v7730_v36, %v8589_v59  ;;  %v2566_v49 = vmax.f32 %v2062_v47, 0.0  ;;  %v4330_v20 = vmul.f32 %v8590_v24, %v2538_v18  ;;  %v8593_v47 = vld [vmem:[#allocation31_spill] sm:$0xff] }
 0x20c   :  { %v4674_v45 = vadd.f32 %v4673_v0, %v4389_v55  ;;  %v4710_v33 = vadd.f32 %v4709_v11, %v4420_v8  ;;  %v4331_v19 = vmul.f32 %v8591_v22, %v2539_v41  ;;  %v2195_v57 = vadd.f32 %v7730_v36, %v8592_v32  ;;  %v8175_v11 = vld [vmem:[%s8322_s2] ss:$0 sm:$0xff]  ;;  %v8594_v41 = vld [vmem:[#allocation33_spill] sm:$0xff] }
 0x20d   :  { %v4604_v38 = vadd.f32 %v4603_v48, %v4329_v5  ;;  %v2598_v35 = vmax.f32 %v2190_v27, 0.0  ;;  %v4088_v31 = vpop.permute.xlu1 %4087  ;;  %v3773_v23 = vpop.permute.xlu0 %3772  ;;  %v2318_v12 = vadd.f32 %v7730_v36, %v7833_v34  ;;  %v1971_v37 = vadd.f32 %v7730_v36, %v8593_v47  ;;  %v8595_v34 = vld [vmem:[#allocation120_spill] sm:$0xff]  ;;  %v8596_v36 = vld [vmem:[#allocation123_spill] sm:$0xff]  ;;  %v8601_v32 = vld [vmem:[#allocation38_spill] sm:$0xff] }
 0x20e   :  { %v4421_v28 = vmul.f32 %v4088_v31, %v2629_v51  ;;  %v4358_v4 = vmul.f32 %v3773_v23, %v2566_v49  ;;  %v2541_v44 = vmax.f32 %v1963_v1, 0.0  ;;  %v1974_v0 = vadd.f32 %v8175_v11, %v8594_v41  ;;  %v8598_v49 = vld [vmem:[#allocation6_spill] sm:$0xff]  ;;  %v8603_v41 = vld [vmem:[#allocation7_spill] sm:$0xff] }
 0x20f   :  { %v4605_v46 = vadd.f32 %v4604_v38, %v4330_v20  ;;  %v2567_v18 = vmax.f32 %v2067_v3, 0.0  ;;  %v4332_v25 = vmul.f32 %v8595_v34, %v2540_v43  ;;  %v2542_v9 = vmax.f32 %v1966_v63, 0.0  ;;  %v8599_v63 = vld [vmem:[#allocation122_spill] sm:$0xff]  ;;  %v8605_v34 = vld [vmem:[#allocation4_spill] sm:$0xff] }
 0x210   :  { %v4711_v40 = vadd.f32 %v4710_v33, %v4421_v28  ;;  %v4638_v27 = vadd.f32 %v4637_v60, %v4358_v4  ;;  %v4333_v17 = vmul.f32 %v8596_v36, %v2541_v44  ;;  %v2599_v48 = vmax.f32 %v2195_v57, 0.0 }
 0x211   :  { %v4606_v5 = vadd.f32 %v4605_v46, %v4331_v19  ;;  %v2323_v55 = vadd.f32 %v8175_v11, %v7803_v26  ;;  %v3778_v8 = vpop.permute.xlu1 %3777  ;;  %v3933_v51 = vpop.permute.xlu0 %3932  ;;  %v2630_v59 = vmax.f32 %v2318_v12, 0.0  ;;  %v2543_v3 = vmax.f32 %v1971_v37, 0.0  ;;  %v8600_v26 = vld [vmem:[#allocation35_spill] sm:$0xff] }
 0x212   :  { %v4359_v1 = vmul.f32 %v3778_v8, %v2567_v18  ;;  %v4390_v53 = vmul.f32 %v3933_v51, %v2598_v35  ;;  %v1979_v43 = vadd.f32 %v8175_v11, %v8597_v39  ;;  %v2070_v60 = vadd.f32 %v8175_v11, %v8598_v49  ;;  %v8602_v35 = vld [vmem:[#allocation2_spill] sm:$0xff] }
 0x213   :  { %v4607_v61 = vadd.f32 %v4606_v5, %v4332_v25  ;;  %v4334_v24 = vmul.f32 %v8599_v63, %v2542_v9  ;;  %v2544_v22 = vmax.f32 %v1974_v0, 0.0  ;;  %v1987_v19 = vadd.f32 %v8175_v11, %v8600_v26  ;;  %v8604_v0 = vld [vmem:[#allocation90_spill] sm:$0xff]  ;;  %v8609_v63 = vld [vmem:[#allocation95_spill] sm:$0xff] }
 0x214   :  { %v4639_v38 = vadd.f32 %v4638_v27, %v4359_v1  ;;  %v4675_v33 = vadd.f32 %v4674_v45, %v4390_v53  ;;  %v1982_v57 = vadd.f32 %v8175_v11, %v8601_v32  ;;  %v4335_v31 = vmul.f32 %v8602_v35, %v2543_v3  ;;  %v8607_v1 = vld [vmem:[#allocation58_spill] sm:$0xff]  ;;  %v8612_v35 = vld [vmem:[#allocation17_spill] sm:$0xff] }
 0x215   :  { %v4608_v20 = vadd.f32 %v4607_v61, %v4333_v17  ;;  %v3938_v23 = vpop.permute.xlu1 %3937  ;;  %v4093_v12 = vpop.permute.xlu0 %4092  ;;  %v2631_v28 = vmax.f32 %v2323_v55, 0.0  ;;  %v2545_v37 = vmax.f32 %v1979_v43, 0.0  ;;  %v2568_v44 = vmax.f32 %v2070_v60, 0.0  ;;  %v8606_v17 = vld [vmem:[#allocation37_spill] sm:$0xff]  ;;  %v8608_v43 = vld [vmem:[#allocation40_spill] sm:$0xff]  ;;  %v8611_v32 = vld [vmem:[#allocation42_spill] sm:$0xff] }
 0x216   :  { %v4391_v4 = vmul.f32 %v3938_v23, %v2599_v48  ;;  %v4422_v47 = vmul.f32 %v4093_v12, %v2630_v59  ;;  %v2075_v45 = vadd.f32 %v8175_v11, %v8603_v41  ;;  %v2198_v18 = vadd.f32 %v8175_v11, %v8604_v0  ;;  %v8613_v41 = vld [vmem:[#allocation64_spill] sm:$0xff]  ;;  %v8614_v0 = vld [vmem:[#allocation5_spill] sm:$0xff] }
 0x217   :  { %v4609_v46 = vadd.f32 %v4608_v20, %v4334_v24  ;;  %v4336_v25 = vmul.f32 %v8605_v34, %v2544_v22  ;;  %v2547_v36 = vmax.f32 %v1987_v19, 0.0  ;;  %v1990_v8 = vadd.f32 %v8175_v11, %v8606_v17  ;;  %v8610_v20 = vld [vmem:[#allocation59_spill] sm:$0xff] }
 0x218   :  { %v4676_v5 = vadd.f32 %v4675_v33, %v4391_v4  ;;  %v4712_v27 = vadd.f32 %v4711_v40, %v4422_v47  ;;  %v2546_v55 = vmax.f32 %v1982_v57, 0.0  ;;  %v2326_v48 = vadd.f32 %v8175_v11, %v7816_v16 }
 0x219   :  { %v4610_v9 = vadd.f32 %v4609_v46, %v4335_v31  ;;  %v4098_v51 = vpop.permute.xlu1 %4097  ;;  %v3783_v61 = vpop.permute.xlu0 %3782  ;;  %v4337_v53 = vmul.f32 %v8607_v1, %v2545_v37  ;;  %v1995_v49 = vadd.f32 %v8175_v11, %v8608_v43  ;;  %v2569_v40 = vmax.f32 %v2075_v45, 0.0  ;;  %v8616_v1 = vld [vmem:[#allocation61_spill] sm:$0xff]  ;;  %v8618_v43 = vld [vmem:[#allocation63_spill] sm:$0xff] }
 0x21a   :  { %v4423_v59 = vmul.f32 %v4098_v51, %v2631_v28  ;;  %v4360_v3 = vmul.f32 %v3783_v61, %v2568_v44  ;;  %v2600_v60 = vmax.f32 %v2198_v18, 0.0  ;;  %v2203_v24 = vadd.f32 %v8175_v11, %v8609_v63 }
 0x21b   :  { %v4611_v39 = vadd.f32 %v4610_v9, %v4336_v25  ;;  %v4338_v33 = vmul.f32 %v8610_v20, %v2546_v55  ;;  %v2548_v19 = vmax.f32 %v1990_v8, 0.0  ;;  %v1998_v57 = vadd.f32 %v8175_v11, %v8611_v32  ;;  %v8619_v32 = vld [vmem:[#allocation94_spill] sm:$0xff] }
 0x21c   :  { %v4713_v22 = vadd.f32 %v4712_v27, %v4423_v59  ;;  %v4640_v26 = vadd.f32 %v4639_v38, %v4360_v3  ;;  %v4339_v31 = vmul.f32 %v8612_v35, %v2547_v36  ;;  %v2632_v23 = vmax.f32 %v2326_v48, 0.0  ;;  %v8615_v36 = vld [vmem:[#allocation41_spill] sm:$0xff]  ;;  %v8617_v3 = vld [vmem:[#allocation99_spill] sm:$0xff] }
 0x21d   :  { %v4612_v16 = vadd.f32 %v4611_v39, %v4337_v53  ;;  %v3788_v12 = vpop.permute.xlu1 %3787  ;;  %v3943_v46 = vpop.permute.xlu0 %3942  ;;  %v2331_v47 = vadd.f32 %v8175_v11, %v7859_v42  ;;  %v2549_v44 = vmax.f32 %v1995_v49, 0.0  ;;  %v2078_v38 = vadd.f32 %v8175_v11, %v8613_v41  ;;  %v8621_v41 = vld [vmem:[#allocation12_spill] sm:$0xff] }
 0x21e   :  { %v4361_v28 = vmul.f32 %v3788_v12, %v2569_v40  ;;  %v4392_v4 = vmul.f32 %v3943_v46, %v2600_v60  ;;  %v2601_v45 = vmax.f32 %v2203_v24, 0.0  ;;  %v4340_v18 = vmul.f32 %v8614_v0, %v2548_v19  ;;  %v8620_v12 = vld [vmem:[#allocation44_spill] sm:$0xff] }
 0x21f   :  { %v4613_v37 = vadd.f32 %v4612_v16, %v4338_v33  ;;  %v2550_v9 = vmax.f32 %v1998_v57, 0.0  ;;  %v4341_v17 = vmul.f32 %v8615_v36, %v2549_v44  ;;  %v2633_v61 = vmax.f32 %v2331_v47, 0.0 }
 0x220   :  { %v4641_v34 = vadd.f32 %v4640_v26, %v4361_v28  ;;  %v4677_v25 = vadd.f32 %v4676_v5, %v4392_v4  ;;  %v2083_v53 = vadd.f32 %v8175_v11, %v8616_v1  ;;  %v2570_v59 = vmax.f32 %v2078_v38, 0.0  ;;  %v8622_v38 = vld [vmem:[#allocation10_spill] sm:$0xff] }
 0x221   :  { %v4614_v27 = vadd.f32 %v4613_v37, %v4339_v31  ;;  %v3948_v8 = vpop.permute.xlu1 %3947  ;;  %v4103_v55 = vpop.permute.xlu0 %4102  ;;  %v2206_v39 = vadd.f32 %v8175_v11, %v8617_v3  ;;  %v4342_v49 = vmul.f32 %v8618_v43, %v2550_v9  ;;  %v2334_v26 = vadd.f32 %v8175_v11, %v7882_v29 }
 0x222   :  { %v4393_v48 = vmul.f32 %v3948_v8, %v2601_v45  ;;  %v4424_v51 = vmul.f32 %v4103_v55, %v2632_v23  ;;  %v2571_v19 = vmax.f32 %v2083_v53, 0.0  ;;  %v2211_v57 = vadd.f32 %v8175_v11, %v8619_v32  ;;  %v8623_v55 = vld [vmem:[#allocation11_spill] sm:$0xff] }
 0x223   :  { %v4615_v42 = vadd.f32 %v4614_v27, %v4340_v18  ;;  %v2602_v35 = vmax.f32 %v2206_v39, 0.0  ;;  %v2634_v44 = vmax.f32 %v2334_v26, 0.0  ;;  %v2086_v45 = vadd.f32 %v8175_v11, %v8622_v38 }
 0x224   :  { %v4678_v5 = vadd.f32 %v4677_v25, %v4393_v48  ;;  %v4714_v40 = vadd.f32 %v4713_v22, %v4424_v51  ;;  %v2339_v22 = vadd.f32 %v8175_v11, %v7852_v14  ;;  %v2603_v0 = vmax.f32 %v2211_v57, 0.0  ;;  %v8624_v51 = vld [vmem:[#allocation98_spill] sm:$0xff] }
 0x225   :  { %v4616_v60 = vadd.f32 %v4615_v42, %v4341_v17  ;;  %v4108_v63 = vpop.permute.xlu1 %4107  ;;  %v3793_v24 = vpop.permute.xlu0 %3792  ;;  %v2091_v48 = vadd.f32 %v8175_v11, %v8623_v55  ;;  %v2572_v42 = vmax.f32 %v2086_v45, 0.0  ;;  %v2342_v3 = vadd.f32 %v8175_v11, %v7866_v50  ;;  %v8627_v45 = vld [vmem:[#allocation65_spill] sm:$0xff]  ;;  %v8629_v55 = vld [vmem:[#allocation102_spill] sm:$0xff] }
 0x226   :  { %v4425_v20 = vmul.f32 %v4108_v63, %v2633_v61  ;;  %v4362_v33 = vmul.f32 %v3793_v24, %v2570_v59  ;;  %v2635_v36 = vmax.f32 %v2339_v22, 0.0  ;;  %v2214_v61 = vadd.f32 %v8175_v11, %v8624_v51  ;;  %v8625_v24 = vld [vmem:[#allocation103_spill] sm:$0xff] }
 0x227   :  { %v4617_v16 = vadd.f32 %v4616_v60, %v4342_v49  ;;  %v2573_v60 = vmax.f32 %v2091_v48, 0.0  ;;  %v2347_v50 = vadd.f32 %v8175_v11, %v7906_v56  ;;  %v8628_v56 = vld [vmem:[#allocation107_spill] sm:$0xff]  ;;  %v2227_v48 = vadd.f32 %v8175_v11, %v8629_v55 }
 0x228   :  { %v4715_v31 = vadd.f32 %v4714_v40, %v4425_v20  ;;  %v4642_v23 = vadd.f32 %v4641_v34, %v4362_v33  ;;  %v2604_v63 = vmax.f32 %v2214_v61, 0.0  ;;  %v2219_v20 = vadd.f32 %v8175_v11, %v8625_v24 }
 0x229   :  { %v4618_v46 = vadd.f32 %v4617_v16, %v8620_v12  ;;  %v3798_v28 = vpop.permute.xlu1 %3797  ;;  %v3953_v4 = vpop.permute.xlu0 %3952  ;;  %v8626_v12 = vld [vmem:[#allocation67_spill] sm:$0xff]  ;;  %v2637_v38 = vmax.f32 %v2347_v50, 0.0 }
 0x22a   :  { %v4363_v47 = vmul.f32 %v3798_v28, %v2571_v19  ;;  %v4394_v37 = vmul.f32 %v3953_v4, %v2602_v35  ;;  %v2636_v19 = vmax.f32 %v2342_v3, 0.0  ;;  %v2605_v22 = vmax.f32 %v2219_v20, 0.0 }
 0x22b   :  { %v4619_v29 = vadd.f32 %v4618_v46, %v8621_v41  ;;  %v2094_v46 = vadd.f32 %v8175_v11, %v8626_v12  ;;  %v2358_v12 = vadd.f32 %v8175_v11, %v7922_v58 }
 0x22c   :  { %v4643_v18 = vadd.f32 %v4642_v23, %v4363_v47  ;;  %v4679_v25 = vadd.f32 %v4678_v5, %v4394_v37 }
 0x22d   :  { %v4620_v27 = vrot.slane %v4619_v29, 4  ;;  %v3958_v34 = vpop.permute.xlu1 %3957  ;;  %v4113_v9 = vpop.permute.xlu0 %4112 }
 0x22e   :  { %v4395_v17 = vmul.f32 %v3958_v34, %v2603_v0  ;;  %v4426_v8 = vmul.f32 %v4113_v9, %v2634_v44  ;;  %v2099_v0 = vadd.f32 %v8175_v11, %v8627_v45 }
 0x22f   :  { %v4621_v14 = vadd.f32 %v4620_v27, %v4619_v29 }
 0x230   :  { %v4680_v1 = vadd.f32 %v4679_v25, %v4395_v17  ;;  %v4716_v53 = vadd.f32 %v4715_v31, %v4426_v8  ;;  %v2222_v25 = vadd.f32 %v8175_v11, %v8628_v56 }
 0x231   :  { %v4622_v59 = vrot.slane %v4621_v14, 2  ;;  %v4118_v39 = vpop.permute.xlu1 %4117  ;;  %v3803_v43 = vpop.permute.xlu0 %3802 }
 0x232   :  { %v4427_v49 = vmul.f32 %v4118_v39, %v2635_v36  ;;  %v4364_v5 = vmul.f32 %v3803_v43, %v2572_v42  ;;  %v2606_v51 = vmax.f32 %v2222_v25, 0.0  ;;  %v2363_v25 = vadd.f32 %v8175_v11, %v7967_v2 }
 0x233   :  { %v4623_v40 = vadd.f32 %v4622_v59, %v4621_v14  ;;  %v2575_v14 = vmax.f32 %v2099_v0, 0.0  ;;  %v2355_v59 = vadd.f32 %v8175_v11, %v7903_v6  ;;  %v2640_v0 = vmax.f32 %v2358_v12, 0.0 }
 0x234   :  { %v4717_v33 = vadd.f32 %v4716_v53, %v4427_v49  ;;  %v4644_v26 = vadd.f32 %v4643_v18, %v4364_v5  ;;  %v2574_v18 = vmax.f32 %v2094_v46, 0.0  ;;  %v8630_v49 = vld [vmem:[#allocation14_spill] sm:$0xff]  ;;  %v2641_v55 = vmax.f32 %v2363_v25, 0.0 }
 0x235   :  { %v4624_v16 = vrot.slane %v4623_v40, 1  ;;  %v3808_v32 = vpop.permute.xlu1 %3807  ;;  %v3963_v57 = vpop.permute.xlu0 %3962  ;;  %v2102_v5 = vadd.f32 %v8175_v11, %v8630_v49  ;;  %v2639_v20 = vmax.f32 %v2355_v59, 0.0  ;;  %v2366_v49 = vadd.f32 %v8175_v11, %v7982_v13 }
 0x236   :  { %v4365_v35 = vmul.f32 %v3808_v32, %v2573_v60  ;;  %v4396_v31 = vmul.f32 %v3963_v57, %v2604_v63  ;;  %v8632_v57 = vld [vmem:[#allocation106_spill] sm:$0xff] }
 0x237   :  { %v4625_v23 = vadd.f32 %v4624_v16, %v4623_v40  ;;  %v2607_v40 = vmax.f32 %v2227_v48, 0.0  ;;  %v8631_v16 = vld [vmem:[#allocation68_spill] sm:$0xff]  ;;  %v2576_v32 = vmax.f32 %v2102_v5, 0.0  ;;  %v2230_v6 = vadd.f32 %v8175_v11, %v8632_v57  ;;  %v8635_v48 = vld [vmem:[#allocation13_spill] sm:$0xff] }
 0x238   :  { %v4645_v28 = vadd.f32 %v4644_v26, %v4365_v35  ;;  %v4681_v4 = vadd.f32 %v4680_v1, %v4396_v31  ;;  %v8638_v57 = vld [vmem:[#allocation69_spill] sm:$0xff] }
 0x239   :  { %v8246_v47 = vsel %vm4742_vm5, %v8108_v30, %v4625_v23  ;;  %v3968_v37 = vpop.permute.xlu1 %3967  ;;  %v4123_v44 = vpop.permute.xlu0 %4122  ;;  %v2350_v30 = vadd.f32 %v8175_v11, %v7936_v15 }
 0x23a   :  { %v4397_v41 = vmul.f32 %v3968_v37, %v2605_v22  ;;  %v4428_v29 = vmul.f32 %v4123_v44, %v2636_v19  ;;  %v2107_v19 = vadd.f32 %v8175_v11, %v8631_v16  ;;  %v8633_v37 = vld [vmem:[#allocation111_spill] sm:$0xff] }
 0x23b   :  { %v2638_v43 = vmax.f32 %v2350_v30, 0.0  ;;  %v2235_v44 = vadd.f32 %v8175_v11, %v8633_v37 }
 0x23c   :  { %v4682_v27 = vadd.f32 %v4681_v4, %v4397_v41  ;;  %v4718_v34 = vadd.f32 %v4717_v33, %v4428_v29  ;;  %v2608_v4 = vmax.f32 %v2230_v6, 0.0  ;;  %v2118_v6 = vadd.f32 %v8175_v11, %v8638_v57 }
 0x23d   :  { %v4128_v9 = vpop.permute.xlu1 %4127  ;;  %v3813_v36 = vpop.permute.xlu0 %3812 }
 0x23e   :  { %v4429_v17 = vmul.f32 %v4128_v9, %v2637_v38  ;;  %v4366_v8 = vmul.f32 %v3813_v36, %v2574_v18  ;;  %v2580_v37 = vmax.f32 %v2118_v6, 0.0 }
 0x240   :  { %v4719_v61 = vadd.f32 %v4718_v34, %v4429_v17  ;;  %v4646_v42 = vadd.f32 %v4645_v28, %v4366_v8  ;;  %v2577_v28 = vmax.f32 %v2107_v19, 0.0  ;;  %v2609_v34 = vmax.f32 %v2235_v44, 0.0  ;;  %v8640_v44 = vld [vmem:[#allocation114_spill] sm:$0xff] }
 0x241   :  { %v3818_v1 = vpop.permute.xlu1 %3817  ;;  %v3973_v53 = vpop.permute.xlu0 %3972 }
 0x242   :  { %v4367_v3 = vmul.f32 %v3818_v1, %v2575_v14  ;;  %v4398_v39 = vmul.f32 %v3973_v53, %v2606_v51  ;;  %v2115_v51 = vadd.f32 %v8175_v11, %v8635_v48  ;;  %v2379_v48 = vadd.f32 %v8175_v11, %v8036_v21 }
 0x244   :  { %v4647_v15 = vadd.f32 %v4646_v42, %v4367_v3  ;;  %v4683_v60 = vadd.f32 %v4682_v27, %v4398_v39  ;;  %v8634_v27 = vld [vmem:[#allocation70_spill] sm:$0xff]  ;;  %v8636_v42 = vld [vmem:[#allocation115_spill] sm:$0xff]  ;;  %v2579_v5 = vmax.f32 %v2115_v51, 0.0  ;;  %v8642_v51 = vld [vmem:[#allocation76_spill] sm:$0xff] }
 0x245   :  { %v3978_v63 = vpop.permute.xlu1 %3977  ;;  %v4133_v24 = vpop.permute.xlu0 %4132  ;;  %v2110_v58 = vadd.f32 %v8175_v11, %v8634_v27  ;;  %v2238_v1 = vadd.f32 %v8175_v11, %v8636_v42 }
 0x246   :  { %v4399_v33 = vmul.f32 %v3978_v63, %v2607_v40  ;;  %v4430_v26 = vmul.f32 %v4133_v24, %v2638_v43  ;;  %v8637_v40 = vld [vmem:[#allocation110_spill] sm:$0xff] }
 0x248   :  { %v4684_v35 = vadd.f32 %v4683_v60, %v4399_v33  ;;  %v4720_v31 = vadd.f32 %v4719_v61, %v4430_v26  ;;  %v2578_v61 = vmax.f32 %v2110_v58, 0.0  ;;  %v2610_v60 = vmax.f32 %v2238_v1, 0.0  ;;  %v8641_v58 = vld [vmem:[#allocation119_spill] sm:$0xff] }
 0x249   :  { %v4138_v50 = vpop.permute.xlu1 %4137  ;;  %v3823_v23 = vpop.permute.xlu0 %3822  ;;  %v2371_v26 = vadd.f32 %v8175_v11, %v7960_v52  ;;  %v2246_v52 = vadd.f32 %v8175_v11, %v8640_v44 }
 0x24a   :  { %v4431_v46 = vmul.f32 %v4138_v50, %v2639_v20  ;;  %v4368_v22 = vmul.f32 %v3823_v23, %v2576_v32  ;;  %v2642_v32 = vmax.f32 %v2366_v49, 0.0 }
 0x24b   :  { %v2643_v12 = vmax.f32 %v2371_v26, 0.0  ;;  %v2612_v27 = vmax.f32 %v2246_v52, 0.0  ;;  %v2382_v26 = vadd.f32 %v8175_v11, %v8077_v62 }
 0x24c   :  { %v4721_v41 = vadd.f32 %v4720_v31, %v4431_v46  ;;  %v4648_v29 = vadd.f32 %v4647_v15, %v4368_v22  ;;  %v2243_v15 = vadd.f32 %v8175_v11, %v8637_v40  ;;  %v8644_v40 = vld [vmem:[#allocation53_spill] sm:$0xff] }
 0x24d   :  { %v3828_v38 = vpop.permute.xlu1 %3827  ;;  %v3983_v45 = vpop.permute.xlu0 %3982 }
 0x24e   :  { %v4369_v18 = vmul.f32 %v3828_v38, %v2577_v28  ;;  %v4400_v56 = vmul.f32 %v3983_v45, %v2608_v4  ;;  %v8639_v28 = vld [vmem:[#allocation72_spill] sm:$0xff] }
 0x24f   :  { %v2123_v4 = vadd.f32 %v8175_v11, %v8639_v28 }
 0x250   :  { %v4649_v9 = vadd.f32 %v4648_v29, %v4369_v18  ;;  %v4685_v36 = vadd.f32 %v4684_v35, %v4400_v56  ;;  %v2611_v35 = vmax.f32 %v2243_v15, 0.0  ;;  %v2254_v15 = vadd.f32 %v8175_v11, %v8644_v40 }
 0x251   :  { %v3988_v17 = vpop.permute.xlu1 %3987  ;;  %v4143_v8 = vpop.permute.xlu0 %4142  ;;  %v2581_v25 = vmax.f32 %v2123_v4, 0.0  ;;  %v2387_v4 = vadd.f32 %v8175_v11, %v8032_v54 }
 0x252   :  { %v4401_v30 = vmul.f32 %v3988_v17, %v2609_v34  ;;  %v4432_v14 = vmul.f32 %v4143_v8, %v2640_v0  ;;  %v2374_v0 = vadd.f32 %v8175_v11, %v7977_v7  ;;  %v2251_v34 = vadd.f32 %v8175_v11, %v8641_v58 }
 0x253   :  { %v2126_v7 = vadd.f32 %v8175_v11, %v8642_v51  ;;  %v2614_v57 = vmax.f32 %v2254_v15, 0.0 }
 0x254   :  { %v4686_v53 = vadd.f32 %v4685_v36, %v4401_v30  ;;  %v4722_v2 = vadd.f32 %v4721_v41, %v4432_v14  ;;  %v2644_v30 = vmax.f32 %v2374_v0, 0.0 }
 0x255   :  { %v4148_v59 = vpop.permute.xlu1 %4147  ;;  %v3833_v3 = vpop.permute.xlu0 %3832 }
 0x256   :  { %v4433_v39 = vmul.f32 %v4148_v59, %v2641_v55  ;;  %v4370_v43 = vmul.f32 %v3833_v3, %v2578_v61  ;;  %v2613_v61 = vmax.f32 %v2251_v34, 0.0 }
 0x258   :  { %v4723_v63 = vadd.f32 %v4722_v2, %v4433_v39  ;;  %v4650_v24 = vadd.f32 %v4649_v9, %v4370_v43  ;;  %v2645_v39 = vmax.f32 %v2379_v48, 0.0  ;;  %v8643_v43 = vld [vmem:[#allocation71_spill] sm:$0xff] }
 0x259   :  { %v3838_v20 = vpop.permute.xlu1 %3837  ;;  %v3993_v33 = vpop.permute.xlu0 %3992  ;;  %v2131_v49 = vadd.f32 %v8175_v11, %v8643_v43 }
 0x25a   :  { %v4371_v16 = vmul.f32 %v3838_v20, %v2579_v5  ;;  %v4402_v19 = vmul.f32 %v3993_v33, %v2610_v60  ;;  %v2582_v5 = vmax.f32 %v2126_v7, 0.0 }
 0x25c   :  { %v4651_v13 = vadd.f32 %v4650_v24, %v4371_v16  ;;  %v4687_v31 = vadd.f32 %v4686_v53, %v4402_v19  ;;  %v2583_v16 = vmax.f32 %v2131_v49, 0.0  ;;  %v8645_v19 = vld [vmem:[#allocation118_spill] sm:$0xff] }
 0x25d   :  { %v3998_v50 = vpop.permute.xlu1 %3997  ;;  %v4153_v23 = vpop.permute.xlu0 %4152 }
 0x25e   :  { %v4403_v46 = vmul.f32 %v3998_v50, %v2611_v35  ;;  %v4434_v22 = vmul.f32 %v4153_v23, %v2642_v32  ;;  %v2259_v32 = vadd.f32 %v8175_v11, %v8645_v19  ;;  %v5127_v19 = vld [vmem:[%s8324_s5] ss:$0 sm:$0xff] }
 0x260   :  { %v4688_v41 = vadd.f32 %v4687_v31, %v4403_v46  ;;  %v4724_v29 = vadd.f32 %v4723_v63, %v4434_v22  ;;  %v8646_v46 = vld [vmem:[#allocation75_spill] sm:$0xff]  ;;  %v2615_v28 = vmax.f32 %v2259_v32, 0.0 }
 0x261   :  { %v4158_v38 = vpop.permute.xlu1 %4157  ;;  %v3843_v45 = vpop.permute.xlu0 %3842  ;;  %v2134_v22 = vadd.f32 %v8175_v11, %v8646_v46 }
 0x262   :  { %v4435_v18 = vmul.f32 %v4158_v38, %v2643_v12  ;;  %v4372_v56 = vmul.f32 %v3843_v45, %v2580_v37  ;;  %v2646_v12 = vmax.f32 %v2382_v26, 0.0  ;;  %v8647_v45 = vld [vmem:[#allocation54_spill] sm:$0xff] }
 0x263   :  { %v2584_v38 = vmax.f32 %v2134_v22, 0.0  ;;  %v2262_v0 = vadd.f32 %v8175_v11, %v8647_v45 }
 0x264   :  { %v4725_v9 = vadd.f32 %v4724_v29, %v4435_v18  ;;  %v4652_v36 = vadd.f32 %v4651_v13, %v4372_v56  ;;  %v2647_v18 = vmax.f32 %v2387_v4, 0.0  ;;  %v2390_v56 = vadd.f32 %v8175_v11, %v8055_v10 }
 0x265   :  { %v3848_v17 = vpop.permute.xlu1 %3847  ;;  %v4003_v8 = vpop.permute.xlu0 %4002 }
 0x266   :  { %v4373_v14 = vmul.f32 %v3848_v17, %v2581_v25  ;;  %v4404_v55 = vmul.f32 %v4003_v8, %v2612_v27  ;;  %v2648_v17 = vmax.f32 %v2390_v56, 0.0 }
 0x268   :  { %v4653_v42 = vadd.f32 %v4652_v36, %v4373_v14  ;;  %v4689_v1 = vadd.f32 %v4688_v41, %v4404_v55  ;;  %v2616_v36 = vmax.f32 %v2262_v0, 0.0 }
 0x269   :  { %v4008_v53 = vpop.permute.xlu1 %4007  ;;  %v4163_v2 = vpop.permute.xlu0 %4162 }
 0x26a   :  { %v4405_v59 = vmul.f32 %v4008_v53, %v2613_v61  ;;  %v4436_v3 = vmul.f32 %v4163_v2, %v2644_v30 }
 0x26c   :  { %v4690_v60 = vadd.f32 %v4689_v1, %v4405_v59  ;;  %v4726_v21 = vadd.f32 %v4725_v9, %v4436_v3 }
 0x26d   :  { %v4168_v63 = vpop.permute.xlu1 %4167  ;;  %v3853_v24 = vpop.permute.xlu0 %3852 }
 0x26e   :  { %v4437_v20 = vmul.f32 %v4168_v63, %v2645_v39  ;;  %v4374_v33 = vmul.f32 %v3853_v24, %v2582_v5 }
 0x270   :  { %v4727_v6 = vadd.f32 %v4726_v21, %v4437_v20  ;;  %v4654_v35 = vadd.f32 %v4653_v42, %v4374_v33 }
 0x271   :  { %v3858_v13 = vpop.permute.xlu1 %3857  ;;  %v4013_v31 = vpop.permute.xlu0 %4012 }
 0x272   :  { %v4375_v50 = vmul.f32 %v3858_v13, %v2583_v16  ;;  %v4406_v23 = vmul.f32 %v4013_v31, %v2614_v57 }
 0x274   :  { %v4655_v62 = vadd.f32 %v4654_v35, %v4375_v50  ;;  %v4691_v37 = vadd.f32 %v4690_v60, %v4406_v23 }
 0x275   :  { %v4018_v44 = vpop.permute.xlu1 %4017  ;;  %v4173_v52 = vpop.permute.xlu0 %4172 }
 0x276   :  { %v4407_v41 = vmul.f32 %v4018_v44, %v2615_v28  ;;  %v4438_v29 = vmul.f32 %v4173_v52, %v2646_v12 }
 0x278   :  { %v4692_v25 = vadd.f32 %v4691_v37, %v4407_v41  ;;  %v4728_v27 = vadd.f32 %v4727_v6, %v4438_v29 }
 0x279   :  { %v4178_v58 = vpop.permute.xlu1 %4177  ;;  %v3863_v34 = vpop.permute.xlu0 %3862 }
 0x27a   :  { %v4439_v9 = vmul.f32 %v4178_v58, %v2647_v18  ;;  %v4376_v54 = vmul.f32 %v3863_v34, %v2584_v38 }
 0x27c   :  { %v4729_v8 = vadd.f32 %v4728_v27, %v4439_v9  ;;  %v4656_v30 = vadd.f32 %v4655_v62, %v4376_v54 }
 0x27d   :  { %v4183_v14 = vpop.permute.xlu1 %4182  ;;  %v4023_v55 = vpop.permute.xlu0 %4022 }
 0x27e   :  { %v4657_v48 = vrot.slane %v4656_v30, 4  ;;  %v4440_v51 = vmul.f32 %v4183_v14, %v2648_v17  ;;  %v4408_v7 = vmul.f32 %v4023_v55, %v2616_v36 }
 0x280   :  { %v4658_v61 = vadd.f32 %v4657_v48, %v4656_v30  ;;  %v4730_v42 = vadd.f32 %v4729_v8, %v4440_v51  ;;  %v4693_v1 = vadd.f32 %v4692_v25, %v4408_v7 }
 0x282   :  { %v4659_v53 = vrot.slane %v4658_v61, 2  ;;  %v4731_v10 = vrot.slane %v4730_v42, 4  ;;  %v4694_v11 = vrot.slane %v4693_v1, 4 }
 0x284   :  { %v4660_v2 = vadd.f32 %v4659_v53, %v4658_v61  ;;  %v4732_v59 = vadd.f32 %v4731_v10, %v4730_v42  ;;  %v4695_v3 = vadd.f32 %v4694_v11, %v4693_v1 }
 0x286   :  { %v4661_v39 = vrot.slane %v4660_v2, 1  ;;  %v4733_v43 = vrot.slane %v4732_v59, 2  ;;  %v4696_v49 = vrot.slane %v4695_v3, 2 }
 0x288   :  { %v4662_v5 = vadd.f32 %v4661_v39, %v4660_v2  ;;  %v4734_v40 = vadd.f32 %v4733_v43, %v4732_v59  ;;  %v4697_v15 = vadd.f32 %v4696_v49, %v4695_v3 }
 0x28a   :  { %v4745_v60 = vsel %vm4744_vm6, %v8246_v47, %v4662_v5  ;;  %v4735_v21 = vrot.slane %v4734_v40, 1  ;;  %v4698_v63 = vrot.slane %v4697_v15, 1 }
 0x28c   :  { %v4736_v24 = vadd.f32 %v4735_v21, %v4734_v40  ;;  %v4699_v20 = vadd.f32 %v4698_v63, %v4697_v15 }
 0x28e   :  { %v4747_v33 = vsel %vm4746_vm7, %v4745_v60, %v4699_v20 }
 0x28f   :  { %v4749_v26 = vsel %vm4748_vm8, %v4747_v33, %v4736_v24 }
 0x290   :  { %v4750_v16 = vpack.c.bf16 %v4749_v26, %v4749_v26 }
 0x292   :  { %5555 = vmatmul.mubr.bf16.vlgmr.msra.gmra.mrb[124].mxu1 %v4750_v16 }
 0x365   :  { %v4856_v32 = vpop.f32.mrb[124].mxu1 }
 0x366   :  { %v4857_v57 = vadd.f32 %v5127_v19, %v4856_v32  ;;  %v5556_v6 = vpop.f32.mrb[125].mxu1 }
 0x367   :  { %v4859_v35 = vpop.f32.mrb[126].mxu1 }
 0x368   :  { %4862 = vst [vmem:[%s8325_s6] sm:$0xff] %v4857_v57  ;;  %v5557_v47 = vpop.f32.mrb[127].mxu1 }

</bundles_post_ra>
